<compile_context>
chip_gen: v5e
topology: v5e:2x2
jax: 0.10.0
libtpu: 0.0.40
codegen_flags: <defaults>
</compile_context>

<pallas_src>
import jax
import jax.numpy as jnp
from jax.experimental import pallas as pl
from jax.experimental.pallas import tpu as pltpu

IN_DIM = 600
HID_DIM = 1024
OUT_DIM = 512

# Batch-tile cap. At TB=512 the per-step VMEM footprint (double-buffered f32 x
# tile, double-buffered output tile, resident bf16 weights, f32 intermediate)
# is ~13 MiB -- comfortable everywhere once the scoped-VMEM limit is 48 MiB.
TB_MAX = 512


def purchase_encoder_kernel(x_ref, w1_ref, b1_ref, w2_ref, b2_ref, o_ref):
    # Layer 1: Linear(600 -> 1024) + Tanh.
    # x arrives f32 (no wrapper-side cast / extra HBM round trip); the bf16
    # cast here is cheap VPU work hidden under the MXU matmul.
    x_bf16 = x_ref[...].astype(jnp.bfloat16)
    h = jnp.dot(x_bf16, w1_ref[...], preferred_element_type=jnp.float32)
    h = jnp.tanh(h + b1_ref[...])              # b1 is (1, 1024), broadcasts over batch

    # Layer 2: Linear(1024 -> 512) + Tanh.
    # h is in [-1, 1]; the bf16 cast keeps this matmul on the native MXU path.
    en = jnp.dot(h.astype(jnp.bfloat16), w2_ref[...],
                 preferred_element_type=jnp.float32)
    en = jnp.tanh(en + b2_ref[...])            # b2 is (1, 512)

    o_ref[...] = en.astype(o_ref.dtype)


def _round_up(n, m):
    return ((n + m - 1) // m) * m


def _select_batch_tiling(B):
    """Balanced batch tiling.

    Returns (TB, B_pad) with TB a multiple of 16 (bf16 sublane packing),
    padding bounded by ~15 rows per tile, and -- once B is large enough to
    benefit -- an even number of grid steps so v7x's two TensorCores both get
    work via the "parallel" dimension semantics.
    """
    B = max(B, 1)
    if B <= 128:
        TB = _round_up(B, 16)
        return TB, TB                      # grid = (1,)
    n_tiles = max(pl.cdiv(B, TB_MAX), 2)
    if n_tiles % 2:
        n_tiles += 1                       # keep grid length even for megacore
    TB = _round_up(pl.cdiv(B, n_tiles), 16)
    return TB, n_tiles * TB


def purchase_encoder(x, w1, b1, w2, b2, *, out_dtype=jnp.float32):
    """x: (B, 600) f32 -> (B, 512) out_dtype.

    w1: (600, 1024), w2: (1024, 512) -- ideally pre-cast to bf16 (init_params
    does this); b1: (1, 1024), b2: (1, 512) f32.
    """
    B = x.shape[0]
    TB, B_pad = _select_batch_tiling(B)
    if B_pad != B:
        x = jnp.pad(x, ((0, B_pad - B), (0, 0)))

    # Weights should already be bf16 (pre-cast once at init); these casts are
    # no-ops in that case and only exist as a safety net for f32 callers.
    if w1.dtype != jnp.bfloat16:
        w1 = w1.astype(jnp.bfloat16)
    if w2.dtype != jnp.bfloat16:
        w2 = w2.astype(jnp.bfloat16)
    if b1.dtype != jnp.float32:
        b1 = b1.astype(jnp.float32)
    if b2.dtype != jnp.float32:
        b2 = b2.astype(jnp.float32)

    grid = (B_pad // TB,)

    out_bytes = jnp.dtype(out_dtype).itemsize
    flops = 2 * B_pad * (IN_DIM * HID_DIM + HID_DIM * OUT_DIM)
    transcendentals = B_pad * (HID_DIM + OUT_DIM)
    bytes_accessed = (
        B_pad * IN_DIM * 4               # x (f32, read once)
        + IN_DIM * HID_DIM * 2           # w1 (bf16, resident)
        + HID_DIM * OUT_DIM * 2          # w2 (bf16, resident)
        + HID_DIM * 4 + OUT_DIM * 4      # biases (f32)
        + B_pad * OUT_DIM * out_bytes    # output
    )

    out = pl.pallas_call(
        purchase_encoder_kernel,
        out_shape=jax.ShapeDtypeStruct((B_pad, OUT_DIM), out_dtype),
        grid_spec=pl.GridSpec(
            grid=grid,
            in_specs=[
                pl.BlockSpec((TB, IN_DIM), lambda i: (i, 0)),        # x: batch-tiled
                pl.BlockSpec((IN_DIM, HID_DIM), lambda i: (0, 0)),   # w1: VMEM-resident
                pl.BlockSpec((1, HID_DIM), lambda i: (0, 0)),        # b1: VMEM-resident
                pl.BlockSpec((HID_DIM, OUT_DIM), lambda i: (0, 0)),  # w2: VMEM-resident
                pl.BlockSpec((1, OUT_DIM), lambda i: (0, 0)),        # b2: VMEM-resident
            ],
            out_specs=pl.BlockSpec((TB, OUT_DIM), lambda i: (i, 0)),
        ),
        compiler_params=pltpu.CompilerParams(
            # Batch axis shards across v7x's two TensorCores; plain loop on
            # v5e/v6e.
            dimension_semantics=("parallel",),
            # ~13 MiB footprint at TB=512; 48 MiB clears v5e's 16 MiB scoped
            # default and stays under v7x's 64 MiB physical VMEM per TC.
            vmem_limit_bytes=48 * 1024 * 1024,
        ),
        cost_estimate=pl.CostEstimate(
            flops=flops,
            transcendentals=transcendentals,
            bytes_accessed=bytes_accessed,
        ),
    )(x, w1, b1, w2, b2)

    return out[:B] if B_pad != B else out


def init_params(key):
    """Deterministic synthetic params (PyTorch Linear-style uniform).

    Weights are returned pre-cast to bf16 (stored once), biases in f32, so the
    forward pass never re-converts parameters per call.
    """
    k1, k2, k3, k4 = jax.random.split(key, 4)
    lim1 = 1.0 / jnp.sqrt(IN_DIM)
    lim2 = 1.0 / jnp.sqrt(HID_DIM)
    w1 = jax.random.uniform(k1, (IN_DIM, HID_DIM), jnp.float32, -lim1, lim1)
    b1 = jax.random.uniform(k2, (1, HID_DIM), jnp.float32, -lim1, lim1)
    w2 = jax.random.uniform(k3, (HID_DIM, OUT_DIM), jnp.float32, -lim2, lim2)
    b2 = jax.random.uniform(k4, (1, OUT_DIM), jnp.float32, -lim2, lim2)
    return w1.astype(jnp.bfloat16), b1, w2.astype(jnp.bfloat16), b2


def reference(x, w1, b1, w2, b2):
    # Full-f32 reference of the PyTorch forward pass.
    h = jnp.tanh(x @ w1.astype(jnp.float32) + b1)
    return jnp.tanh(h @ w2.astype(jnp.float32) + b2)


if __name__ == "__main__":
    key = jax.random.PRNGKey(0)
    kx, kp = jax.random.split(key)

    w1, b1, w2, b2 = init_params(kp)

    # Primary test: small batch (exercises padding to the 16-row tile).
    batch = 2
    x = jax.random.normal(kx, (batch, IN_DIM), jnp.float32)
    out = jax.block_until_ready(purchase_encoder(x, w1, b1, w2, b2))
    ref = reference(x, w1, b1, w2, b2)
    assert out.shape == (batch, OUT_DIM)
    assert out.dtype == jnp.float32
    # Tolerance loosened vs. pure-f32 because x/weights/h are cast to bf16
    # (f32 accumulation); tanh saturation keeps the error small.
    assert jnp.allclose(out, ref, atol=3e-2, rtol=3e-2)

    # Secondary test: batch > 128 -> balanced 2-tile grid, non-multiple-of-16
    # batch (padding + slice-back path).
    batch2 = 131
    x2 = jax.random.normal(jax.random.fold_in(kx, 1), (batch2, IN_DIM), jnp.float32)
    out2 = jax.block_until_ready(purchase_encoder(x2, w1, b1, w2, b2))
    ref2 = reference(x2, w1, b1, w2, b2)
    assert out2.shape == (batch2, OUT_DIM)
    assert jnp.allclose(out2, ref2, atol=3e-2, rtol=3e-2)

    print("KERNEL_OK")
</pallas_src>

<mosaic_0001>
module attributes {stable_mosaic.version = 11 : i64} {
  func.func @purchase_encoder_kernel(%arg0: i32, %arg1: memref<16x600xf32, #tpu.memory_space<vmem>>, %arg2: memref<600x1024xbf16, #tpu.memory_space<vmem>>, %arg3: memref<1x1024xf32, #tpu.memory_space<vmem>>, %arg4: memref<1024x512xbf16, #tpu.memory_space<vmem>>, %arg5: memref<1x512xf32, #tpu.memory_space<vmem>>, %arg6: memref<16x512xf32, #tpu.memory_space<vmem>>) attributes {dimension_semantics = [#tpu.dimension_semantics<parallel>], iteration_bounds = array<i64: 1>, scalar_prefetch = 0 : i64, scratch_operands = 0 : i64, tpu.core_type = #tpu.core_type<tc>, window_params = [{transform_indices = @transform_0, window_bounds = array<i64: 16, 600>}, {pipeline_mode = #tpu.pipeline_mode<synchronous>, transform_indices = @transform_1, window_bounds = array<i64: 600, 1024>}, {pipeline_mode = #tpu.pipeline_mode<synchronous>, transform_indices = @transform_2, window_bounds = array<i64: 1, 1024>}, {pipeline_mode = #tpu.pipeline_mode<synchronous>, transform_indices = @transform_3, window_bounds = array<i64: 1024, 512>}, {pipeline_mode = #tpu.pipeline_mode<synchronous>, transform_indices = @transform_4, window_bounds = array<i64: 1, 512>}, {transform_indices = @transform_5, window_bounds = array<i64: 16, 512>}]} {
    %c0 = arith.constant 0 : index
    %c0_0 = arith.constant 0 : index
    %0 = vector.load %arg1[%c0, %c0_0] : memref<16x600xf32, #tpu.memory_space<vmem>>, vector<16x600xf32>
    %1 = arith.truncf %0 : vector<16x600xf32> to vector<16x600xbf16>
    %c0_1 = arith.constant 0 : index
    %c0_2 = arith.constant 0 : index
    %2 = vector.load %arg2[%c0_1, %c0_2] : memref<600x1024xbf16, #tpu.memory_space<vmem>>, vector<600x1024xbf16>
    %cst = arith.constant dense<0.000000e+00> : vector<16x1024xf32>
    %3 = tpu.matmul %1, %2, %cst {dimension_numbers = #tpu.dot_dimension_numbers<[1], [0], [0], [1], [0, 0, 1, 1], [], []>} : vector<16x600xbf16>, vector<600x1024xbf16>, vector<16x1024xf32> -> vector<16x1024xf32>
    %c0_3 = arith.constant 0 : index
    %c0_4 = arith.constant 0 : index
    %4 = vector.load %arg3[%c0_3, %c0_4] : memref<1x1024xf32, #tpu.memory_space<vmem>>, vector<1x1024xf32>
    %5 = vector.broadcast %4 : vector<1x1024xf32> to vector<16x1024xf32>
    %6 = arith.addf %3, %5 : vector<16x1024xf32>
    %7 = math.tanh %6 : vector<16x1024xf32>
    %8 = arith.truncf %7 : vector<16x1024xf32> to vector<16x1024xbf16>
    %c0_5 = arith.constant 0 : index
    %c0_6 = arith.constant 0 : index
    %9 = vector.load %arg4[%c0_5, %c0_6] : memref<1024x512xbf16, #tpu.memory_space<vmem>>, vector<1024x512xbf16>
    %cst_7 = arith.constant dense<0.000000e+00> : vector<16x512xf32>
    %10 = tpu.matmul %8, %9, %cst_7 {dimension_numbers = #tpu.dot_dimension_numbers<[1], [0], [0], [1], [0, 0, 1, 1], [], []>} : vector<16x1024xbf16>, vector<1024x512xbf16>, vector<16x512xf32> -> vector<16x512xf32>
    %c0_8 = arith.constant 0 : index
    %c0_9 = arith.constant 0 : index
    %11 = vector.load %arg5[%c0_8, %c0_9] : memref<1x512xf32, #tpu.memory_space<vmem>>, vector<1x512xf32>
    %12 = vector.broadcast %11 : vector<1x512xf32> to vector<16x512xf32>
    %13 = arith.addf %10, %12 : vector<16x512xf32>
    %14 = math.tanh %13 : vector<16x512xf32>
    %c0_10 = arith.constant 0 : index
    %c0_11 = arith.constant 0 : index
    %15 = vector.load %arg6[%c0_10, %c0_11] : memref<16x512xf32, #tpu.memory_space<vmem>>, vector<16x512xf32>
    tpu.vector_store %arg6[%c0_10, %c0_11], %14 {strides = array<i32>} : memref<16x512xf32, #tpu.memory_space<vmem>>, vector<16x512xf32>,
    return
  }
  func.func @transform_0(%arg0: i32) -> (i32, i32) {
    %c0_i32 = arith.constant 0 : i32
    %c0_i32_0 = arith.constant 0 : i32
    return %arg0, %c0_i32 : i32, i32
  }
  func.func @transform_1(%arg0: i32) -> (i32, i32) {
    %c0_i32 = arith.constant 0 : i32
    %c0_i32_0 = arith.constant 0 : i32
    %c0_i32_1 = arith.constant 0 : i32
    return %c0_i32, %c0_i32_0 : i32, i32
  }
  func.func @transform_2(%arg0: i32) -> (i32, i32) {
    %c0_i32 = arith.constant 0 : i32
    %c0_i32_0 = arith.constant 0 : i32
    %c0_i32_1 = arith.constant 0 : i32
    return %c0_i32, %c0_i32_0 : i32, i32
  }
  func.func @transform_3(%arg0: i32) -> (i32, i32) {
    %c0_i32 = arith.constant 0 : i32
    %c0_i32_0 = arith.constant 0 : i32
    %c0_i32_1 = arith.constant 0 : i32
    return %c0_i32, %c0_i32_0 : i32, i32
  }
  func.func @transform_4(%arg0: i32) -> (i32, i32) {
    %c0_i32 = arith.constant 0 : i32
    %c0_i32_0 = arith.constant 0 : i32
    %c0_i32_1 = arith.constant 0 : i32
    return %c0_i32, %c0_i32_0 : i32, i32
  }
  func.func @transform_5(%arg0: i32) -> (i32, i32) {
    %c0_i32 = arith.constant 0 : i32
    %c0_i32_0 = arith.constant 0 : i32
    return %arg0, %c0_i32 : i32, i32
  }
}

</mosaic_0001>

<bundles_post_ra>
// kernel: tpu_custom_call.1
= control target key start
LH: loop header
LB: loop body
LE: loop exit
PB: predicated region body
PF: predicated region fallthrough
CT: control target
= control target key end

     0   :  { %10 = vsyncpa [#allocation3], 0  ;;  %s7874_s0 = inlined_call_operand.hbm [shape: f32[16,600], index: 0, kind: input, shape index: {}]   ;;  %s7875_s1 = inlined_call_operand.hbm [shape: bf16[600,1024], index: 1, kind: input, shape index: {}]   ;;  %s7876_s2 = inlined_call_operand.hbm [shape: f32[1,1024], index: 2, kind: input, shape index: {}]   ;;  %s7877_s3 = inlined_call_operand.hbm [shape: bf16[1024,512], index: 3, kind: input, shape index: {}]   ;;  %s7878_s4 = inlined_call_operand.hbm [shape: f32[1,512], index: 4, kind: input, shape index: {}]   ;;  %s7879_s5 = inlined_call_operand.hbm [shape: f32[16,512], index: 5, kind: output, shape index: {}]  }
   0x1   :  { %11 = vsyncpa [#allocation6], 0 }
   0x2   :  { %12 = vsyncpa [#allocation9], 0  ;;  %s31_s20 = sshll.u32 %s7875_s1, 4  ;;  %s32_s20 = int_to_ptr.hbm [resolvable:$true] %s31_s20 }
   0x3   :  { %13 = vsyncpa [#allocation4], 0  ;;  %s7555_s21 = smov [#allocation5]   ;;  %s55_s25 = sshll.u32 %s7877_s3, 4  ;;  %s56_s25 = int_to_ptr.hbm [resolvable:$true] %s55_s25 }
   0x4   :  { %s33_s22 = sshll.u32 %s7555_s21, 4  ;;  %s7556_s26 = smov 512   ;;  %s34_s22 = int_to_ptr.vmem [resolvable:$true] %s33_s22 }
   0x5   :  { %s7557_s27 = smov 32   ;;  %s7558_s28 = smov [#allocation8]  }
   0x6   :  { %39 = dma.hbm_to_vmem [thread:$0]  %s32_s20, 38400, %s34_s22, [#allocation6], %s7556_s26, %s7556_s26, %s7557_s27  }
   0x7   :  { %s57_s29 = sshll.u32 %s7558_s28, 4  ;;  %s7559_s1 = smov 256   ;;  %s58_s29 = int_to_ptr.vmem [resolvable:$true] %s57_s29 }
   0x8   :  { %s7560_s30 = smov 16   ;;  %s18_s8 = sshll.u32 %s7874_s0, 4  ;;  %s19_s8 = int_to_ptr.hbm [resolvable:$true] %s18_s8 }
   0x9   :  { %63 = dma.hbm_to_vmem [thread:$0]  %s56_s25, 32768, %s58_s29, [#allocation9], %s7559_s1, %s7559_s1, %s7560_s30  }
   0xa   :  { %s7561_s9 = smov [#allocation2]   ;;  %s45_s12 = sshll.u32 %s7876_s2, 4  ;;  %s46_s12 = int_to_ptr.hbm [resolvable:$true] %s45_s12 }
   0xb   :  { %s20_s3 = sshll.u32 %s7561_s9, 4  ;;  %s7562_s13 = smov 640   ;;  %s21_s3 = int_to_ptr.vmem [resolvable:$true] %s20_s3 }
   0xc   :  { %s7563_s14 = smov 40   ;;  %s7564_s15 = smov [#allocation7]  }
   0xd   :  { %26 = dma.hbm_to_vmem [thread:$0]  %s19_s8, 1280, %s21_s3, [#allocation3], %s7562_s13, %s7562_s13, %s7563_s14  }
   0xe   :  { %s47_s16 = sshll.u32 %s7564_s15, 4  ;;  %s69_s19 = sshll.u32 %s7878_s4, 4  ;;  %s48_s16 = int_to_ptr.vmem [resolvable:$true] %s47_s16  ;;  %s70_s19 = int_to_ptr.hbm [resolvable:$true] %s69_s19 }
   0xf   :  { %50 = dma.hbm_to_vmem [thread:$0]  %s46_s12, 128, %s48_s16, [#allocation6]  }
  0x10   :  { %s7565_s0 = smov [#allocation10]  }
  0x11   :  { %s71_s20 = sshll.u32 %s7565_s0, 4  ;;  %s72_s20 = int_to_ptr.vmem [resolvable:$true] %s71_s20 }
  0x12   :  { %74 = dma.hbm_to_vmem [thread:$0]  %s70_s19, 64, %s72_s20, [#allocation9]  }
  0x13   :  { %7547 = dma.done.wait [#allocation3], 1280  }
  0x14   :  { %7548 = vsyncadd [#allocation3], 4294966016 }
  0x15   :  { %7549 = dma.done.wait [#allocation6], 38528  }
  0x16   :  { %7550 = vsyncadd [#allocation6], 4294928768 }
  0x17   :  { %7551 = dma.done.wait [#allocation9], 32832  }
  0x18   :  { %7552 = vsyncadd [#allocation9], 4294934464  ;;  %v4799_v0 = vld [vmem:[#allocation5 + $0x1c0] sm:$0xf]  ;;  %vm1933_vm0 = vcmask 1043456   ;;  %vm1929_vm1 = vcmask 719872  }
  0x19   :  { %v6849_v1 = vld [vmem:[#allocation5 + $0x1dc] sm:$0xf0]  ;;  %s7566_s2 = smov [#allocation11]   ;;  %s4558_s23 = sshll.u32 %s7879_s5, 4  ;;  %s4559_s23 = int_to_ptr.hbm [resolvable:$true] %s4558_s23 }
  0x1a   :  { %v5055_v2 = vld [vmem:[#allocation5 + $0x3c0] sm:$0xf]  ;;  %v4800_v3 = vor.u32 %v6849_v1, %v4799_v0  ;;  %s4556_s4 = sshll.u32 %s7566_s2, 4  ;;  %s4557_s4 = int_to_ptr.vmem [resolvable:$true] %s4556_s4 }
  0x1b   :  { %v6913_v4 = vld [vmem:[#allocation5 + $0x3dc] sm:$0xf0] }
  0x1c   :  { %v5311_v5 = vld [vmem:[#allocation5 + $0x5c0] sm:$0xf]  ;;  %v5056_v7 = vor.u32 %v6913_v4, %v5055_v2  ;;  %1958 = vmatpush.bf16.msra.mxu0 %v4800_v3 }
  0x1d   :  { %v6977_v6 = vld [vmem:[#allocation5 + $0x5dc] sm:$0xf0] }
  0x1e   :  { %v5312_v8 = vor.u32 %v6977_v6, %v5311_v5  ;;  %v5567_v9 = vld [vmem:[#allocation5 + $0x7c0] sm:$0xf]  ;;  %1972 = vmatpush.bf16.msra.mxu1 %v5056_v7 }
  0x1f   :  { %v7041_v10 = vld [vmem:[#allocation5 + $0x7dc] sm:$0xf0] }
  0x20   :  { %v4767_v11 = vld [vmem:[#allocation5 + $0x180] sm:$0xf]  ;;  %v5568_v12 = vor.u32 %v7041_v10, %v5567_v9  ;;  %1986 = vmatpush.bf16.msra.mxu2 %v5312_v8 }
  0x21   :  { %v6841_v13 = vld [vmem:[#allocation5 + $0x19c] sm:$0xf0] }
  0x22   :  { %v5023_v14 = vld [vmem:[#allocation5 + $0x380] sm:$0xf]  ;;  %v4768_v16 = vor.u32 %v6841_v13, %v4767_v11  ;;  %2000 = vmatpush.bf16.msra.mxu3 %v5568_v12 }
  0x23   :  { %v6905_v15 = vld [vmem:[#allocation5 + $0x39c] sm:$0xf0] }
  0x24   :  { %v5024_v17 = vor.u32 %v6905_v15, %v5023_v14  ;;  %v5279_v18 = vld [vmem:[#allocation5 + $0x580] sm:$0xf]  ;;  %1959 = vmatpush.bf16.msra.mxu0 %v4768_v16 }
  0x25   :  { %v6969_v19 = vld [vmem:[#allocation5 + $0x59c] sm:$0xf0] }
  0x26   :  { %v5535_v20 = vld [vmem:[#allocation5 + $0x780] sm:$0xf]  ;;  %v5280_v21 = vor.u32 %v6969_v19, %v5279_v18  ;;  %1973 = vmatpush.bf16.msra.mxu1 %v5024_v17 }
  0x27   :  { %v7033_v22 = vld [vmem:[#allocation5 + $0x79c] sm:$0xf0] }
  0x28   :  { %v4735_v23 = vld [vmem:[#allocation5 + $0x140] sm:$0xf]  ;;  %v5536_v25 = vor.u32 %v7033_v22, %v5535_v20  ;;  %1987 = vmatpush.bf16.msra.mxu2 %v5280_v21 }
  0x29   :  { %v6833_v24 = vld [vmem:[#allocation5 + $0x15c] sm:$0xf0] }
  0x2a   :  { %v4991_v26 = vld [vmem:[#allocation5 + $0x340] sm:$0xf]  ;;  %v4736_v29 = vor.u32 %v6833_v24, %v4735_v23  ;;  %2001 = vmatpush.bf16.msra.mxu3 %v5536_v25 }
  0x2b   :  { %v6897_v27 = vld [vmem:[#allocation5 + $0x35c] sm:$0xf0] }
  0x2c   :  { %v5247_v28 = vld [vmem:[#allocation5 + $0x540] sm:$0xf]  ;;  %v4992_v33 = vor.u32 %v6897_v27, %v4991_v26  ;;  %1960 = vmatpush.bf16.msra.mxu0 %v4736_v29 }
  0x2d   :  { %v6961_v30 = vld [vmem:[#allocation5 + $0x55c] sm:$0xf0] }
  0x2e   :  { %v5503_v31 = vld [vmem:[#allocation5 + $0x740] sm:$0xf]  ;;  %v5248_v34 = vor.u32 %v6961_v30, %v5247_v28  ;;  %1974 = vmatpush.bf16.msra.mxu1 %v4992_v33 }
  0x2f   :  { %v7025_v32 = vld [vmem:[#allocation5 + $0x75c] sm:$0xf0] }
  0x30   :  { %v4703_v35 = vld [vmem:[#allocation5 + $0x100] sm:$0xf]  ;;  %v5504_v38 = vor.u32 %v7025_v32, %v5503_v31  ;;  %1988 = vmatpush.bf16.msra.mxu2 %v5248_v34  ;;  %v6845_v31 = vld [vmem:[#allocation5 + $0x1c4] sm:$0xf] }
  0x31   :  { %v6825_v36 = vld [vmem:[#allocation5 + $0x11c] sm:$0xf0]  ;;  %v4801_v32 = vld [vmem:[#allocation5 + $0x1e0] sm:$0xf0] }
  0x32   :  { %v4959_v37 = vld [vmem:[#allocation5 + $0x300] sm:$0xf]  ;;  %v4704_v44 = vor.u32 %v6825_v36, %v4703_v35  ;;  %2002 = vmatpush.bf16.msra.mxu3 %v5504_v38  ;;  %v6909_v34 = vld [vmem:[#allocation5 + $0x3c4] sm:$0xf] }
  0x33   :  { %v6889_v39 = vld [vmem:[#allocation5 + $0x31c] sm:$0xf0]  ;;  %v5057_v35 = vld [vmem:[#allocation5 + $0x3e0] sm:$0xf0] }
  0x34   :  { %v5215_v40 = vld [vmem:[#allocation5 + $0x500] sm:$0xf]  ;;  %v4960_v45 = vor.u32 %v6889_v39, %v4959_v37  ;;  %1961 = vmatpush.bf16.msra.mxu0 %v4704_v44  ;;  %v6973_v36 = vld [vmem:[#allocation5 + $0x5c4] sm:$0xf] }
  0x35   :  { %v6953_v41 = vld [vmem:[#allocation5 + $0x51c] sm:$0xf0]  ;;  %v5313_v39 = vld [vmem:[#allocation5 + $0x5e0] sm:$0xf0] }
  0x36   :  { %v5471_v42 = vld [vmem:[#allocation5 + $0x700] sm:$0xf]  ;;  %v5216_v46 = vor.u32 %v6953_v41, %v5215_v40  ;;  %1975 = vmatpush.bf16.msra.mxu1 %v4960_v45  ;;  %v96_v40 = vld [vmem:[#allocation2] sm:$0xff]  ;;  %v101_v41 = vld [vmem:[#allocation2 + $0x28] sm:$0xff] }
  0x37   :  { %v7017_v43 = vld [vmem:[#allocation5 + $0x71c] sm:$0xf0] }
  0x38   :  { %v4671_v47 = vld [vmem:[#allocation5 + $0xc0] sm:$0xf]  ;;  %v5472_v50 = vor.u32 %v7017_v43, %v5471_v42  ;;  %1989 = vmatpush.bf16.msra.mxu2 %v5216_v46  ;;  %v4804_v46 = vor.u32 %v6845_v31, %v4801_v32  ;;  %v6813_v31 = vld [vmem:[#allocation5 + $0xc4] sm:$0xf] }
  0x39   :  { %v6817_v48 = vld [vmem:[#allocation5 + $0xdc] sm:$0xf0] }
  0x3a   :  { %v4927_v49 = vld [vmem:[#allocation5 + $0x2c0] sm:$0xf]  ;;  %v4672_v56 = vor.u32 %v6817_v48, %v4671_v47  ;;  %2003 = vmatpush.bf16.msra.mxu3 %v5472_v50  ;;  %v5060_v47 = vor.u32 %v6909_v34, %v5057_v35  ;;  %v6837_v48 = vld [vmem:[#allocation5 + $0x184] sm:$0xf]  ;;  %v5316_v50 = vor.u32 %v6973_v36, %v5313_v39 }
  0x3b   :  { %v6881_v51 = vld [vmem:[#allocation5 + $0x2dc] sm:$0xf0]  ;;  %v6877_v34 = vld [vmem:[#allocation5 + $0x2c4] sm:$0xf] }
  0x3c   :  { %v5183_v52 = vld [vmem:[#allocation5 + $0x4c0] sm:$0xf]  ;;  %v4928_v57 = vor.u32 %v6881_v51, %v4927_v49  ;;  %1962 = vmatpush.bf16.msra.mxu0 %v4672_v56  ;;  %v4769_v49 = vld [vmem:[#allocation5 + $0x1a0] sm:$0xf0] }
  0x3d   :  { %v6945_v53 = vld [vmem:[#allocation5 + $0x4dc] sm:$0xf0]  ;;  %v6901_v51 = vld [vmem:[#allocation5 + $0x384] sm:$0xf] }
  0x3e   :  { %v5439_v54 = vld [vmem:[#allocation5 + $0x6c0] sm:$0xf]  ;;  %v5184_v58 = vor.u32 %v6945_v53, %v5183_v52  ;;  %1976 = vmatpush.bf16.msra.mxu1 %v4928_v57  ;;  %v5025_v52 = vld [vmem:[#allocation5 + $0x3a0] sm:$0xf0]  ;;  %v103_v57 = vld [vmem:[#allocation2 + $0x38] sm:$0xff] }
  0x3f   :  { %v7009_v55 = vld [vmem:[#allocation5 + $0x6dc] sm:$0xf0]  ;;  %v6965_v53 = vld [vmem:[#allocation5 + $0x584] sm:$0xf] }
  0x40   :  { %v4639_v59 = vld [vmem:[#allocation5 + $0x80] sm:$0xf]  ;;  %v5440_v62 = vor.u32 %v7009_v55, %v5439_v54  ;;  %1990 = vmatpush.bf16.msra.mxu2 %v5184_v58  ;;  %v7619_v54 = vpack.c.bf16 %v101_v41, %v96_v40  ;;  %v5281_v55 = vld [vmem:[#allocation5 + $0x5a0] sm:$0xf0] }
  0x41   :  { %v6809_v60 = vld [vmem:[#allocation5 + $0x9c] sm:$0xf0]  ;;  %v4929_v35 = vld [vmem:[#allocation5 + $0x2e0] sm:$0xf0] }
  0x42   :  { %v4895_v61 = vld [vmem:[#allocation5 + $0x280] sm:$0xf]  ;;  %v4640_v4 = vor.u32 %v6809_v60, %v4639_v59  ;;  %2004 = vmatpush.bf16.msra.mxu3 %v5440_v62  ;;  %v104_v62 = vld [vmem:[#allocation2 + $0x40] sm:$0xff]  ;;  %v6941_v36 = vld [vmem:[#allocation5 + $0x4c4] sm:$0xf]  ;;  %v4932_v41 = vor.u32 %v6877_v34, %v4929_v35 }
  0x43   :  { %v6873_v63 = vld [vmem:[#allocation5 + $0x29c] sm:$0xf0]  ;;  %v7077_v34 = vld [vmem:[#allocation5 + $0x904] sm:$0xf] }
  0x44   :  { %v5151_v0 = vld [vmem:[#allocation5 + $0x480] sm:$0xf]  ;;  %v4896_v6 = vor.u32 %v6873_v63, %v4895_v61  ;;  %1963 = vmatpush.bf16.msra.mxu0 %v4640_v4  ;;  %v99_v61 = vld [vmem:[#allocation2 + $0x18] sm:$0xff]  ;;  %v4772_v63 = vor.u32 %v6837_v48, %v4769_v49  ;;  %v6933_v48 = vld [vmem:[#allocation5 + $0x484] sm:$0xf] }
  0x45   :  { %v6937_v1 = vld [vmem:[#allocation5 + $0x49c] sm:$0xf0]  ;;  %v7623_v4 = vpack.c.bf16 %v104_v62, %v99_v61  ;;  %v5153_v49 = vld [vmem:[#allocation5 + $0x4a0] sm:$0xf0] }
  0x46   :  { %v5407_v2 = vld [vmem:[#allocation5 + $0x680] sm:$0xf]  ;;  %v5152_v7 = vor.u32 %v6937_v1, %v5151_v0  ;;  %1977 = vmatpush.bf16.msra.mxu1 %v4896_v6  ;;  %v5028_v0 = vor.u32 %v6901_v51, %v5025_v52  ;;  %v6893_v6 = vld [vmem:[#allocation5 + $0x344] sm:$0xf]  ;;  %v5156_v62 = vor.u32 %v6933_v48, %v5153_v49  ;;  %v4743_v49 = vld [vmem:[#allocation5 + $0x148] sm:$0xf] }
  0x47   :  { %v7001_v3 = vld [vmem:[#allocation5 + $0x69c] sm:$0xf0]  ;;  %v5569_v51 = vld [vmem:[#allocation5 + $0x7e0] sm:$0xf0] }
  0x48   :  { %v4607_v5 = vld [vmem:[#allocation5 + $0x40] sm:$0xf]  ;;  %v5408_v11 = vor.u32 %v7001_v3, %v5407_v2  ;;  %1991 = vmatpush.bf16.msra.mxu2 %v5152_v7  ;;  %v6829_v2 = vld [vmem:[#allocation5 + $0x144] sm:$0xf] }
  0x49   :  { %v6801_v8 = vld [vmem:[#allocation5 + $0x5c] sm:$0xf0]  ;;  %v4737_v3 = vld [vmem:[#allocation5 + $0x160] sm:$0xf0] }
  0x4a   :  { %v4863_v9 = vld [vmem:[#allocation5 + $0x240] sm:$0xf]  ;;  %v4608_v18 = vor.u32 %v6801_v8, %v4607_v5  ;;  %2005 = vmatpush.bf16.msra.mxu3 %v5408_v11  ;;  %v5284_v5 = vor.u32 %v6965_v53, %v5281_v55  ;;  %v4993_v7 = vld [vmem:[#allocation5 + $0x360] sm:$0xf0]  ;;  %v100_v53 = vld [vmem:[#allocation2 + $0x20] sm:$0xff] }
  0x4b   :  { %v6865_v10 = vld [vmem:[#allocation5 + $0x25c] sm:$0xf0]  ;;  %v6957_v8 = vld [vmem:[#allocation5 + $0x544] sm:$0xf]  ;;  %v105_v55 = vld [vmem:[#allocation2 + $0x48] sm:$0xff] }
  0x4c   :  { %v5119_v12 = vld [vmem:[#allocation5 + $0x440] sm:$0xf]  ;;  %v4864_v21 = vor.u32 %v6865_v10, %v4863_v9  ;;  %1964 = vmatpush.bf16.msra.mxu0 %v4608_v18  ;;  %v5249_v9 = vld [vmem:[#allocation5 + $0x560] sm:$0xf0]  ;;  %v97_v10 = vld [vmem:[#allocation2 + $0x8] sm:$0xff] }
  0x4d   :  { %v6929_v13 = vld [vmem:[#allocation5 + $0x45c] sm:$0xf0]  ;;  %v5697_v48 = vld [vmem:[#allocation5 + $0x8e0] sm:$0xf0] }
  0x4e   :  { %v7615_v14 = vld [vmem:[#allocation5 + $0x940] sm:$0xff]  ;;  %v5120_v22 = vor.u32 %v6929_v13, %v5119_v12  ;;  %1978 = vmatpush.bf16.msra.mxu1 %v4864_v21 }
  0x4f   :  { %v5375_v15 = vld [vmem:[#allocation5 + $0x640] sm:$0xf]  ;;  %v1321_v17 = vunpack.c.l.b16 %v7615_v14  ;;  %v4705_v21 = vld [vmem:[#allocation5 + $0x120] sm:$0xf0]  ;;  %v1322_v61 = vunpack.c.h.b16 %v7615_v14 }
  0x50   :  { %v6993_v16 = vld [vmem:[#allocation5 + $0x65c] sm:$0xf0]  ;;  %1992 = vmatpush.bf16.msra.mxu2 %v5120_v22  ;;  %v6885_v22 = vld [vmem:[#allocation5 + $0x304] sm:$0xf] }
  0x51   :  { %v4575_v19 = vld [vmem:[#allocation5] sm:$0xf]  ;;  %v5376_v26 = vor.u32 %v6993_v16, %v5375_v15  ;;  %v1625_v30 = vpack.c.b16 %v1321_v17, %v1321_v17  ;;  %v4740_v15 = vor.u32 %v6829_v2, %v4737_v3  ;;  %v4996_v16 = vor.u32 %v6893_v6, %v4993_v7  ;;  %v6925_v2 = vld [vmem:[#allocation5 + $0x444] sm:$0xf] }
  0x52   :  { %v6793_v20 = vld [vmem:[#allocation5 + $0x1c] sm:$0xf0]  ;;  %v7632_v3 = vpack.c.bf16 %v105_v55, %v100_v53  ;;  %v7029_v6 = vld [vmem:[#allocation5 + $0x784] sm:$0xf] }
  0x53   :  { %v4831_v23 = vld [vmem:[#allocation5 + $0x200] sm:$0xf]  ;;  %v4576_v33 = vor.u32 %v6793_v20, %v4575_v19  ;;  %2006 = vmatpush.bf16.msra.mxu3 %v5376_v26  ;;  %v1935_v45 = vsel %vm1933_vm0, %v1625_v30, 0  ;;  %v6821_v19 = vld [vmem:[#allocation5 + $0x104] sm:$0xf]  ;;  %v5252_v20 = vor.u32 %v6957_v8, %v5249_v9 }
  0x54   :  { %v6857_v24 = vld [vmem:[#allocation5 + $0x21c] sm:$0xf0]  ;;  %v5537_v7 = vld [vmem:[#allocation5 + $0x7a0] sm:$0xf0] }
  0x55   :  { %v5087_v25 = vld [vmem:[#allocation5 + $0x400] sm:$0xf]  ;;  %v4832_v37 = vor.u32 %v6857_v24, %v4831_v23  ;;  %1965 = vmatpush.bf16.msra.mxu0 %v4576_v33  ;;  %v4961_v23 = vld [vmem:[#allocation5 + $0x320] sm:$0xf0] }
  0x56   :  { %v6921_v27 = vld [vmem:[#allocation5 + $0x41c] sm:$0xf0]  ;;  %v6949_v24 = vld [vmem:[#allocation5 + $0x504] sm:$0xf] }
  0x57   :  { %v5343_v28 = vld [vmem:[#allocation5 + $0x600] sm:$0xf]  ;;  %v5088_v38 = vor.u32 %v6921_v27, %v5087_v25  ;;  %1979 = vmatpush.bf16.msra.mxu1 %v4832_v37  ;;  %v5217_v25 = vld [vmem:[#allocation5 + $0x520] sm:$0xf0]  ;;  %v4708_v27 = vor.u32 %v6821_v19, %v4705_v21 }
  0x58   :  { %v6985_v29 = vld [vmem:[#allocation5 + $0x61c] sm:$0xf0]  ;;  %1966 = vmatmul.bf16.vlgmr.msra.gmra.mxu0 %v7619_v54  ;;  %v5220_v32 = vor.u32 %v6949_v24, %v5217_v25  ;;  %v4673_v33 = vld [vmem:[#allocation5 + $0xe0] sm:$0xf0] }
  0x59   :  { %v5344_v42 = vor.u32 %v6985_v29, %v5343_v28  ;;  %v5727_v43 = vld [vmem:[#allocation5 + $0x900] sm:$0xf]  ;;  %1993 = vmatpush.bf16.msra.mxu2 %v5088_v38  ;;  %2016 = vmatpush.bf16.msrb.mxu0 %v1935_v45  ;;  %v4964_v28 = vor.u32 %v6885_v22, %v4961_v23  ;;  %v5185_v37 = vld [vmem:[#allocation5 + $0x4e0] sm:$0xf0]  ;;  %v4676_v40 = vor.u32 %v6813_v31, %v4673_v33  ;;  %v4807_v22 = vld [vmem:[#allocation5 + $0x1c8] sm:$0xf] }
  0x5a   :  { %v7081_v44 = vld [vmem:[#allocation5 + $0x91c] sm:$0xf0]  ;;  %v5188_v45 = vor.u32 %v6941_v36, %v5185_v37  ;;  %v5089_v19 = vld [vmem:[#allocation5 + $0x420] sm:$0xf0]  ;;  %v6850_v23 = vld [vmem:[#allocation5 + $0x1e4] sm:$0xf0] }
  0x5b   :  { %v98_v56 = vld [vmem:[#allocation2 + $0x10] sm:$0xff]  ;;  %2007 = vmatpush.bf16.msra.mxu3 %v5344_v42  ;;  %v5728_v58 = vor.u32 %v7081_v44, %v5727_v43  ;;  %2028 = vmatpush.bf16.msrb.mxu1 %v4804_v46  ;;  %v4808_v31 = vor.u32 %v6850_v23, %v4807_v22  ;;  %v4775_v37 = vld [vmem:[#allocation5 + $0x188] sm:$0xf] }
  0x5c   :  { %v5695_v59 = vld [vmem:[#allocation5 + $0x8c0] sm:$0xf]  ;;  %v7621_v60 = vpack.c.bf16 %v103_v57, %v98_v56  ;;  %v6805_v43 = vld [vmem:[#allocation5 + $0x84] sm:$0xf] }
  0x5d   :  { %2042 = vmatpush.bf16.msrb.mxu2 %v5060_v47  ;;  %v7073_v1 = vld [vmem:[#allocation5 + $0x8dc] sm:$0xf0]  ;;  %2017 = vmatpush.bf16.msrb.mxu0 %v5728_v58  ;;  %v4641_v44 = vld [vmem:[#allocation5 + $0xa0] sm:$0xf0] }
  0x5e   :  { %1994 = vmatmul.bf16.vlgmr.msra.gmra.mxu2 %v7621_v60  ;;  %2008 = vmatmul.bf16.vlgmr.msra.gmra.mxu3 %v7623_v4  ;;  %v102_v11 = vld [vmem:[#allocation2 + $0x30] sm:$0xff]  ;;  %v5696_v12 = vor.u32 %v7073_v1, %v5695_v59  ;;  %v4644_v56 = vor.u32 %v6805_v43, %v4641_v44 }
  0x5f   :  { %2056 = vmatpush.bf16.msrb.mxu3 %v5316_v50  ;;  %v7628_v13 = vpack.c.bf16 %v102_v11, %v97_v10  ;;  %2029 = vmatpush.bf16.msrb.mxu1 %v4772_v63  ;;  %v5663_v17 = vld [vmem:[#allocation5 + $0x880] sm:$0xf]  ;;  %v6869_v46 = vld [vmem:[#allocation5 + $0x284] sm:$0xf] }
  0x60   :  { %v7065_v18 = vld [vmem:[#allocation5 + $0x89c] sm:$0xf0]  ;;  %v4897_v47 = vld [vmem:[#allocation5 + $0x2a0] sm:$0xf0] }
  0x61   :  { %2043 = vmatpush.bf16.msrb.mxu2 %v5028_v0  ;;  %1980 = vmatmul.bf16.vlgmr.msra.gmra.mxu1 %v7628_v13  ;;  %v5664_v26 = vor.u32 %v7065_v18, %v5663_v17  ;;  %v5631_v29 = vld [vmem:[#allocation5 + $0x840] sm:$0xf]  ;;  %v7037_v50 = vld [vmem:[#allocation5 + $0x7c4] sm:$0xf]  ;;  %v4900_v57 = vor.u32 %v6869_v46, %v4897_v47  ;;  %v1626_v18 = vpack.c.b16 %v1322_v61, %v1322_v61 }
  0x62   :  { %2018 = vmatpush.bf16.msrb.mxu0 %v5696_v12  ;;  %v7057_v30 = vld [vmem:[#allocation5 + $0x85c] sm:$0xf0]  ;;  %v6797_v58 = vld [vmem:[#allocation5 + $0x44] sm:$0xf]  ;;  %v5572_v63 = vor.u32 %v7037_v50, %v5569_v51  ;;  %v5540_v12 = vor.u32 %v7029_v6, %v5537_v7  ;;  %v6834_v50 = vld [vmem:[#allocation5 + $0x164] sm:$0xf0] }
  0x63   :  { %2057 = vmatpush.bf16.msrb.mxu3 %v5284_v5  ;;  %2030 = vmatpush.bf16.msrb.mxu1 %v4740_v15  ;;  %v5632_v38 = vor.u32 %v7057_v30, %v5631_v29  ;;  %v5599_v39 = vld [vmem:[#allocation5 + $0x800] sm:$0xf]  ;;  %v4609_v59 = vld [vmem:[#allocation5 + $0x60] sm:$0xf0]  ;;  %v1938_v30 = vsel %vm1933_vm0, %v1626_v18, 0 }
  0x64   :  { %v7049_v42 = vld [vmem:[#allocation5 + $0x81c] sm:$0xf0]  ;;  %v6861_v0 = vld [vmem:[#allocation5 + $0x244] sm:$0xf]  ;;  %v4612_v8 = vor.u32 %v6797_v58, %v4609_v59  ;;  %v4999_v51 = vld [vmem:[#allocation5 + $0x348] sm:$0xf] }
  0x65   :  { %2044 = vmatpush.bf16.msrb.mxu2 %v4996_v16  ;;  %v5600_v52 = vor.u32 %v7049_v42, %v5599_v39  ;;  %v4865_v1 = vld [vmem:[#allocation5 + $0x260] sm:$0xf0]  ;;  %v5031_v39 = vld [vmem:[#allocation5 + $0x388] sm:$0xf] }
  0x66   :  { %2019 = vmatpush.bf16.msrb.mxu0 %v5664_v26  ;;  %v5121_v5 = vld [vmem:[#allocation5 + $0x460] sm:$0xf0]  ;;  %v4868_v9 = vor.u32 %v6861_v0, %v4865_v1  ;;  %v5063_v26 = vld [vmem:[#allocation5 + $0x3c8] sm:$0xf] }
  0x67   :  { %2058 = vmatpush.bf16.msrb.mxu3 %v5252_v20  ;;  %2031 = vmatpush.bf16.msrb.mxu1 %v4708_v27  ;;  %v6789_v10 = vld [vmem:[#allocation5 + $0x4] sm:$0xf]  ;;  %v5124_v14 = vor.u32 %v6925_v2, %v5121_v5  ;;  %v6914_v27 = vld [vmem:[#allocation5 + $0x3e4] sm:$0xf0] }
  0x68   :  { %v4577_v11 = vld [vmem:[#allocation5 + $0x20] sm:$0xf0]  ;;  %v5064_v35 = vor.u32 %v6914_v27, %v5063_v26  ;;  %v6826_v0 = vld [vmem:[#allocation5 + $0x124] sm:$0xf0] }
  0x69   :  { %2045 = vmatpush.bf16.msrb.mxu2 %v4964_v28  ;;  %v6853_v15 = vld [vmem:[#allocation5 + $0x204] sm:$0xf]  ;;  %v4580_v24 = vor.u32 %v6789_v10, %v4577_v11  ;;  %v4967_v1 = vld [vmem:[#allocation5 + $0x308] sm:$0xf] }
  0x6a   :  { %2020 = vmatpush.bf16.msrb.mxu0 %v5632_v38  ;;  %v4833_v16 = vld [vmem:[#allocation5 + $0x220] sm:$0xf0]  ;;  %v6842_v38 = vld [vmem:[#allocation5 + $0x1a4] sm:$0xf0] }
  0x6b   :  { %2059 = vmatpush.bf16.msrb.mxu3 %v5220_v32  ;;  %2032 = vmatpush.bf16.msrb.mxu1 %v4676_v40  ;;  %v6917_v17 = vld [vmem:[#allocation5 + $0x404] sm:$0xf]  ;;  %v4836_v25 = vor.u32 %v6853_v15, %v4833_v16  ;;  %v6906_v40 = vld [vmem:[#allocation5 + $0x3a4] sm:$0xf0]  ;;  %v4776_v43 = vor.u32 %v6842_v38, %v4775_v37 }
  0x6c   :  { %v7021_v20 = vld [vmem:[#allocation5 + $0x744] sm:$0xf]  ;;  %v5092_v28 = vor.u32 %v6917_v17, %v5089_v19  ;;  %v5032_v47 = vor.u32 %v6906_v40, %v5031_v39  ;;  %v6890_v2 = vld [vmem:[#allocation5 + $0x324] sm:$0xf0] }
  0x6d   :  { %2046 = vmatpush.bf16.msrb.mxu2 %v4932_v41  ;;  %v5505_v21 = vld [vmem:[#allocation5 + $0x760] sm:$0xf0]  ;;  %v4968_v11 = vor.u32 %v6890_v2, %v4967_v1  ;;  %v6818_v15 = vld [vmem:[#allocation5 + $0xe4] sm:$0xf0]  ;;  %v6846_v2 = vld [vmem:[#allocation5 + $0x1cc] sm:$0xf] }
  0x6e   :  { %2021 = vmatpush.bf16.msrb.mxu0 %v5600_v52  ;;  %v5508_v29 = vor.u32 %v7021_v20, %v5505_v21  ;;  %v7013_v32 = vld [vmem:[#allocation5 + $0x704] sm:$0xf]  ;;  %v6898_v52 = vld [vmem:[#allocation5 + $0x364] sm:$0xf0] }
  0x6f   :  { %2060 = vmatpush.bf16.msrb.mxu3 %v5188_v45  ;;  %2033 = vmatpush.bf16.msrb.mxu1 %v4644_v56  ;;  %v5473_v33 = vld [vmem:[#allocation5 + $0x720] sm:$0xf0]  ;;  %v4744_v56 = vor.u32 %v6834_v50, %v4743_v49  ;;  %v5000_v61 = vor.u32 %v6898_v52, %v4999_v51  ;;  %v4935_v16 = vld [vmem:[#allocation5 + $0x2c8] sm:$0xf] }
  0x70   :  { %v5729_v36 = vld [vmem:[#allocation5 + $0x920] sm:$0xf0]  ;;  %v5476_v41 = vor.u32 %v7013_v32, %v5473_v33  ;;  %v6882_v17 = vld [vmem:[#allocation5 + $0x2e4] sm:$0xf0] }
  0x71   :  { %2047 = vmatpush.bf16.msrb.mxu2 %v4900_v57  ;;  %5757 = vmatmul.msk.bf16.vlgmr.msrb.gmra.mxu0 %vm1929_vm1, %v7632_v3  ;;  %v5732_v42 = vor.u32 %v7077_v34, %v5729_v36  ;;  %v7005_v44 = vld [vmem:[#allocation5 + $0x6c4] sm:$0xf]  ;;  %v4647_v26 = vld [vmem:[#allocation5 + $0x88] sm:$0xf] }
  0x72   :  { %2070 = vmatpush.bf16.msra.mxu0 %v5572_v63  ;;  %v5441_v45 = vld [vmem:[#allocation5 + $0x6e0] sm:$0xf0]  ;;  %v4711_v63 = vld [vmem:[#allocation5 + $0x108] sm:$0xf] }
  0x73   :  { %2061 = vmatpush.bf16.msrb.mxu3 %v5156_v62  ;;  %2034 = vmatpush.bf16.msrb.mxu1 %v4612_v8  ;;  %v7069_v46 = vld [vmem:[#allocation5 + $0x8c4] sm:$0xf]  ;;  %v5444_v53 = vor.u32 %v7005_v44, %v5441_v45  ;;  %v4712_v7 = vor.u32 %v6826_v0, %v4711_v63  ;;  %v6810_v27 = vld [vmem:[#allocation5 + $0xa4] sm:$0xf0] }
  0x74   :  { %v5700_v55 = vor.u32 %v7069_v46, %v5697_v48  ;;  %v6997_v57 = vld [vmem:[#allocation5 + $0x684] sm:$0xf]  ;;  %v5575_v33 = vld [vmem:[#allocation5 + $0x7c8] sm:$0xf]  ;;  %v4648_v36 = vor.u32 %v6810_v27, %v4647_v26 }
  0x75   :  { %2048 = vmatpush.bf16.msrb.mxu2 %v4868_v9  ;;  %v5409_v58 = vld [vmem:[#allocation5 + $0x6a0] sm:$0xf0]  ;;  %v7042_v34 = vld [vmem:[#allocation5 + $0x7e4] sm:$0xf0] }
  0x76   :  { %2071 = vmatpush.bf16.msra.mxu0 %v5540_v12  ;;  %v7061_v59 = vld [vmem:[#allocation5 + $0x884] sm:$0xf]  ;;  %v5412_v5 = vor.u32 %v6997_v57, %v5409_v58  ;;  %v4679_v12 = vld [vmem:[#allocation5 + $0xc8] sm:$0xf] }
  0x77   :  { %2062 = vmatpush.bf16.msrb.mxu3 %v5124_v14  ;;  %2035 = vmatpush.bf16.msrb.mxu1 %v4580_v24  ;;  %v5665_v62 = vld [vmem:[#allocation5 + $0x8a0] sm:$0xf0]  ;;  %v4680_v21 = vor.u32 %v6818_v15, %v4679_v12  ;;  %v7640_v37 = vld [vmem:[#allocation5 + $0x948] sm:$0xff] }
  0x78   :  { %v5668_v6 = vor.u32 %v7061_v59, %v5665_v62  ;;  %v6989_v8 = vld [vmem:[#allocation5 + $0x644] sm:$0xf]  ;;  %v4615_v40 = vld [vmem:[#allocation5 + $0x48] sm:$0xf]  ;;  %v1323_v49 = vunpack.c.l.b16 %v7640_v37 }
  0x79   :  { %2049 = vmatpush.bf16.msrb.mxu2 %v4836_v25  ;;  %v5377_v9 = vld [vmem:[#allocation5 + $0x660] sm:$0xf0]  ;;  %v4936_v25 = vor.u32 %v6882_v17, %v4935_v16  ;;  %v6866_v44 = vld [vmem:[#allocation5 + $0x264] sm:$0xf0] }
  0x7a   :  { %2072 = vmatpush.bf16.msra.mxu0 %v5508_v29  ;;  %2036 = vmatmul.bf16.vlgmr.msrb.gmra.mxu1 %v7619_v54  ;;  %v7053_v10 = vld [vmem:[#allocation5 + $0x844] sm:$0xf]  ;;  %v5380_v18 = vor.u32 %v6989_v8, %v5377_v9  ;;  %v6874_v29 = vld [vmem:[#allocation5 + $0x2a4] sm:$0xf0]  ;;  %v1627_v0 = vpack.c.b16 %v1323_v49, %v1323_v49 }
  0x7b   :  { %2063 = vmatpush.bf16.msrb.mxu3 %v5092_v28  ;;  %2086 = vmatpush.bf16.msra.mxu1 %v1938_v30  ;;  %v5633_v14 = vld [vmem:[#allocation5 + $0x860] sm:$0xf0]  ;;  %v4903_v28 = vld [vmem:[#allocation5 + $0x288] sm:$0xf] }
  0x7c   :  { %2050 = vmatmul.bf16.vlgmr.msrb.gmra.mxu2 %v7628_v13  ;;  %v6981_v19 = vld [vmem:[#allocation5 + $0x604] sm:$0xf]  ;;  %v5636_v20 = vor.u32 %v7053_v10, %v5633_v14  ;;  %v5319_v30 = vld [vmem:[#allocation5 + $0x5c8] sm:$0xf]  ;;  %v4904_v38 = vor.u32 %v6874_v29, %v4903_v28  ;;  %v1941_v12 = vsel %vm1933_vm0, %v1627_v0, 0 }
  0x7d   :  { %2098 = vmatpush.bf16.msra.mxu2 %v4808_v31  ;;  %v5345_v22 = vld [vmem:[#allocation5 + $0x620] sm:$0xf0]  ;;  %v6978_v31 = vld [vmem:[#allocation5 + $0x5e4] sm:$0xf0] }
  0x7e   :  { %2064 = vmatmul.bf16.vlgmr.msrb.gmra.mxu3 %v7621_v60  ;;  %2073 = vmatpush.bf16.msra.mxu0 %v5476_v41  ;;  %v7045_v23 = vld [vmem:[#allocation5 + $0x804] sm:$0xf]  ;;  %v5348_v32 = vor.u32 %v6981_v19, %v5345_v22  ;;  %v5320_v39 = vor.u32 %v6978_v31, %v5319_v30  ;;  %v6802_v41 = vld [vmem:[#allocation5 + $0x64] sm:$0xf0]  ;;  %v4777_v19 = vld [vmem:[#allocation5 + $0x1a8] sm:$0xf0] }
  0x7f   :  { %2112 = vmatpush.bf16.msra.mxu3 %v5064_v35  ;;  %2087 = vmatpush.bf16.msra.mxu1 %v5732_v42  ;;  %v5601_v24 = vld [vmem:[#allocation5 + $0x820] sm:$0xf0]  ;;  %v4871_v42 = vld [vmem:[#allocation5 + $0x248] sm:$0xf]  ;;  %v4616_v50 = vor.u32 %v6802_v41, %v4615_v40  ;;  %v6830_v30 = vld [vmem:[#allocation5 + $0x14c] sm:$0xf] }
  0x80   :  { %v5604_v35 = vor.u32 %v7045_v23, %v5601_v24  ;;  %v5287_v45 = vld [vmem:[#allocation5 + $0x588] sm:$0xf]  ;;  %v4872_v51 = vor.u32 %v6866_v44, %v4871_v42  ;;  %v4745_v31 = vld [vmem:[#allocation5 + $0x168] sm:$0xf0] }
  0x81   :  { %2099 = vmatpush.bf16.msra.mxu2 %v4776_v43  ;;  %v5576_v43 = vor.u32 %v7042_v34, %v5575_v33  ;;  %v6970_v46 = vld [vmem:[#allocation5 + $0x5a4] sm:$0xf0]  ;;  %v4713_v44 = vld [vmem:[#allocation5 + $0x128] sm:$0xf0] }
  0x82   :  { %2074 = vmatpush.bf16.msra.mxu0 %v5444_v53  ;;  %v7034_v48 = vld [vmem:[#allocation5 + $0x7a4] sm:$0xf0]  ;;  %v5288_v52 = vor.u32 %v6970_v46, %v5287_v45 }
  0x83   :  { %2113 = vmatpush.bf16.msra.mxu3 %v5032_v47  ;;  %2088 = vmatpush.bf16.msra.mxu1 %v5700_v55  ;;  %v5543_v47 = vld [vmem:[#allocation5 + $0x788] sm:$0xf] }
  0x84   :  { %v4583_v53 = vld [vmem:[#allocation5 + $0x8] sm:$0xf]  ;;  %v5544_v57 = vor.u32 %v7034_v48, %v5543_v47 }
  0x85   :  { %2100 = vmatpush.bf16.msra.mxu2 %v4744_v56  ;;  %v6794_v55 = vld [vmem:[#allocation5 + $0x24] sm:$0xf0] }
  0x86   :  { %2075 = vmatpush.bf16.msra.mxu0 %v5412_v5  ;;  %v4839_v56 = vld [vmem:[#allocation5 + $0x208] sm:$0xf]  ;;  %v4584_v1 = vor.u32 %v6794_v55, %v4583_v53  ;;  %v4809_v5 = vld [vmem:[#allocation5 + $0x1e8] sm:$0xf0] }
  0x87   :  { %2114 = vmatpush.bf16.msra.mxu3 %v5000_v61  ;;  %2089 = vmatpush.bf16.msra.mxu1 %v5668_v6  ;;  %v6858_v58 = vld [vmem:[#allocation5 + $0x224] sm:$0xf0]  ;;  %v4812_v15 = vor.u32 %v6846_v2, %v4809_v5 }
  0x88   :  { %v5255_v59 = vld [vmem:[#allocation5 + $0x548] sm:$0xf]  ;;  %v4840_v6 = vor.u32 %v6858_v58, %v4839_v56  ;;  %v6814_v56 = vld [vmem:[#allocation5 + $0xcc] sm:$0xf] }
  0x89   :  { %2101 = vmatpush.bf16.msra.mxu2 %v4712_v7  ;;  %v6962_v61 = vld [vmem:[#allocation5 + $0x564] sm:$0xf0] }
  0x8a   :  { %2076 = vmatpush.bf16.msra.mxu0 %v5380_v18  ;;  %v5511_v62 = vld [vmem:[#allocation5 + $0x748] sm:$0xf]  ;;  %v5256_v7 = vor.u32 %v6962_v61, %v5255_v59  ;;  %v6838_v18 = vld [vmem:[#allocation5 + $0x18c] sm:$0xf] }
  0x8b   :  { %2115 = vmatpush.bf16.msra.mxu3 %v4968_v11  ;;  %2090 = vmatpush.bf16.msra.mxu1 %v5636_v20  ;;  %v7026_v63 = vld [vmem:[#allocation5 + $0x764] sm:$0xf0]  ;;  %v4780_v26 = vor.u32 %v6838_v18, %v4777_v19 }
  0x8c   :  { %v5223_v8 = vld [vmem:[#allocation5 + $0x508] sm:$0xf]  ;;  %v5512_v9 = vor.u32 %v7026_v63, %v5511_v62 }
  0x8d   :  { %2102 = vmatpush.bf16.msra.mxu2 %v4680_v21  ;;  %v6954_v10 = vld [vmem:[#allocation5 + $0x524] sm:$0xf0] }
  0x8e   :  { %2077 = vmatpush.bf16.msra.mxu0 %v5348_v32  ;;  %v5479_v11 = vld [vmem:[#allocation5 + $0x708] sm:$0xf]  ;;  %v5224_v20 = vor.u32 %v6954_v10, %v5223_v8  ;;  %v4649_v8 = vld [vmem:[#allocation5 + $0xa8] sm:$0xf0] }
  0x8f   :  { %2116 = vmatpush.bf16.msra.mxu3 %v4936_v25  ;;  %2091 = vmatpush.bf16.msra.mxu1 %v5604_v35  ;;  %v7018_v14 = vld [vmem:[#allocation5 + $0x724] sm:$0xf0]  ;;  %v5065_v10 = vld [vmem:[#allocation5 + $0x3e8] sm:$0xf0] }
  0x90   :  { %v5735_v16 = vld [vmem:[#allocation5 + $0x908] sm:$0xf]  ;;  %v5480_v21 = vor.u32 %v7018_v14, %v5479_v11  ;;  %v6974_v11 = vld [vmem:[#allocation5 + $0x5cc] sm:$0xf] }
  0x91   :  { %2103 = vmatpush.bf16.msra.mxu2 %v4648_v36  ;;  %2078 = vmatmul.bf16.vlgmr.msra.gmra.mxu0 %v7623_v4  ;;  %v7082_v17 = vld [vmem:[#allocation5 + $0x924] sm:$0xf0] }
  0x92   :  { %2126 = vmatpush.bf16.msrb.mxu0 %v5320_v39  ;;  %5758 = vmatmul.msk.bf16.vlgmr.msra.gmra.mxu1 %vm1929_vm1, %v7632_v3  ;;  %v5736_v22 = vor.u32 %v7082_v17, %v5735_v16  ;;  %v5191_v23 = vld [vmem:[#allocation5 + $0x4c8] sm:$0xf]  ;;  %v4748_v39 = vor.u32 %v6830_v30, %v4745_v31  ;;  %v5577_v16 = vld [vmem:[#allocation5 + $0x7e8] sm:$0xf0]  ;;  %v1324_v31 = vunpack.c.h.b16 %v7640_v37 }
  0x93   :  { %2117 = vmatpush.bf16.msra.mxu3 %v4904_v38  ;;  %2140 = vmatpush.bf16.msrb.mxu1 %v5576_v43  ;;  %v6946_v24 = vld [vmem:[#allocation5 + $0x4e4] sm:$0xf0]  ;;  %v6822_v43 = vld [vmem:[#allocation5 + $0x10c] sm:$0xf] }
  0x94   :  { %v5447_v25 = vld [vmem:[#allocation5 + $0x6c8] sm:$0xf]  ;;  %v5192_v32 = vor.u32 %v6946_v24, %v5191_v23  ;;  %v5545_v30 = vld [vmem:[#allocation5 + $0x7a8] sm:$0xf0] }
  0x95   :  { %2104 = vmatpush.bf16.msra.mxu2 %v4616_v50  ;;  %v7010_v27 = vld [vmem:[#allocation5 + $0x6e4] sm:$0xf0]  ;;  %v7022_v37 = vld [vmem:[#allocation5 + $0x74c] sm:$0xf] }
  0x96   :  { %2127 = vmatpush.bf16.msrb.mxu0 %v5288_v52  ;;  %v5703_v28 = vld [vmem:[#allocation5 + $0x8c8] sm:$0xf]  ;;  %v5448_v33 = vor.u32 %v7010_v27, %v5447_v25  ;;  %v6902_v25 = vld [vmem:[#allocation5 + $0x38c] sm:$0xf] }
  0x97   :  { %2118 = vmatpush.bf16.msra.mxu3 %v4872_v51  ;;  %2141 = vmatpush.bf16.msrb.mxu1 %v5544_v57  ;;  %v7074_v29 = vld [vmem:[#allocation5 + $0x8e4] sm:$0xf0]  ;;  %v4716_v51 = vor.u32 %v6822_v43, %v4713_v44  ;;  %v4681_v57 = vld [vmem:[#allocation5 + $0xe8] sm:$0xf0]  ;;  %v1628_v44 = vpack.c.b16 %v1324_v31, %v1324_v31 }
  0x98   :  { %v5704_v34 = vor.u32 %v7074_v29, %v5703_v28  ;;  %v5159_v35 = vld [vmem:[#allocation5 + $0x488] sm:$0xf]  ;;  %v4684_v5 = vor.u32 %v6814_v56, %v4681_v57  ;;  %v6966_v27 = vld [vmem:[#allocation5 + $0x58c] sm:$0xf] }
  0x99   :  { %2105 = vmatpush.bf16.msra.mxu2 %v4584_v1  ;;  %v6938_v36 = vld [vmem:[#allocation5 + $0x4a4] sm:$0xf0]  ;;  %v5289_v28 = vld [vmem:[#allocation5 + $0x5a8] sm:$0xf0]  ;;  %v1944_v56 = vsel %vm1933_vm0, %v1628_v44, 0 }
  0x9a   :  { %2128 = vmatpush.bf16.msrb.mxu0 %v5256_v7  ;;  %v5415_v38 = vld [vmem:[#allocation5 + $0x688] sm:$0xf]  ;;  %v5160_v45 = vor.u32 %v6938_v36, %v5159_v35  ;;  %v6806_v7 = vld [vmem:[#allocation5 + $0x8c] sm:$0xf]  ;;  %v5292_v36 = vor.u32 %v6966_v27, %v5289_v28 }
  0x9b   :  { %2119 = vmatpush.bf16.msra.mxu3 %v4840_v6  ;;  %2142 = vmatpush.bf16.msrb.mxu1 %v5512_v9  ;;  %v7002_v40 = vld [vmem:[#allocation5 + $0x6a4] sm:$0xf0]  ;;  %v6910_v9 = vld [vmem:[#allocation5 + $0x3cc] sm:$0xf]  ;;  %v4652_v19 = vor.u32 %v6806_v7, %v4649_v8 }
  0x9c   :  { %2106 = vmatmul.bf16.vlgmr.msra.gmra.mxu2 %v7619_v54  ;;  %v5671_v41 = vld [vmem:[#allocation5 + $0x888] sm:$0xf]  ;;  %v5416_v46 = vor.u32 %v7002_v40, %v5415_v38  ;;  %v7030_v29 = vld [vmem:[#allocation5 + $0x78c] sm:$0xf] }
  0x9d   :  { %2156 = vmatpush.bf16.msrb.mxu2 %v1941_v12  ;;  %v7066_v42 = vld [vmem:[#allocation5 + $0x8a4] sm:$0xf0]  ;;  %v5321_v12 = vld [vmem:[#allocation5 + $0x5e8] sm:$0xf0]  ;;  %v5548_v38 = vor.u32 %v7030_v29, %v5545_v30 }
  0x9e   :  { %2120 = vmatmul.bf16.vlgmr.msra.gmra.mxu3 %v7628_v13  ;;  %2129 = vmatpush.bf16.msrb.mxu0 %v5224_v20  ;;  %v5672_v47 = vor.u32 %v7066_v42, %v5671_v41  ;;  %v5127_v48 = vld [vmem:[#allocation5 + $0x448] sm:$0xf]  ;;  %v5068_v20 = vor.u32 %v6910_v9, %v5065_v10  ;;  %v5324_v23 = vor.u32 %v6974_v11, %v5321_v12  ;;  %v4585_v35 = vld [vmem:[#allocation5 + $0x28] sm:$0xf0] }
  0x9f   :  { %2168 = vmatpush.bf16.msrb.mxu3 %v4812_v15  ;;  %2143 = vmatpush.bf16.msrb.mxu1 %v5480_v21  ;;  %v6930_v49 = vld [vmem:[#allocation5 + $0x464] sm:$0xf0]  ;;  %v7038_v15 = vld [vmem:[#allocation5 + $0x7cc] sm:$0xf] }
  0xa0   :  { %v5383_v50 = vld [vmem:[#allocation5 + $0x648] sm:$0xf]  ;;  %v5128_v58 = vor.u32 %v6930_v49, %v5127_v48  ;;  %v6798_v21 = vld [vmem:[#allocation5 + $0x4c] sm:$0xf]  ;;  %v5580_v24 = vor.u32 %v7038_v15, %v5577_v16 }
  0xa1   :  { %2157 = vmatpush.bf16.msrb.mxu2 %v5736_v22  ;;  %v6994_v52 = vld [vmem:[#allocation5 + $0x664] sm:$0xf0]  ;;  %v4617_v22 = vld [vmem:[#allocation5 + $0x68] sm:$0xf0] }
  0xa2   :  { %2130 = vmatpush.bf16.msrb.mxu0 %v5192_v32  ;;  %v5639_v53 = vld [vmem:[#allocation5 + $0x848] sm:$0xf]  ;;  %v5384_v62 = vor.u32 %v6994_v52, %v5383_v50  ;;  %v4620_v32 = vor.u32 %v6798_v21, %v4617_v22  ;;  %v5001_v40 = vld [vmem:[#allocation5 + $0x368] sm:$0xf0] }
  0xa3   :  { %2169 = vmatpush.bf16.msrb.mxu3 %v4780_v26  ;;  %2144 = vmatpush.bf16.msrb.mxu1 %v5448_v33  ;;  %v7058_v55 = vld [vmem:[#allocation5 + $0x864] sm:$0xf0]  ;;  %v5033_v26 = vld [vmem:[#allocation5 + $0x3a8] sm:$0xf0] }
  0xa4   :  { %v5095_v59 = vld [vmem:[#allocation5 + $0x408] sm:$0xf]  ;;  %v5640_v63 = vor.u32 %v7058_v55, %v5639_v53  ;;  %v5036_v33 = vor.u32 %v6902_v25, %v5033_v26  ;;  %v6958_v41 = vld [vmem:[#allocation5 + $0x54c] sm:$0xf] }
  0xa5   :  { %2158 = vmatpush.bf16.msrb.mxu2 %v5704_v34  ;;  %v6922_v61 = vld [vmem:[#allocation5 + $0x424] sm:$0xf0]  ;;  %v6790_v34 = vld [vmem:[#allocation5 + $0xc] sm:$0xf] }
  0xa6   :  { %2131 = vmatpush.bf16.msrb.mxu0 %v5160_v45  ;;  %v5351_v0 = vld [vmem:[#allocation5 + $0x608] sm:$0xf]  ;;  %v5096_v14 = vor.u32 %v6922_v61, %v5095_v59  ;;  %v5257_v42 = vld [vmem:[#allocation5 + $0x568] sm:$0xf0]  ;;  %v4588_v45 = vor.u32 %v6790_v34, %v4585_v35 }
  0xa7   :  { %2170 = vmatpush.bf16.msrb.mxu3 %v4748_v39  ;;  %2145 = vmatpush.bf16.msrb.mxu1 %v5416_v46  ;;  %v6986_v1 = vld [vmem:[#allocation5 + $0x624] sm:$0xf0]  ;;  %v6894_v39 = vld [vmem:[#allocation5 + $0x34c] sm:$0xf] }
  0xa8   :  { %v5607_v2 = vld [vmem:[#allocation5 + $0x808] sm:$0xf]  ;;  %v5352_v17 = vor.u32 %v6986_v1, %v5351_v0  ;;  %v5513_v43 = vld [vmem:[#allocation5 + $0x768] sm:$0xf0]  ;;  %v5004_v46 = vor.u32 %v6894_v39, %v5001_v40 }
  0xa9   :  { %2159 = vmatpush.bf16.msrb.mxu2 %v5672_v47  ;;  %v7050_v6 = vld [vmem:[#allocation5 + $0x824] sm:$0xf0]  ;;  %v5260_v47 = vor.u32 %v6958_v41, %v5257_v42  ;;  %v5516_v48 = vor.u32 %v7022_v37, %v5513_v43  ;;  %v6886_v49 = vld [vmem:[#allocation5 + $0x30c] sm:$0xf] }
  0xaa   :  { %2132 = vmatpush.bf16.msrb.mxu0 %v5128_v58  ;;  %v5608_v18 = vor.u32 %v7050_v6, %v5607_v2  ;;  %v4969_v50 = vld [vmem:[#allocation5 + $0x328] sm:$0xf0] }
  0xab   :  { %2171 = vmatpush.bf16.msrb.mxu3 %v4716_v51  ;;  %2146 = vmatpush.bf16.msrb.mxu1 %v5384_v62  ;;  %v6950_v51 = vld [vmem:[#allocation5 + $0x50c] sm:$0xf]  ;;  %v4972_v59 = vor.u32 %v6886_v49, %v4969_v50  ;;  %v5071_v49 = vld [vmem:[#allocation5 + $0x3d0] sm:$0xf] }
  0xac   :  { %v5225_v52 = vld [vmem:[#allocation5 + $0x528] sm:$0xf0] }
  0xad   :  { %2160 = vmatpush.bf16.msrb.mxu2 %v5640_v63  ;;  %v7014_v53 = vld [vmem:[#allocation5 + $0x70c] sm:$0xf]  ;;  %v5228_v61 = vor.u32 %v6950_v51, %v5225_v52  ;;  %v6915_v51 = vld [vmem:[#allocation5 + $0x3ec] sm:$0xf0] }
  0xae   :  { %2133 = vmatpush.bf16.msrb.mxu0 %v5096_v14  ;;  %v5481_v55 = vld [vmem:[#allocation5 + $0x728] sm:$0xf0]  ;;  %v5327_v52 = vld [vmem:[#allocation5 + $0x5d0] sm:$0xf] }
  0xaf   :  { %2172 = vmatpush.bf16.msrb.mxu3 %v4684_v5  ;;  %2147 = vmatpush.bf16.msrb.mxu1 %v5352_v17  ;;  %v7078_v57 = vld [vmem:[#allocation5 + $0x90c] sm:$0xf]  ;;  %v5484_v62 = vor.u32 %v7014_v53, %v5481_v55  ;;  %v6979_v53 = vld [vmem:[#allocation5 + $0x5ec] sm:$0xf0] }
  0xb0   :  { %v5737_v58 = vld [vmem:[#allocation5 + $0x928] sm:$0xf0] }
  0xb1   :  { %2161 = vmatpush.bf16.msrb.mxu2 %v5608_v18  ;;  %2134 = vmatmul.bf16.vlgmr.msrb.gmra.mxu0 %v7621_v60  ;;  %v6878_v63 = vld [vmem:[#allocation5 + $0x2cc] sm:$0xf]  ;;  %v5740_v2 = vor.u32 %v7078_v57, %v5737_v58  ;;  %v5583_v57 = vld [vmem:[#allocation5 + $0x7d0] sm:$0xf] }
  0xb2   :  { %2182 = vmatpush.bf16.msra.mxu0 %v5068_v20  ;;  %2148 = vmatmul.bf16.vlgmr.msrb.gmra.mxu1 %v7623_v4  ;;  %v4937_v0 = vld [vmem:[#allocation5 + $0x2e8] sm:$0xf0]  ;;  %v7043_v58 = vld [vmem:[#allocation5 + $0x7ec] sm:$0xf0] }
  0xb3   :  { %2173 = vmatpush.bf16.msrb.mxu3 %v4652_v19  ;;  %2196 = vmatpush.bf16.msra.mxu1 %v5324_v23  ;;  %v6942_v1 = vld [vmem:[#allocation5 + $0x4cc] sm:$0xf]  ;;  %v4940_v10 = vor.u32 %v6878_v63, %v4937_v0  ;;  %v5328_v63 = vor.u32 %v6979_v53, %v5327_v52  ;;  %v4783_v0 = vld [vmem:[#allocation5 + $0x190] sm:$0xf] }
  0xb4   :  { %5759 = vmatmul.msk.bf16.vlgmr.msrb.gmra.mxu2 %vm1929_vm1, %v7632_v3  ;;  %v5193_v5 = vld [vmem:[#allocation5 + $0x4e8] sm:$0xf0]  ;;  %v4655_v53 = vld [vmem:[#allocation5 + $0x90] sm:$0xf] }
  0xb5   :  { %2210 = vmatpush.bf16.msra.mxu2 %v5580_v24  ;;  %v7006_v6 = vld [vmem:[#allocation5 + $0x6cc] sm:$0xf]  ;;  %v5196_v11 = vor.u32 %v6942_v1, %v5193_v5  ;;  %v6843_v1 = vld [vmem:[#allocation5 + $0x1ac] sm:$0xf0]  ;;  %v5584_v5 = vor.u32 %v7043_v58, %v5583_v57 }
  0xb6   :  { %2183 = vmatpush.bf16.msra.mxu0 %v5036_v33  ;;  %v5449_v7 = vld [vmem:[#allocation5 + $0x6e8] sm:$0xf0]  ;;  %v6875_v58 = vld [vmem:[#allocation5 + $0x2ac] sm:$0xf0] }
  0xb7   :  { %2174 = vmatpush.bf16.msrb.mxu3 %v4620_v32  ;;  %2197 = vmatpush.bf16.msra.mxu1 %v5292_v36  ;;  %v7070_v8 = vld [vmem:[#allocation5 + $0x8cc] sm:$0xf]  ;;  %v5452_v14 = vor.u32 %v7006_v6, %v5449_v7  ;;  %v6907_v6 = vld [vmem:[#allocation5 + $0x3ac] sm:$0xf0] }
  0xb8   :  { %v5705_v9 = vld [vmem:[#allocation5 + $0x8e8] sm:$0xf0]  ;;  %v5295_v7 = vld [vmem:[#allocation5 + $0x590] sm:$0xf] }
  0xb9   :  { %2211 = vmatpush.bf16.msra.mxu2 %v5548_v38  ;;  %v6870_v12 = vld [vmem:[#allocation5 + $0x28c] sm:$0xf]  ;;  %v5708_v17 = vor.u32 %v7070_v8, %v5705_v9  ;;  %v6971_v8 = vld [vmem:[#allocation5 + $0x5ac] sm:$0xf0] }
  0xba   :  { %2184 = vmatpush.bf16.msra.mxu0 %v5004_v46  ;;  %v4905_v15 = vld [vmem:[#allocation5 + $0x2a8] sm:$0xf0]  ;;  %v5551_v9 = vld [vmem:[#allocation5 + $0x790] sm:$0xf] }
  0xbb   :  { %2175 = vmatpush.bf16.msrb.mxu3 %v4588_v45  ;;  %2198 = vmatpush.bf16.msra.mxu1 %v5260_v47  ;;  %v6934_v16 = vld [vmem:[#allocation5 + $0x48c] sm:$0xf]  ;;  %v4908_v23 = vor.u32 %v6870_v12, %v4905_v15  ;;  %v4815_v47 = vld [vmem:[#allocation5 + $0x1d0] sm:$0xf]  ;;  %v5296_v12 = vor.u32 %v6971_v8, %v5295_v7 }
  0xbc   :  { %v5161_v18 = vld [vmem:[#allocation5 + $0x4a8] sm:$0xf0]  ;;  %v4751_v15 = vld [vmem:[#allocation5 + $0x150] sm:$0xf] }
  0xbd   :  { %2212 = vmatpush.bf16.msra.mxu2 %v5516_v48  ;;  %v6998_v19 = vld [vmem:[#allocation5 + $0x68c] sm:$0xf]  ;;  %v5164_v24 = vor.u32 %v6934_v16, %v5161_v18  ;;  %v6851_v48 = vld [vmem:[#allocation5 + $0x1ec] sm:$0xf0] }
  0xbe   :  { %2176 = vmatmul.bf16.vlgmr.msrb.gmra.mxu3 %v7619_v54  ;;  %2185 = vmatpush.bf16.msra.mxu0 %v4972_v59  ;;  %v5417_v20 = vld [vmem:[#allocation5 + $0x6a8] sm:$0xf0]  ;;  %v6835_v16 = vld [vmem:[#allocation5 + $0x16c] sm:$0xf0] }
  0xbf   :  { %2226 = vmatpush.bf16.msra.mxu3 %v1944_v56  ;;  %2199 = vmatpush.bf16.msra.mxu1 %v5228_v61  ;;  %v7062_v21 = vld [vmem:[#allocation5 + $0x88c] sm:$0xf]  ;;  %v5420_v25 = vor.u32 %v6998_v19, %v5417_v20  ;;  %v4816_v61 = vor.u32 %v6851_v48, %v4815_v47  ;;  %v6899_v19 = vld [vmem:[#allocation5 + $0x36c] sm:$0xf0] }
  0xc0   :  { %v5673_v22 = vld [vmem:[#allocation5 + $0x8a8] sm:$0xf0]  ;;  %v5263_v20 = vld [vmem:[#allocation5 + $0x550] sm:$0xf] }
  0xc1   :  { %2213 = vmatpush.bf16.msra.mxu2 %v5484_v62  ;;  %v6862_v26 = vld [vmem:[#allocation5 + $0x24c] sm:$0xf]  ;;  %v5676_v29 = vor.u32 %v7062_v21, %v5673_v22  ;;  %v5072_v62 = vor.u32 %v6915_v51, %v5071_v49  ;;  %v6963_v21 = vld [vmem:[#allocation5 + $0x56c] sm:$0xf0] }
  0xc2   :  { %2186 = vmatpush.bf16.msra.mxu0 %v4940_v10  ;;  %v4873_v27 = vld [vmem:[#allocation5 + $0x268] sm:$0xf0]  ;;  %v7035_v10 = vld [vmem:[#allocation5 + $0x7ac] sm:$0xf0] }
  0xc3   :  { %2227 = vmatpush.bf16.msra.mxu3 %v5740_v2  ;;  %2200 = vmatpush.bf16.msra.mxu1 %v5196_v11  ;;  %v6926_v28 = vld [vmem:[#allocation5 + $0x44c] sm:$0xf]  ;;  %v4876_v35 = vor.u32 %v6862_v26, %v4873_v27  ;;  %v5039_v2 = vld [vmem:[#allocation5 + $0x390] sm:$0xf]  ;;  %v4784_v11 = vor.u32 %v6843_v1, %v4783_v0  ;;  %v5552_v18 = vor.u32 %v7035_v10, %v5551_v9 }
  0xc4   :  { %v5129_v30 = vld [vmem:[#allocation5 + $0x468] sm:$0xf0]  ;;  %v5519_v22 = vld [vmem:[#allocation5 + $0x750] sm:$0xf]  ;;  %v5264_v26 = vor.u32 %v6963_v21, %v5263_v20 }
  0xc5   :  { %2214 = vmatpush.bf16.msra.mxu2 %v5452_v14  ;;  %v6990_v31 = vld [vmem:[#allocation5 + $0x64c] sm:$0xf]  ;;  %v5132_v39 = vor.u32 %v6926_v28, %v5129_v30  ;;  %v5040_v14 = vor.u32 %v6907_v6, %v5039_v2  ;;  %v4719_v27 = vld [vmem:[#allocation5 + $0x110] sm:$0xf] }
  0xc6   :  { %v5385_v32 = vld [vmem:[#allocation5 + $0x668] sm:$0xf0]  ;;  %2187 = vmatpush.bf16.msra.mxu0 %v4908_v23  ;;  %v7027_v23 = vld [vmem:[#allocation5 + $0x76c] sm:$0xf0] }
  0xc7   :  { %2228 = vmatpush.bf16.msra.mxu3 %v5708_v17  ;;  %v7054_v33 = vld [vmem:[#allocation5 + $0x84c] sm:$0xf]  ;;  %2201 = vmatpush.bf16.msra.mxu1 %v5164_v24  ;;  %v5388_v40 = vor.u32 %v6990_v31, %v5385_v32  ;;  %v5007_v17 = vld [vmem:[#allocation5 + $0x350] sm:$0xf]  ;;  %v4752_v24 = vor.u32 %v6835_v16, %v4751_v15  ;;  %v5520_v30 = vor.u32 %v7027_v23, %v5519_v22 }
  0xc8   :  { %v5641_v34 = vld [vmem:[#allocation5 + $0x868] sm:$0xf0]  ;;  %v6827_v28 = vld [vmem:[#allocation5 + $0x12c] sm:$0xf0] }
  0xc9   :  { %v6854_v36 = vld [vmem:[#allocation5 + $0x20c] sm:$0xf]  ;;  %2215 = vmatpush.bf16.msra.mxu2 %v5420_v25  ;;  %v5644_v43 = vor.u32 %v7054_v33, %v5641_v34  ;;  %v5008_v25 = vor.u32 %v6899_v19, %v5007_v17  ;;  %v6891_v31 = vld [vmem:[#allocation5 + $0x32c] sm:$0xf0] }
  0xca   :  { %v4841_v38 = vld [vmem:[#allocation5 + $0x228] sm:$0xf0]  ;;  %2188 = vmatpush.bf16.msra.mxu0 %v4876_v35  ;;  %v5231_v32 = vld [vmem:[#allocation5 + $0x510] sm:$0xf] }
  0xcb   :  { %v6918_v41 = vld [vmem:[#allocation5 + $0x40c] sm:$0xf]  ;;  %2229 = vmatpush.bf16.msra.mxu3 %v5676_v29  ;;  %v4844_v50 = vor.u32 %v6854_v36, %v4841_v38  ;;  %2202 = vmatpush.bf16.msra.mxu1 %v5132_v39  ;;  %v4975_v29 = vld [vmem:[#allocation5 + $0x310] sm:$0xf]  ;;  %v4720_v36 = vor.u32 %v6827_v28, %v4719_v27 }
  0xcc   :  { %v5097_v42 = vld [vmem:[#allocation5 + $0x428] sm:$0xf0]  ;;  %v6955_v33 = vld [vmem:[#allocation5 + $0x52c] sm:$0xf0]  ;;  %v4976_v39 = vor.u32 %v6891_v31, %v4975_v29 }
  0xcd   :  { %v6982_v37 = vld [vmem:[#allocation5 + $0x60c] sm:$0xf]  ;;  %2216 = vmatpush.bf16.msra.mxu2 %v5388_v40  ;;  %v5100_v55 = vor.u32 %v6918_v41, %v5097_v42  ;;  %v5487_v34 = vld [vmem:[#allocation5 + $0x710] sm:$0xf]  ;;  %v5232_v40 = vor.u32 %v6955_v33, %v5231_v32 }
  0xce   :  { %v5353_v44 = vld [vmem:[#allocation5 + $0x628] sm:$0xf0]  ;;  %2189 = vmatpush.bf16.msra.mxu0 %v4844_v50  ;;  %v7019_v35 = vld [vmem:[#allocation5 + $0x72c] sm:$0xf0] }
  0xcf   :  { %v7046_v45 = vld [vmem:[#allocation5 + $0x80c] sm:$0xf]  ;;  %v5356_v56 = vor.u32 %v6982_v37, %v5353_v44  ;;  %2230 = vmatpush.bf16.msra.mxu3 %v5644_v43  ;;  %2203 = vmatpush.bf16.msra.mxu1 %v5100_v55  ;;  %v4687_v38 = vld [vmem:[#allocation5 + $0xd0] sm:$0xf]  ;;  %v7661_v37 = vld [vmem:[#allocation7] sm:$0xff]  ;;  %v5488_v43 = vor.u32 %v7019_v35, %v5487_v34 }
  0xd0   :  { %v5609_v46 = vld [vmem:[#allocation5 + $0x828] sm:$0xf0]  ;;  %v6819_v41 = vld [vmem:[#allocation5 + $0xec] sm:$0xf0]  ;;  %v7880_v50 = vperm.slane %v7661_v37, 0 }
  0xd1   :  { %v5612_v59 = vor.u32 %v7046_v45, %v5609_v46  ;;  %2217 = vmatpush.bf16.msra.mxu2 %v5356_v56  ;;  %2190 = vmatmul.bf16.vlgmr.msra.gmra.mxu0 %v7628_v13  ;;  %v4943_v42 = vld [vmem:[#allocation5 + $0x2d0] sm:$0xf]  ;;  %v4688_v49 = vor.u32 %v6819_v41, %v4687_v38  ;;  %v6847_v35 = vld [vmem:[#allocation5 + $0x1d4] sm:$0xf] }
  0xd2   :  { %2238 = vmatpush.bf16.msrb.mxu0 %v4816_v61  ;;  %2204 = vmatmul.bf16.vlgmr.msra.gmra.mxu1 %v7621_v60  ;;  %v6883_v44 = vld [vmem:[#allocation5 + $0x2ec] sm:$0xf0]  ;;  %v5073_v41 = vld [vmem:[#allocation5 + $0x3f0] sm:$0xf0] }
  0xd3   :  { %2231 = vmatpush.bf16.msra.mxu3 %v5612_v59  ;;  %2252 = vmatpush.bf16.msrb.mxu1 %v5072_v62  ;;  %v5199_v45 = vld [vmem:[#allocation5 + $0x4d0] sm:$0xf]  ;;  %v4944_v51 = vor.u32 %v6883_v44, %v4943_v42 }
  0xd4   :  { %2218 = vmatmul.bf16.vlgmr.msra.gmra.mxu2 %v7623_v4  ;;  %v6947_v46 = vld [vmem:[#allocation5 + $0x4ec] sm:$0xf0] }
  0xd5   :  { %2266 = vmatpush.bf16.msrb.mxu2 %v5328_v63  ;;  %v5455_v47 = vld [vmem:[#allocation5 + $0x6d0] sm:$0xf]  ;;  %v5200_v52 = vor.u32 %v6947_v46, %v5199_v45  ;;  %v1967_v0 = vpop.f32.mrf.mxu0  ;;  %v6975_v45 = vld [vmem:[#allocation5 + $0x5d4] sm:$0xf] }
  0xd6   :  { %5760 = vmatmul.msk.bf16.vlgmr.msra.gmra.mxu3 %vm1929_vm1, %v7632_v3  ;;  %2239 = vmatpush.bf16.msrb.mxu0 %v4784_v11  ;;  %v7011_v48 = vld [vmem:[#allocation5 + $0x6ec] sm:$0xf0]  ;;  %v5329_v46 = vld [vmem:[#allocation5 + $0x5f0] sm:$0xf0] }
  0xd7   :  { %2280 = vmatpush.bf16.msrb.mxu3 %v5584_v5  ;;  %2253 = vmatpush.bf16.msrb.mxu1 %v5040_v14  ;;  %v6811_v55 = vld [vmem:[#allocation5 + $0xac] sm:$0xf0]  ;;  %v5456_v57 = vor.u32 %v7011_v48, %v5455_v47  ;;  %v1968_v5 = vadd.f32 %v1967_v0, %v7880_v50 }
  0xd8   :  { %v4911_v56 = vld [vmem:[#allocation5 + $0x290] sm:$0xf]  ;;  %v4656_v2 = vor.u32 %v6811_v55, %v4655_v53 }
  0xd9   :  { %2267 = vmatpush.bf16.msrb.mxu2 %v5296_v12  ;;  %v5167_v59 = vld [vmem:[#allocation5 + $0x490] sm:$0xf]  ;;  %v4912_v6 = vor.u32 %v6875_v58, %v4911_v56  ;;  %v6839_v56 = vld [vmem:[#allocation5 + $0x194] sm:$0xf] }
  0xda   :  { %2240 = vmatpush.bf16.msrb.mxu0 %v4752_v24  ;;  %v6939_v61 = vld [vmem:[#allocation5 + $0x4ac] sm:$0xf0]  ;;  %v4785_v58 = vld [vmem:[#allocation5 + $0x1b0] sm:$0xf0] }
  0xdb   :  { %2281 = vmatpush.bf16.msrb.mxu3 %v5552_v18  ;;  %2254 = vmatpush.bf16.msrb.mxu1 %v5008_v25  ;;  %v5423_v62 = vld [vmem:[#allocation5 + $0x690] sm:$0xf]  ;;  %v5168_v7 = vor.u32 %v6939_v61, %v5167_v59  ;;  %v6903_v59 = vld [vmem:[#allocation5 + $0x394] sm:$0xf] }
  0xdc   :  { %v7003_v63 = vld [vmem:[#allocation5 + $0x6ac] sm:$0xf0]  ;;  %v5041_v61 = vld [vmem:[#allocation5 + $0x3b0] sm:$0xf0] }
  0xdd   :  { %2268 = vmatpush.bf16.msrb.mxu2 %v5264_v26  ;;  %v7664_v1 = vld [vmem:[#allocation5 + $0x950] sm:$0xff]  ;;  %v5424_v11 = vor.u32 %v7003_v63, %v5423_v62 }
  0xde   :  { %2241 = vmatpush.bf16.msrb.mxu0 %v4720_v36  ;;  %v4623_v8 = vld [vmem:[#allocation5 + $0x50] sm:$0xf]  ;;  %v1325_v16 = vunpack.c.l.b16 %v7664_v1  ;;  %v1981_v19 = vpop.f32.mrf.mxu1  ;;  %v6967_v62 = vld [vmem:[#allocation5 + $0x594] sm:$0xf] }
  0xdf   :  { %2282 = vmatpush.bf16.msrb.mxu3 %v5520_v30  ;;  %2255 = vmatpush.bf16.msrb.mxu1 %v4976_v39  ;;  %v6803_v9 = vld [vmem:[#allocation5 + $0x6c] sm:$0xf0]  ;;  %v1982_v21 = vadd.f32 %v1981_v19, %v1968_v5  ;;  %v4817_v39 = vld [vmem:[#allocation5 + $0x1f0] sm:$0xf0]  ;;  %v5044_v5 = vor.u32 %v6903_v59, %v5041_v61 }
  0xe0   :  { %v4879_v10 = vld [vmem:[#allocation5 + $0x250] sm:$0xf]  ;;  %v4624_v20 = vor.u32 %v6803_v9, %v4623_v8  ;;  %v1629_v31 = vpack.c.b16 %v1325_v16, %v1325_v16  ;;  %v5297_v63 = vld [vmem:[#allocation5 + $0x5b0] sm:$0xf0] }
  0xe1   :  { %2269 = vmatpush.bf16.msrb.mxu2 %v5232_v40  ;;  %v6867_v14 = vld [vmem:[#allocation5 + $0x26c] sm:$0xf0]  ;;  %v1995_v32 = vpop.f32.mrf.mxu2  ;;  %v6911_v40 = vld [vmem:[#allocation5 + $0x3d4] sm:$0xf]  ;;  %v2009_v42 = vpop.f32.mrf.mxu3  ;;  %v5300_v9 = vor.u32 %v6967_v62, %v5297_v63 }
  0xe2   :  { %2242 = vmatpush.bf16.msrb.mxu0 %v4688_v49  ;;  %v5135_v12 = vld [vmem:[#allocation5 + $0x450] sm:$0xf]  ;;  %v4880_v22 = vor.u32 %v6867_v14, %v4879_v10  ;;  %v1996_v36 = vadd.f32 %v1995_v32, %v1982_v21  ;;  %v1947_v49 = vsel %vm1933_vm0, %v1629_v31, 0  ;;  %v6831_v8 = vld [vmem:[#allocation5 + $0x154] sm:$0xf] }
  0xe3   :  { %2283 = vmatpush.bf16.msrb.mxu3 %v5488_v43  ;;  %2256 = vmatpush.bf16.msrb.mxu1 %v4944_v51  ;;  %v6931_v15 = vld [vmem:[#allocation5 + $0x46c] sm:$0xf0]  ;;  %v4820_v51 = vor.u32 %v6847_v35, %v4817_v39  ;;  %v4753_v10 = vld [vmem:[#allocation5 + $0x170] sm:$0xf0] }
  0xe4   :  { %v5391_v17 = vld [vmem:[#allocation5 + $0x650] sm:$0xf]  ;;  %v5136_v23 = vor.u32 %v6931_v15, %v5135_v12  ;;  %v7669_v47 = vadd.f32 %v2009_v42, %v1996_v36  ;;  %v5009_v14 = vld [vmem:[#allocation5 + $0x370] sm:$0xf0] }
  0xe5   :  { %2270 = vmatpush.bf16.msrb.mxu2 %v5200_v52  ;;  %v6995_v18 = vld [vmem:[#allocation5 + $0x66c] sm:$0xf0]  ;;  %v5076_v52 = vor.u32 %v6911_v40, %v5073_v41  ;;  %v6959_v12 = vld [vmem:[#allocation5 + $0x554] sm:$0xf] }
  0xe6   :  { %2243 = vmatpush.bf16.msrb.mxu0 %v4656_v2  ;;  %v4591_v24 = vld [vmem:[#allocation5 + $0x10] sm:$0xf]  ;;  %v5392_v27 = vor.u32 %v6995_v18, %v5391_v17  ;;  %v4788_v2 = vor.u32 %v6839_v56, %v4785_v58  ;;  %v5265_v15 = vld [vmem:[#allocation5 + $0x570] sm:$0xf0]  ;;  %v4756_v17 = vor.u32 %v6831_v8, %v4753_v10  ;;  %v1326_v8 = vunpack.c.h.b16 %v7664_v1 }
  0xe7   :  { %2284 = vmatpush.bf16.msrb.mxu3 %v5456_v57  ;;  %2257 = vmatpush.bf16.msrb.mxu1 %v4912_v6  ;;  %v6795_v25 = vld [vmem:[#allocation5 + $0x2c] sm:$0xf0]  ;;  %v5332_v57 = vor.u32 %v6975_v45, %v5329_v46  ;;  %v6823_v21 = vld [vmem:[#allocation5 + $0x114] sm:$0xf] }
  0xe8   :  { %v4847_v26 = vld [vmem:[#allocation5 + $0x210] sm:$0xf]  ;;  %v4592_v38 = vor.u32 %v6795_v25, %v4591_v24  ;;  %v6887_v24 = vld [vmem:[#allocation5 + $0x314] sm:$0xf] }
  0xe9   :  { %2271 = vmatpush.bf16.msrb.mxu2 %v5168_v7  ;;  %v6859_v28 = vld [vmem:[#allocation5 + $0x22c] sm:$0xf0]  ;;  %v4977_v25 = vld [vmem:[#allocation5 + $0x330] sm:$0xf0] }
  0xea   :  { %v5103_v29 = vld [vmem:[#allocation5 + $0x410] sm:$0xf]  ;;  %2244 = vmatpush.bf16.msrb.mxu0 %v4624_v20  ;;  %v4848_v43 = vor.u32 %v6859_v28, %v4847_v26  ;;  %v6951_v26 = vld [vmem:[#allocation5 + $0x514] sm:$0xf] }
  0xeb   :  { %2285 = vmatpush.bf16.msrb.mxu3 %v5424_v11  ;;  %v6923_v30 = vld [vmem:[#allocation5 + $0x42c] sm:$0xf0]  ;;  %2258 = vmatpush.bf16.msrb.mxu1 %v4880_v22  ;;  %v6895_v11 = vld [vmem:[#allocation5 + $0x354] sm:$0xf]  ;;  %v5268_v22 = vor.u32 %v6959_v12, %v5265_v15 }
  0xec   :  { %v5359_v33 = vld [vmem:[#allocation5 + $0x610] sm:$0xf]  ;;  %v5104_v44 = vor.u32 %v6923_v30, %v5103_v29  ;;  %v5012_v18 = vor.u32 %v6895_v11, %v5009_v14  ;;  %v4980_v30 = vor.u32 %v6887_v24, %v4977_v25  ;;  %v4689_v35 = vld [vmem:[#allocation5 + $0xf0] sm:$0xf0]  ;;  %v4823_v25 = vld [vmem:[#allocation5 + $0x1d8] sm:$0xf] }
  0xed   :  { %v6987_v34 = vld [vmem:[#allocation5 + $0x62c] sm:$0xf0]  ;;  %2272 = vmatpush.bf16.msrb.mxu2 %v5136_v23  ;;  %v4721_v23 = vld [vmem:[#allocation5 + $0x130] sm:$0xf0] }
  0xee   :  { %v5360_v48 = vor.u32 %v6987_v34, %v5359_v33  ;;  %v5743_v53 = vld [vmem:[#allocation5 + $0x910] sm:$0xf]  ;;  %2245 = vmatpush.bf16.msrb.mxu0 %v4592_v38  ;;  %v4724_v29 = vor.u32 %v6823_v21, %v4721_v23  ;;  %v6815_v33 = vld [vmem:[#allocation5 + $0xd4] sm:$0xf] }
  0xef   :  { %2286 = vmatpush.bf16.msrb.mxu3 %v5392_v27  ;;  %v7083_v55 = vld [vmem:[#allocation5 + $0x92c] sm:$0xf0]  ;;  %2259 = vmatpush.bf16.msrb.mxu1 %v4848_v43  ;;  %v5233_v27 = vld [vmem:[#allocation5 + $0x530] sm:$0xf0]  ;;  %v4692_v43 = vor.u32 %v6815_v33, %v4689_v35 }
  0xf0   :  { %v5744_v0 = vor.u32 %v7083_v55, %v5743_v53  ;;  %v5711_v6 = vld [vmem:[#allocation5 + $0x8d0] sm:$0xf]  ;;  %v5236_v34 = vor.u32 %v6951_v26, %v5233_v27  ;;  %v6879_v36 = vld [vmem:[#allocation5 + $0x2d4] sm:$0xf]  ;;  %v6852_v26 = vld [vmem:[#allocation5 + $0x1f4] sm:$0xf0] }
  0xf1   :  { %2273 = vmatpush.bf16.msrb.mxu2 %v5104_v44  ;;  %v7075_v7 = vld [vmem:[#allocation5 + $0x8ec] sm:$0xf0]  ;;  %2246 = vmatmul.bf16.vlgmr.msrb.gmra.mxu0 %v7619_v54  ;;  %v4945_v38 = vld [vmem:[#allocation5 + $0x2f0] sm:$0xf0] }
  0xf2   :  { %2296 = vmatpush.bf16.msra.mxu0 %v1947_v49  ;;  %v5712_v16 = vor.u32 %v7075_v7, %v5711_v6  ;;  %2260 = vmatmul.bf16.vlgmr.msrb.gmra.mxu1 %v7628_v13  ;;  %v5679_v19 = vld [vmem:[#allocation5 + $0x890] sm:$0xf]  ;;  %v6943_v39 = vld [vmem:[#allocation5 + $0x4d4] sm:$0xf]  ;;  %v4948_v44 = vor.u32 %v6879_v36, %v4945_v38 }
  0xf3   :  { %2287 = vmatpush.bf16.msrb.mxu3 %v5360_v48  ;;  %2308 = vmatpush.bf16.msra.mxu1 %v4820_v51  ;;  %v7067_v20 = vld [vmem:[#allocation5 + $0x8ac] sm:$0xf0]  ;;  %v5201_v40 = vld [vmem:[#allocation5 + $0x4f0] sm:$0xf0] }
  0xf4   :  { %2274 = vmatmul.bf16.vlgmr.msrb.gmra.mxu2 %v7621_v60  ;;  %v5680_v28 = vor.u32 %v7067_v20, %v5679_v19  ;;  %v5647_v31 = vld [vmem:[#allocation5 + $0x850] sm:$0xf]  ;;  %v6807_v46 = vld [vmem:[#allocation5 + $0x94] sm:$0xf]  ;;  %v5204_v49 = vor.u32 %v6943_v39, %v5201_v40 }
  0xf5   :  { %2322 = vmatpush.bf16.msra.mxu2 %v5076_v52  ;;  %v7059_v32 = vld [vmem:[#allocation5 + $0x86c] sm:$0xf0]  ;;  %v4657_v48 = vld [vmem:[#allocation5 + $0xb0] sm:$0xf0] }
  0xf6   :  { %2288 = vmatmul.bf16.vlgmr.msrb.gmra.mxu3 %v7623_v4  ;;  %2297 = vmatpush.bf16.msra.mxu0 %v5744_v0  ;;  %v5648_v41 = vor.u32 %v7059_v32, %v5647_v31  ;;  %v5615_v42 = vld [vmem:[#allocation5 + $0x810] sm:$0xf]  ;;  %v6871_v51 = vld [vmem:[#allocation5 + $0x294] sm:$0xf]  ;;  %v4660_v59 = vor.u32 %v6807_v46, %v4657_v48 }
  0xf7   :  { %2336 = vmatpush.bf16.msra.mxu3 %v5332_v57  ;;  %2309 = vmatpush.bf16.msra.mxu1 %v4788_v2  ;;  %v7051_v45 = vld [vmem:[#allocation5 + $0x82c] sm:$0xf0]  ;;  %v4913_v52 = vld [vmem:[#allocation5 + $0x2b0] sm:$0xf0] }
  0xf8   :  { %v6935_v53 = vld [vmem:[#allocation5 + $0x494] sm:$0xf]  ;;  %v5616_v58 = vor.u32 %v7051_v45, %v5615_v42  ;;  %v4916_v61 = vor.u32 %v6871_v51, %v4913_v52  ;;  %v6844_v42 = vld [vmem:[#allocation5 + $0x1b4] sm:$0xf0] }
  0xf9   :  { %2323 = vmatpush.bf16.msra.mxu2 %v5044_v5  ;;  %v5169_v55 = vld [vmem:[#allocation5 + $0x4b0] sm:$0xf0] }
  0xfa   :  { %2298 = vmatpush.bf16.msra.mxu0 %v5712_v16  ;;  %v7039_v56 = vld [vmem:[#allocation5 + $0x7d4] sm:$0xf]  ;;  %v5172_v0 = vor.u32 %v6935_v53, %v5169_v55 }
  0xfb   :  { %2337 = vmatpush.bf16.msra.mxu3 %v5300_v9  ;;  %2310 = vmatpush.bf16.msra.mxu1 %v4756_v17  ;;  %v5585_v57 = vld [vmem:[#allocation5 + $0x7f0] sm:$0xf0] }
  0xfc   :  { %v6799_v62 = vld [vmem:[#allocation5 + $0x54] sm:$0xf]  ;;  %v5588_v2 = vor.u32 %v7039_v56, %v5585_v57  ;;  %v4759_v56 = vld [vmem:[#allocation5 + $0x158] sm:$0xf] }
  0xfd   :  { %2324 = vmatpush.bf16.msra.mxu2 %v5012_v18  ;;  %v4625_v63 = vld [vmem:[#allocation5 + $0x70] sm:$0xf0]  ;;  %v6836_v57 = vld [vmem:[#allocation5 + $0x174] sm:$0xf0] }
  0xfe   :  { %2299 = vmatpush.bf16.msra.mxu0 %v5680_v28  ;;  %v6863_v5 = vld [vmem:[#allocation5 + $0x254] sm:$0xf]  ;;  %v4628_v14 = vor.u32 %v6799_v62, %v4625_v63  ;;  %v4760_v63 = vor.u32 %v6836_v57, %v4759_v56  ;;  %v7690_v56 = vpop.f32.mrf.mxu2 }
  0xff   :  { %2338 = vmatpush.bf16.msra.mxu3 %v5268_v22  ;;  %2311 = vmatpush.bf16.msra.mxu1 %v4724_v29  ;;  %v4881_v6 = vld [vmem:[#allocation5 + $0x270] sm:$0xf0]  ;;  %v1630_v22 = vpack.c.b16 %v1326_v8, %v1326_v8  ;;  %v5079_v29 = vld [vmem:[#allocation5 + $0x3d8] sm:$0xf] }
 0x100   :  { %v6927_v7 = vld [vmem:[#allocation5 + $0x454] sm:$0xf]  ;;  %v4884_v12 = vor.u32 %v6863_v5, %v4881_v6  ;;  %v4727_v8 = vld [vmem:[#allocation5 + $0x118] sm:$0xf] }
 0x101   :  { %2325 = vmatpush.bf16.msra.mxu2 %v4980_v30  ;;  %v5137_v9 = vld [vmem:[#allocation5 + $0x470] sm:$0xf0]  ;;  %v6916_v30 = vld [vmem:[#allocation5 + $0x3f4] sm:$0xf0]  ;;  %v1950_v33 = vsel %vm1933_vm0, %v1630_v22, 0 }
 0x102   :  { %2300 = vmatpush.bf16.msra.mxu0 %v5648_v41  ;;  %v7031_v10 = vld [vmem:[#allocation5 + $0x794] sm:$0xf]  ;;  %v5140_v17 = vor.u32 %v6927_v7, %v5137_v9  ;;  %v5080_v39 = vor.u32 %v6916_v30, %v5079_v29  ;;  %v4791_v41 = vld [vmem:[#allocation5 + $0x198] sm:$0xf] }
 0x103   :  { %2339 = vmatpush.bf16.msra.mxu3 %v5236_v34  ;;  %2312 = vmatpush.bf16.msra.mxu1 %v4692_v43  ;;  %v5553_v11 = vld [vmem:[#allocation5 + $0x7b0] sm:$0xf0]  ;;  %v4824_v34 = vor.u32 %v6852_v26, %v4823_v25  ;;  %v5047_v43 = vld [vmem:[#allocation5 + $0x398] sm:$0xf]  ;;  %v4792_v48 = vor.u32 %v6844_v42, %v4791_v41 }
 0x104   :  { %v6791_v15 = vld [vmem:[#allocation5 + $0x14] sm:$0xf]  ;;  %v5556_v18 = vor.u32 %v7031_v10, %v5553_v11  ;;  %v6828_v9 = vld [vmem:[#allocation5 + $0x134] sm:$0xf0] }
 0x105   :  { %2326 = vmatpush.bf16.msra.mxu2 %v4948_v44  ;;  %v4593_v16 = vld [vmem:[#allocation5 + $0x30] sm:$0xf0]  ;;  %v6908_v44 = vld [vmem:[#allocation5 + $0x3b4] sm:$0xf0] }
 0x106   :  { %2301 = vmatpush.bf16.msra.mxu0 %v5616_v58  ;;  %v6855_v19 = vld [vmem:[#allocation5 + $0x214] sm:$0xf]  ;;  %v4596_v27 = vor.u32 %v6791_v15, %v4593_v16  ;;  %v5048_v53 = vor.u32 %v6908_v44, %v5047_v43  ;;  %v5015_v58 = vld [vmem:[#allocation5 + $0x358] sm:$0xf]  ;;  %v4728_v15 = vor.u32 %v6828_v9, %v4727_v8  ;;  %v7687_v44 = vpop.f32.mrf.mxu1 }
 0x107   :  { %2340 = vmatpush.bf16.msra.mxu3 %v5204_v49  ;;  %2313 = vmatpush.bf16.msra.mxu1 %v4660_v59  ;;  %v4849_v20 = vld [vmem:[#allocation5 + $0x230] sm:$0xf0]  ;;  %v6900_v59 = vld [vmem:[#allocation5 + $0x374] sm:$0xf0] }
 0x108   :  { %v6919_v21 = vld [vmem:[#allocation5 + $0x414] sm:$0xf]  ;;  %v4852_v28 = vor.u32 %v6855_v19, %v4849_v20  ;;  %v5016_v6 = vor.u32 %v6900_v59, %v5015_v58  ;;  %v4983_v10 = vld [vmem:[#allocation5 + $0x318] sm:$0xf] }
 0x109   :  { %2327 = vmatpush.bf16.msra.mxu2 %v4916_v61  ;;  %5761 = vmatmul.msk.bf16.vlgmr.msra.gmra.mxu0 %vm1929_vm1, %v7632_v3  ;;  %v5105_v1 = vld [vmem:[#allocation5 + $0x430] sm:$0xf0]  ;;  %v6892_v11 = vld [vmem:[#allocation5 + $0x334] sm:$0xf0] }
 0x10a   :  { %2350 = vmatpush.bf16.msrb.mxu0 %v5588_v2  ;;  %v7023_v23 = vld [vmem:[#allocation5 + $0x754] sm:$0xf]  ;;  %v5108_v31 = vor.u32 %v6919_v21, %v5105_v1  ;;  %v4984_v19 = vor.u32 %v6892_v11, %v4983_v10  ;;  %v4695_v21 = vld [vmem:[#allocation5 + $0xd8] sm:$0xf]  ;;  %v7694_v11 = vpop.f32.mrf.mxu3 }
 0x10b   :  { %2341 = vmatpush.bf16.msra.mxu3 %v5172_v0  ;;  %v5521_v24 = vld [vmem:[#allocation5 + $0x770] sm:$0xf0]  ;;  %2314 = vmatpush.bf16.msra.mxu1 %v4628_v14  ;;  %v6820_v22 = vld [vmem:[#allocation5 + $0xf4] sm:$0xf0] }
 0x10c   :  { %v5524_v32 = vor.u32 %v7023_v23, %v5521_v24  ;;  %v7015_v35 = vld [vmem:[#allocation5 + $0x714] sm:$0xf]  ;;  %v4951_v1 = vld [vmem:[#allocation5 + $0x2d8] sm:$0xf]  ;;  %v4696_v29 = vor.u32 %v6820_v22, %v4695_v21  ;;  %v6848_v21 = vld [vmem:[#allocation5 + $0x1dc] sm:$0xf] }
 0x10d   :  { %2328 = vmatpush.bf16.msra.mxu2 %v4884_v12  ;;  %v5489_v36 = vld [vmem:[#allocation5 + $0x730] sm:$0xf0]  ;;  %v6884_v23 = vld [vmem:[#allocation5 + $0x2f4] sm:$0xf0]  ;;  %v4825_v22 = vld [vmem:[#allocation5 + $0x1f8] sm:$0xf0] }
 0x10e   :  { %2351 = vmatpush.bf16.msrb.mxu0 %v5556_v18  ;;  %v7079_v38 = vld [vmem:[#allocation5 + $0x914] sm:$0xf]  ;;  %v5492_v45 = vor.u32 %v7015_v35, %v5489_v36  ;;  %v4919_v35 = vld [vmem:[#allocation5 + $0x298] sm:$0xf] }
 0x10f   :  { %2342 = vmatpush.bf16.msra.mxu3 %v5140_v17  ;;  %v5745_v40 = vld [vmem:[#allocation5 + $0x930] sm:$0xf0]  ;;  %2315 = vmatpush.bf16.msra.mxu1 %v4596_v27  ;;  %v7683_v27 = vpop.f32.mrf.mxu0  ;;  %v6876_v36 = vld [vmem:[#allocation5 + $0x2b4] sm:$0xf0] }
 0x110   :  { %v5748_v46 = vor.u32 %v7079_v38, %v5745_v40  ;;  %v7007_v49 = vld [vmem:[#allocation5 + $0x6d4] sm:$0xf]  ;;  %v5335_v38 = vld [vmem:[#allocation5 + $0x5d8] sm:$0xf] }
 0x111   :  { %2329 = vmatpush.bf16.msra.mxu2 %v4852_v28  ;;  %v5457_v51 = vld [vmem:[#allocation5 + $0x6f0] sm:$0xf0]  ;;  %v7685_v40 = vld [vmem:[#allocation5 + $0x958] sm:$0xff] }
 0x112   :  { %2352 = vmatpush.bf16.msrb.mxu0 %v5524_v32  ;;  %v7071_v52 = vld [vmem:[#allocation5 + $0x8d4] sm:$0xf]  ;;  %2316 = vmatmul.bf16.vlgmr.msra.gmra.mxu1 %v7619_v54  ;;  %v5460_v61 = vor.u32 %v7007_v49, %v5457_v51  ;;  %v4663_v32 = vld [vmem:[#allocation5 + $0x98] sm:$0xf] }
 0x113   :  { %2343 = vmatpush.bf16.msra.mxu3 %v5108_v31  ;;  %2366 = vmatpush.bf16.msrb.mxu1 %v1950_v33  ;;  %v5713_v55 = vld [vmem:[#allocation5 + $0x8f0] sm:$0xf0]  ;;  %v4952_v33 = vor.u32 %v6884_v23, %v4951_v1  ;;  %v5591_v42 = vld [vmem:[#allocation5 + $0x7d8] sm:$0xf] }
 0x114   :  { %2330 = vmatmul.bf16.vlgmr.msra.gmra.mxu2 %v7628_v13  ;;  %v5716_v62 = vor.u32 %v7071_v52, %v5713_v55  ;;  %v6999_v0 = vld [vmem:[#allocation5 + $0x694] sm:$0xf]  ;;  %v7044_v43 = vld [vmem:[#allocation5 + $0x7f4] sm:$0xf0]  ;;  %v1327_v55 = vunpack.c.l.b16 %v7685_v40 }
 0x115   :  { %2378 = vmatpush.bf16.msrb.mxu2 %v4824_v34  ;;  %v5425_v2 = vld [vmem:[#allocation5 + $0x6b0] sm:$0xf0]  ;;  %v6812_v34 = vld [vmem:[#allocation5 + $0xb4] sm:$0xf0]  ;;  %v5592_v57 = vor.u32 %v7044_v43, %v5591_v42 }
 0x116   :  { %2344 = vmatmul.bf16.vlgmr.msra.gmra.mxu3 %v7621_v60  ;;  %2353 = vmatpush.bf16.msrb.mxu0 %v5492_v45  ;;  %v7063_v5 = vld [vmem:[#allocation5 + $0x894] sm:$0xf]  ;;  %v5428_v14 = vor.u32 %v6999_v0, %v5425_v2  ;;  %v4631_v51 = vld [vmem:[#allocation5 + $0x58] sm:$0xf]  ;;  %v1631_v9 = vpack.c.b16 %v1327_v55, %v1327_v55  ;;  %v6832_v55 = vld [vmem:[#allocation5 + $0x15c] sm:$0xf] }
 0x117   :  { %2392 = vmatpush.bf16.msrb.mxu3 %v5080_v39  ;;  %2367 = vmatpush.bf16.msrb.mxu1 %v5748_v46  ;;  %v5681_v7 = vld [vmem:[#allocation5 + $0x8b0] sm:$0xf0]  ;;  %v6980_v39 = vld [vmem:[#allocation5 + $0x5f4] sm:$0xf0]  ;;  %v4664_v46 = vor.u32 %v6812_v34, %v4663_v32  ;;  %v7692_v10 = vpop.f32.mrf.mxu0 }
 0x118   :  { %v5684_v12 = vor.u32 %v7063_v5, %v5681_v7  ;;  %v6991_v16 = vld [vmem:[#allocation5 + $0x654] sm:$0xf]  ;;  %v5336_v49 = vor.u32 %v6980_v39, %v5335_v38  ;;  %v6804_v52 = vld [vmem:[#allocation5 + $0x74] sm:$0xf0]  ;;  %v7704_v39 = vpop.f32.mrf.mxu3 }
 0x119   :  { %2379 = vmatpush.bf16.msrb.mxu2 %v4792_v48  ;;  %v5393_v17 = vld [vmem:[#allocation5 + $0x670] sm:$0xf0]  ;;  %v4920_v48 = vor.u32 %v6876_v36, %v4919_v35  ;;  %v6868_v58 = vld [vmem:[#allocation5 + $0x274] sm:$0xf0]  ;;  %v4632_v0 = vor.u32 %v6804_v52, %v4631_v51  ;;  %v6840_v35 = vld [vmem:[#allocation5 + $0x19c] sm:$0xf] }
 0x11a   :  { %2354 = vmatpush.bf16.msrb.mxu0 %v5460_v61  ;;  %v7055_v18 = vld [vmem:[#allocation5 + $0x854] sm:$0xf]  ;;  %v5396_v24 = vor.u32 %v6991_v16, %v5393_v17  ;;  %v5303_v59 = vld [vmem:[#allocation5 + $0x598] sm:$0xf]  ;;  %v4793_v36 = vld [vmem:[#allocation5 + $0x1b8] sm:$0xf0] }
 0x11b   :  { %2393 = vmatpush.bf16.msrb.mxu3 %v5048_v53  ;;  %2368 = vmatpush.bf16.msrb.mxu1 %v5716_v62  ;;  %v5649_v20 = vld [vmem:[#allocation5 + $0x870] sm:$0xf0]  ;;  %v4887_v53 = vld [vmem:[#allocation5 + $0x258] sm:$0xf] }
 0x11c   :  { %v6983_v25 = vld [vmem:[#allocation5 + $0x614] sm:$0xf]  ;;  %v5652_v28 = vor.u32 %v7055_v18, %v5649_v20  ;;  %v6972_v61 = vld [vmem:[#allocation5 + $0x5b4] sm:$0xf0]  ;;  %v4888_v2 = vor.u32 %v6868_v58, %v4887_v53 }
 0x11d   :  { %2380 = vmatpush.bf16.msrb.mxu2 %v4760_v63  ;;  %v5361_v26 = vld [vmem:[#allocation5 + $0x630] sm:$0xf0]  ;;  %v5559_v62 = vld [vmem:[#allocation5 + $0x798] sm:$0xf]  ;;  %v5304_v5 = vor.u32 %v6972_v61, %v5303_v59 }
 0x11e   :  { %2355 = vmatpush.bf16.msrb.mxu0 %v5428_v14  ;;  %v7047_v30 = vld [vmem:[#allocation5 + $0x814] sm:$0xf]  ;;  %v5364_v41 = vor.u32 %v6983_v25, %v5361_v26  ;;  %v7036_v63 = vld [vmem:[#allocation5 + $0x7b4] sm:$0xf0]  ;;  %v7702_v25 = vpop.f32.mrf.mxu2 }
 0x11f   :  { %2394 = vmatpush.bf16.msrb.mxu3 %v5016_v6  ;;  %2369 = vmatpush.bf16.msrb.mxu1 %v5684_v12  ;;  %v5617_v31 = vld [vmem:[#allocation5 + $0x830] sm:$0xf0]  ;;  %v4599_v6 = vld [vmem:[#allocation5 + $0x18] sm:$0xf]  ;;  %v5560_v14 = vor.u32 %v7036_v63, %v5559_v62  ;;  %v7707_v53 = vpop.f32.mrf.mxu0 }
 0x120   :  { %v5620_v45 = vor.u32 %v7047_v30, %v5617_v31  ;;  %v6796_v7 = vld [vmem:[#allocation5 + $0x34] sm:$0xf0]  ;;  %v4828_v31 = vor.u32 %v6848_v21, %v4825_v22 }
 0x121   :  { %2381 = vmatpush.bf16.msrb.mxu2 %v4728_v15  ;;  %v4855_v8 = vld [vmem:[#allocation5 + $0x218] sm:$0xf]  ;;  %v4600_v20 = vor.u32 %v6796_v7, %v4599_v6 }
 0x122   :  { %2356 = vmatpush.bf16.msrb.mxu0 %v5396_v24  ;;  %v6860_v12 = vld [vmem:[#allocation5 + $0x234] sm:$0xf0]  ;;  %v1953_v24 = vsel %vm1933_vm0, %v1631_v9, 0 }
 0x123   :  { %2395 = vmatpush.bf16.msrb.mxu3 %v4984_v19  ;;  %2370 = vmatpush.bf16.msrb.mxu1 %v5652_v28  ;;  %v5271_v15 = vld [vmem:[#allocation5 + $0x558] sm:$0xf]  ;;  %v7699_v19 = vpop.f32.mrf.mxu1  ;;  %v4856_v1 = vor.u32 %v6860_v12, %v4855_v8  ;;  %v4729_v12 = vld [vmem:[#allocation5 + $0x138] sm:$0xf0] }
 0x124   :  { %v6964_v16 = vld [vmem:[#allocation5 + $0x574] sm:$0xf0] }
 0x125   :  { %2382 = vmatpush.bf16.msrb.mxu2 %v4696_v29  ;;  %v5527_v17 = vld [vmem:[#allocation5 + $0x758] sm:$0xf]  ;;  %v5272_v23 = vor.u32 %v6964_v16, %v5271_v15 }
 0x126   :  { %2357 = vmatpush.bf16.msrb.mxu0 %v5364_v41  ;;  %v7028_v18 = vld [vmem:[#allocation5 + $0x774] sm:$0xf0]  ;;  %v7712_v9 = vpop.f32.mrf.mxu2 }
 0x127   :  { %2396 = vmatpush.bf16.msrb.mxu3 %v4952_v33  ;;  %2371 = vmatpush.bf16.msrb.mxu1 %v5620_v45  ;;  %v5528_v26 = vor.u32 %v7028_v18, %v5527_v17  ;;  %v5239_v28 = vld [vmem:[#allocation5 + $0x518] sm:$0xf] }
 0x128   :  { %v6956_v29 = vld [vmem:[#allocation5 + $0x534] sm:$0xf0] }
 0x129   :  { %2383 = vmatpush.bf16.msrb.mxu2 %v4664_v46  ;;  %2358 = vmatmul.bf16.vlgmr.msrb.gmra.mxu0 %v7623_v4  ;;  %v5495_v30 = vld [vmem:[#allocation5 + $0x718] sm:$0xf]  ;;  %v5240_v38 = vor.u32 %v6956_v29, %v5239_v28  ;;  %v7716_v28 = vpop.f32.mrf.mxu3  ;;  %v6816_v29 = vld [vmem:[#allocation5 + $0xdc] sm:$0xf] }
 0x12a   :  { %2406 = vmatpush.bf16.msra.mxu0 %v5336_v49  ;;  %5762 = vmatmul.msk.bf16.vlgmr.msrb.gmra.mxu1 %vm1929_vm1, %v7632_v3  ;;  %v7020_v32 = vld [vmem:[#allocation5 + $0x734] sm:$0xf0] }
 0x12b   :  { %2397 = vmatpush.bf16.msrb.mxu3 %v4920_v48  ;;  %2420 = vmatpush.bf16.msra.mxu1 %v5592_v57  ;;  %v5751_v33 = vld [vmem:[#allocation5 + $0x918] sm:$0xf]  ;;  %v5496_v41 = vor.u32 %v7020_v32, %v5495_v30  ;;  %v4796_v48 = vor.u32 %v6840_v35, %v4793_v36  ;;  %v4761_v57 = vld [vmem:[#allocation5 + $0x178] sm:$0xf0]  ;;  %v7710_v59 = vpop.f32.mrf.mxu1 }
 0x12c   :  { %v7084_v34 = vld [vmem:[#allocation5 + $0x934] sm:$0xf0]  ;;  %v4697_v30 = vld [vmem:[#allocation5 + $0xf8] sm:$0xf0] }
 0x12d   :  { %2384 = vmatpush.bf16.msrb.mxu2 %v4632_v0  ;;  %v5752_v42 = vor.u32 %v7084_v34, %v5751_v33  ;;  %v5207_v43 = vld [vmem:[#allocation5 + $0x4d8] sm:$0xf] }
 0x12e   :  { %2407 = vmatpush.bf16.msra.mxu0 %v5304_v5  ;;  %v6948_v45 = vld [vmem:[#allocation5 + $0x4f4] sm:$0xf0]  ;;  %v4764_v5 = vor.u32 %v6832_v55, %v4761_v57  ;;  %v6976_v55 = vld [vmem:[#allocation5 + $0x5dc] sm:$0xf] }
 0x12f   :  { %2398 = vmatpush.bf16.msrb.mxu3 %v4888_v2  ;;  %2421 = vmatpush.bf16.msra.mxu1 %v5560_v14  ;;  %v5463_v46 = vld [vmem:[#allocation5 + $0x6d8] sm:$0xf]  ;;  %v5208_v58 = vor.u32 %v6948_v45, %v5207_v43  ;;  %v6824_v14 = vld [vmem:[#allocation5 + $0x11c] sm:$0xf] }
 0x130   :  { %v7012_v49 = vld [vmem:[#allocation5 + $0x6f4] sm:$0xf0]  ;;  %v4732_v22 = vor.u32 %v6824_v14, %v4729_v12  ;;  %v6808_v45 = vld [vmem:[#allocation5 + $0x9c] sm:$0xf] }
 0x131   :  { %2385 = vmatpush.bf16.msrb.mxu2 %v4600_v20  ;;  %v5719_v51 = vld [vmem:[#allocation5 + $0x8d8] sm:$0xf]  ;;  %v5464_v61 = vor.u32 %v7012_v49, %v5463_v46  ;;  %v4665_v46 = vld [vmem:[#allocation5 + $0xb8] sm:$0xf0]  ;;  %v7720_v49 = vpop.f32.mrf.mxu2 }
 0x132   :  { %2408 = vmatpush.bf16.msra.mxu0 %v5272_v23  ;;  %v7076_v52 = vld [vmem:[#allocation5 + $0x8f4] sm:$0xf0] }
 0x133   :  { %2399 = vmatpush.bf16.msrb.mxu3 %v4856_v1  ;;  %2422 = vmatpush.bf16.msra.mxu1 %v5528_v26  ;;  %v5720_v62 = vor.u32 %v7076_v52, %v5719_v51  ;;  %v5175_v63 = vld [vmem:[#allocation5 + $0x498] sm:$0xf]  ;;  %v7714_v26 = vpop.f32.mrf.mxu0  ;;  %v6912_v51 = vld [vmem:[#allocation5 + $0x3dc] sm:$0xf] }
 0x134   :  { %2386 = vmatmul.bf16.vlgmr.msrb.gmra.mxu2 %v7619_v54  ;;  %v6940_v0 = vld [vmem:[#allocation5 + $0x4b4] sm:$0xf0]  ;;  %v5081_v52 = vld [vmem:[#allocation5 + $0x3f8] sm:$0xf0] }
 0x135   :  { %2436 = vmatpush.bf16.msra.mxu2 %v1953_v24  ;;  %v5431_v2 = vld [vmem:[#allocation5 + $0x698] sm:$0xf]  ;;  %v5176_v15 = vor.u32 %v6940_v0, %v5175_v63 }
 0x136   :  { %2400 = vmatmul.bf16.vlgmr.msrb.gmra.mxu3 %v7628_v13  ;;  %2409 = vmatpush.bf16.msra.mxu0 %v5240_v38  ;;  %v7004_v6 = vld [vmem:[#allocation5 + $0x6b4] sm:$0xf0] }
 0x137   :  { %2448 = vmatpush.bf16.msra.mxu3 %v4828_v31  ;;  %2423 = vmatpush.bf16.msra.mxu1 %v5496_v41  ;;  %v5687_v7 = vld [vmem:[#allocation5 + $0x898] sm:$0xf]  ;;  %v5432_v16 = vor.u32 %v7004_v6, %v5431_v2  ;;  %v4668_v2 = vor.u32 %v6808_v45, %v4665_v46  ;;  %v6800_v6 = vld [vmem:[#allocation5 + $0x5c] sm:$0xf] }
 0x138   :  { %v7068_v8 = vld [vmem:[#allocation5 + $0x8b4] sm:$0xf0] }
 0x139   :  { %2437 = vmatpush.bf16.msra.mxu2 %v5752_v42  ;;  %v5688_v17 = vor.u32 %v7068_v8, %v5687_v7  ;;  %v5143_v18 = vld [vmem:[#allocation5 + $0x458] sm:$0xf]  ;;  %v4700_v42 = vor.u32 %v6816_v29, %v4697_v30  ;;  %v4633_v7 = vld [vmem:[#allocation5 + $0x78] sm:$0xf0]  ;;  %v7722_v8 = vpop.f32.mrf.mxu3 }
 0x13a   :  { %2410 = vmatpush.bf16.msra.mxu0 %v5208_v58  ;;  %v6932_v20 = vld [vmem:[#allocation5 + $0x474] sm:$0xf0]  ;;  %v5337_v58 = vld [vmem:[#allocation5 + $0x5f8] sm:$0xf0] }
 0x13b   :  { %2449 = vmatpush.bf16.msra.mxu3 %v4796_v48  ;;  %2424 = vmatpush.bf16.msra.mxu1 %v5464_v61  ;;  %v5399_v21 = vld [vmem:[#allocation5 + $0x658] sm:$0xf]  ;;  %v5144_v31 = vor.u32 %v6932_v20, %v5143_v18  ;;  %v7718_v48 = vpop.f32.mrf.mxu1  ;;  %v7040_v61 = vld [vmem:[#allocation5 + $0x7dc] sm:$0xf]  ;;  %v5340_v14 = vor.u32 %v6976_v55, %v5337_v58 }
 0x13c   :  { %v6996_v1 = vld [vmem:[#allocation5 + $0x674] sm:$0xf0]  ;;  %v5305_v18 = vld [vmem:[#allocation5 + $0x5b8] sm:$0xf0] }
 0x13d   :  { %2438 = vmatpush.bf16.msra.mxu2 %v5720_v62  ;;  %v5655_v23 = vld [vmem:[#allocation5 + $0x858] sm:$0xf]  ;;  %v5400_v34 = vor.u32 %v6996_v1, %v5399_v21  ;;  %v5593_v62 = vld [vmem:[#allocation5 + $0x7f8] sm:$0xf0]  ;;  %v1328_v1 = vunpack.c.h.b16 %v7685_v40 }
 0x13e   :  { %v7060_v24 = vld [vmem:[#allocation5 + $0x874] sm:$0xf0]  ;;  %2411 = vmatpush.bf16.msra.mxu0 %v5176_v15  ;;  %v5596_v12 = vor.u32 %v7040_v61, %v5593_v62  ;;  %v6904_v15 = vld [vmem:[#allocation5 + $0x39c] sm:$0xf] }
 0x13f   :  { %2450 = vmatpush.bf16.msra.mxu3 %v4764_v5  ;;  %v5111_v32 = vld [vmem:[#allocation5 + $0x418] sm:$0xf]  ;;  %2425 = vmatpush.bf16.msra.mxu1 %v5432_v16  ;;  %v5656_v35 = vor.u32 %v7060_v24, %v5655_v23  ;;  %v5084_v5 = vor.u32 %v6912_v51, %v5081_v52  ;;  %v5049_v16 = vld [vmem:[#allocation5 + $0x3b8] sm:$0xf0]  ;;  %v4636_v23 = vor.u32 %v6800_v6, %v4633_v7 }
 0x140   :  { %v6924_v33 = vld [vmem:[#allocation5 + $0x434] sm:$0xf0]  ;;  %v7032_v20 = vld [vmem:[#allocation5 + $0x79c] sm:$0xf]  ;;  %v5052_v24 = vor.u32 %v6904_v15, %v5049_v16 }
 0x141   :  { %2439 = vmatpush.bf16.msra.mxu2 %v5688_v17  ;;  %v5367_v36 = vld [vmem:[#allocation5 + $0x618] sm:$0xf]  ;;  %v5112_v57 = vor.u32 %v6924_v33, %v5111_v32  ;;  %v6968_v17 = vld [vmem:[#allocation5 + $0x59c] sm:$0xf] }
 0x142   :  { %v6988_v38 = vld [vmem:[#allocation5 + $0x634] sm:$0xf0]  ;;  %2412 = vmatpush.bf16.msra.mxu0 %v5144_v31  ;;  %v5561_v21 = vld [vmem:[#allocation5 + $0x7b8] sm:$0xf0]  ;;  %v5308_v31 = vor.u32 %v6968_v17, %v5305_v18 }
 0x143   :  { %v5623_v41 = vld [vmem:[#allocation5 + $0x818] sm:$0xf]  ;;  %2451 = vmatpush.bf16.msra.mxu3 %v4732_v22  ;;  %2426 = vmatpush.bf16.msra.mxu1 %v5400_v34  ;;  %v5368_v63 = vor.u32 %v6988_v38, %v5367_v36  ;;  %v7724_v22 = vpop.f32.mrf.mxu0  ;;  %v6792_v29 = vld [vmem:[#allocation5 + $0x1c] sm:$0xf]  ;;  %v5564_v32 = vor.u32 %v7032_v20, %v5561_v21 }
 0x144   :  { %v7052_v43 = vld [vmem:[#allocation5 + $0x834] sm:$0xf0]  ;;  %v4601_v30 = vld [vmem:[#allocation5 + $0x38] sm:$0xf0] }
 0x145   :  { %2440 = vmatpush.bf16.msra.mxu2 %v5656_v35  ;;  %v5624_v0 = vor.u32 %v7052_v43, %v5623_v41  ;;  %v6896_v33 = vld [vmem:[#allocation5 + $0x35c] sm:$0xf]  ;;  %v7730_v41 = vpop.f32.mrf.mxu1  ;;  %v1632_v43 = vpack.c.b16 %v1328_v1, %v1328_v1  ;;  %v4604_v45 = vor.u32 %v6792_v29, %v4601_v30 }
 0x146   :  { %2413 = vmatpush.bf16.msra.mxu0 %v5112_v57  ;;  %v5017_v34 = vld [vmem:[#allocation5 + $0x378] sm:$0xf0]  ;;  %7881 = vst [vmem:[#allocation16_spill] sm:$0xff] %v7730_v41 }
 0x147   :  { %2452 = vmatpush.bf16.msra.mxu3 %v4700_v42  ;;  %2427 = vmatpush.bf16.msra.mxu1 %v5368_v63  ;;  %v6960_v35 = vld [vmem:[#allocation5 + $0x55c] sm:$0xf]  ;;  %v7732_v42 = vpop.f32.mrf.mxu2  ;;  %v5020_v46 = vor.u32 %v6896_v33, %v5017_v34 }
 0x148   :  { %v5273_v36 = vld [vmem:[#allocation5 + $0x578] sm:$0xf0] }
 0x149   :  { %2441 = vmatpush.bf16.msra.mxu2 %v5624_v0  ;;  %2414 = vmatmul.bf16.vlgmr.msra.gmra.mxu0 %v7621_v60  ;;  %v7024_v40 = vld [vmem:[#allocation5 + $0x75c] sm:$0xf]  ;;  %v5276_v51 = vor.u32 %v6960_v35, %v5273_v36 }
 0x14a   :  { %2462 = vmatpush.bf16.msrb.mxu0 %v5084_v5  ;;  %v5529_v38 = vld [vmem:[#allocation5 + $0x778] sm:$0xf0]  ;;  %2428 = vmatmul.bf16.vlgmr.msra.gmra.mxu1 %v7623_v4  ;;  %v1956_v5 = vsel %vm1933_vm0, %v1632_v43, 0 }
 0x14b   :  { %2453 = vmatpush.bf16.msra.mxu3 %v4668_v2  ;;  %2476 = vmatpush.bf16.msrb.mxu1 %v5340_v14  ;;  %v5532_v52 = vor.u32 %v7024_v40, %v5529_v38  ;;  %v6888_v55 = vld [vmem:[#allocation5 + $0x31c] sm:$0xf]  ;;  %v7735_v0 = vpop.f32.mrf.mxu0  ;;  %v7737_v2 = vpop.f32.mrf.mxu3 }
 0x14c   :  { %5763 = vmatmul.msk.bf16.vlgmr.msra.gmra.mxu2 %vm1929_vm1, %v7632_v3  ;;  %v4985_v57 = vld [vmem:[#allocation5 + $0x338] sm:$0xf0] }
 0x14d   :  { %2490 = vmatpush.bf16.msrb.mxu2 %v5596_v12  ;;  %v6952_v58 = vld [vmem:[#allocation5 + $0x51c] sm:$0xf]  ;;  %v4988_v14 = vor.u32 %v6888_v55, %v4985_v57 }
 0x14e   :  { %2463 = vmatpush.bf16.msrb.mxu0 %v5052_v24  ;;  %v5241_v61 = vld [vmem:[#allocation5 + $0x538] sm:$0xf0]  ;;  %v7740_v24 = vpop.f32.mrf.mxu1 }
 0x14f   :  { %2454 = vmatpush.bf16.msra.mxu3 %v4636_v23  ;;  %2477 = vmatpush.bf16.msrb.mxu1 %v5308_v31  ;;  %v7016_v62 = vld [vmem:[#allocation5 + $0x71c] sm:$0xf]  ;;  %v5244_v12 = vor.u32 %v6952_v58, %v5241_v61 }
 0x150   :  { %v5497_v63 = vld [vmem:[#allocation5 + $0x738] sm:$0xf0] }
 0x151   :  { %2491 = vmatpush.bf16.msrb.mxu2 %v5564_v32  ;;  %v7080_v6 = vld [vmem:[#allocation5 + $0x91c] sm:$0xf]  ;;  %v5500_v15 = vor.u32 %v7016_v62, %v5497_v63  ;;  %v7743_v32 = vpop.f32.mrf.mxu2 }
 0x152   :  { %v5753_v7 = vld [vmem:[#allocation5 + $0x938] sm:$0xf0]  ;;  %2464 = vmatpush.bf16.msrb.mxu0 %v5020_v46  ;;  %7882 = vst [vmem:[#allocation17_spill] sm:$0xff] %v7743_v32  ;;  %v5863_v32 = vld [vmem:[#allocation8 + $0xc0] sm:$0xf] }
 0x153   :  { %2455 = vmatpush.bf16.msra.mxu3 %v4604_v45  ;;  %2478 = vmatpush.bf16.msrb.mxu1 %v5276_v51  ;;  %v6880_v16 = vld [vmem:[#allocation5 + $0x2dc] sm:$0xf]  ;;  %v5756_v20 = vor.u32 %v7080_v6, %v5753_v7  ;;  %v7745_v51 = vpop.f32.mrf.mxu3  ;;  %v7747_v57 = vpop.f32.mrf.mxu0 }
 0x154   :  { %v4953_v17 = vld [vmem:[#allocation5 + $0x2f8] sm:$0xf0] }
 0x155   :  { %2492 = vmatpush.bf16.msrb.mxu2 %v5532_v52  ;;  %v6944_v18 = vld [vmem:[#allocation5 + $0x4dc] sm:$0xf]  ;;  %v4956_v31 = vor.u32 %v6880_v16, %v4953_v17  ;;  %v7749_v17 = vld [vmem:[#allocation7] sm:$0xff] }
 0x156   :  { %v5209_v21 = vld [vmem:[#allocation5 + $0x4f8] sm:$0xf0]  ;;  %2456 = vmatmul.bf16.vlgmr.msra.gmra.mxu3 %v7619_v54  ;;  %2465 = vmatpush.bf16.msrb.mxu0 %v4988_v14 }
 0x157   :  { %2506 = vmatpush.bf16.msrb.mxu3 %v1956_v5  ;;  %v7008_v1 = vld [vmem:[#allocation5 + $0x6dc] sm:$0xf]  ;;  %2479 = vmatpush.bf16.msrb.mxu1 %v5244_v12  ;;  %v5212_v33 = vor.u32 %v6944_v18, %v5209_v21  ;;  %v414_v18 = vperm.slane %v7749_v17, 1 }
 0x158   :  { %v5465_v23 = vld [vmem:[#allocation5 + $0x6f8] sm:$0xf0] }
 0x159   :  { %v7072_v29 = vld [vmem:[#allocation5 + $0x8dc] sm:$0xf]  ;;  %2493 = vmatpush.bf16.msrb.mxu2 %v5500_v15  ;;  %v5468_v34 = vor.u32 %v7008_v1, %v5465_v23  ;;  %v7752_v23 = vpop.f32.mrf.mxu1  ;;  %v2038_v41 = vadd.f32 %v7699_v19, %v414_v18 }
 0x15a   :  { %v5721_v30 = vld [vmem:[#allocation5 + $0x8f8] sm:$0xf0]  ;;  %2466 = vmatpush.bf16.msrb.mxu0 %v4956_v31 }
 0x15b   :  { %v6872_v35 = vld [vmem:[#allocation5 + $0x29c] sm:$0xf]  ;;  %2507 = vmatpush.bf16.msrb.mxu3 %v5756_v20  ;;  %v5724_v38 = vor.u32 %v7072_v29, %v5721_v30  ;;  %2480 = vmatpush.bf16.msrb.mxu1 %v5212_v33 }
 0x15c   :  { %v4921_v36 = vld [vmem:[#allocation5 + $0x2b8] sm:$0xf0] }
 0x15d   :  { %v6936_v40 = vld [vmem:[#allocation5 + $0x49c] sm:$0xf]  ;;  %v4924_v55 = vor.u32 %v6872_v35, %v4921_v36  ;;  %2494 = vmatpush.bf16.msrb.mxu2 %v5468_v34 }
 0x15e   :  { %v5177_v43 = vld [vmem:[#allocation5 + $0x4b8] sm:$0xf0] }
 0x15f   :  { %v7000_v45 = vld [vmem:[#allocation5 + $0x69c] sm:$0xf]  ;;  %v5180_v58 = vor.u32 %v6936_v40, %v5177_v43  ;;  %2508 = vmatpush.bf16.msrb.mxu3 %v5724_v38  ;;  %2467 = vmatpush.bf16.msrb.mxu0 %v4924_v55  ;;  %v7754_v43 = vpop.f32.mrf.mxu2  ;;  %v7147_v55 = vld [vmem:[#allocation8 + $0x1ec] sm:$0xf0] }
 0x160   :  { %v5433_v46 = vld [vmem:[#allocation5 + $0x6b8] sm:$0xf0]  ;;  %7883 = vst [vmem:[#allocation18_spill] sm:$0xff] %v7754_v43 }
 0x161   :  { %v7064_v54 = vld [vmem:[#allocation5 + $0x89c] sm:$0xf]  ;;  %v5436_v61 = vor.u32 %v7000_v45, %v5433_v46  ;;  %2481 = vmatpush.bf16.msrb.mxu1 %v5180_v58  ;;  %v5879_v45 = vld [vmem:[#allocation8 + $0xe0] sm:$0xf]  ;;  %v7115_v46 = vld [vmem:[#allocation8 + $0xec] sm:$0xf0] }
 0x162   :  { %v5689_v52 = vld [vmem:[#allocation5 + $0x8b8] sm:$0xf0]  ;;  %v6135_v58 = vld [vmem:[#allocation8 + $0x2e0] sm:$0xf] }
 0x163   :  { %v6864_v62 = vld [vmem:[#allocation5 + $0x25c] sm:$0xf]  ;;  %v5692_v6 = vor.u32 %v7064_v54, %v5689_v52  ;;  %2495 = vmatpush.bf16.msrb.mxu2 %v5436_v61  ;;  %v6007_v54 = vld [vmem:[#allocation8 + $0x1e0] sm:$0xf]  ;;  %v7179_v61 = vld [vmem:[#allocation8 + $0x2ec] sm:$0xf0] }
 0x164   :  { %v4889_v63 = vld [vmem:[#allocation5 + $0x278] sm:$0xf0]  ;;  %v6136_v50 = vor.u32 %v7179_v61, %v6135_v58  ;;  %v7139_v61 = vld [vmem:[#allocation8 + $0x1ac] sm:$0xf0] }
 0x165   :  { %v6928_v5 = vld [vmem:[#allocation5 + $0x45c] sm:$0xf]  ;;  %v4892_v20 = vor.u32 %v6864_v62, %v4889_v63  ;;  %2509 = vmatpush.bf16.msrb.mxu3 %v5692_v6  ;;  %v2179_v62 = vpop.f32.mrf.mxu3  ;;  %v7756_v63 = vpop.f32.mrf.mxu0 }
 0x166   :  { %v5145_v7 = vld [vmem:[#allocation5 + $0x478] sm:$0xf0] }
 0x167   :  { %v6992_v14 = vld [vmem:[#allocation5 + $0x65c] sm:$0xf]  ;;  %v5148_v29 = vor.u32 %v6928_v5, %v5145_v7  ;;  %2468 = vmatpush.bf16.msrb.mxu0 %v4892_v20  ;;  %v6263_v7 = vld [vmem:[#allocation8 + $0x3e0] sm:$0xf]  ;;  %v7111_v20 = vld [vmem:[#allocation8 + $0xcc] sm:$0xf0]  ;;  %v7767_v19 = vpop.f32.mrf.mxu2 }
 0x168   :  { %v5401_v12 = vld [vmem:[#allocation5 + $0x678] sm:$0xf0] }
 0x169   :  { %v7056_v15 = vld [vmem:[#allocation5 + $0x85c] sm:$0xf]  ;;  %v5404_v30 = vor.u32 %v6992_v14, %v5401_v12  ;;  %2482 = vmatpush.bf16.msrb.mxu1 %v5148_v29  ;;  %v7211_v14 = vld [vmem:[#allocation8 + $0x3ec] sm:$0xf0] }
 0x16a   :  { %v5657_v16 = vld [vmem:[#allocation5 + $0x878] sm:$0xf0]  ;;  %v6264_v29 = vor.u32 %v7211_v14, %v6263_v7 }
 0x16b   :  { %v6856_v21 = vld [vmem:[#allocation5 + $0x21c] sm:$0xf]  ;;  %v5660_v35 = vor.u32 %v7056_v15, %v5657_v16  ;;  %2496 = vmatpush.bf16.msrb.mxu2 %v5404_v30  ;;  %v5880_v15 = vor.u32 %v7115_v46, %v5879_v45  ;;  %v6008_v16 = vor.u32 %v7147_v55, %v6007_v54  ;;  %v7143_v30 = vld [vmem:[#allocation8 + $0x1cc] sm:$0xf0]  ;;  %v5975_v54 = vld [vmem:[#allocation8 + $0x1a0] sm:$0xf]  ;;  %v2052_v55 = vadd.f32 %v7702_v25, %v2038_v41 }
 0x16c   :  { %v4857_v1 = vld [vmem:[#allocation5 + $0x238] sm:$0xf0] }
 0x16d   :  { %v6920_v31 = vld [vmem:[#allocation5 + $0x41c] sm:$0xf]  ;;  %v4860_v52 = vor.u32 %v6856_v21, %v4857_v1  ;;  %2510 = vmatpush.bf16.msrb.mxu3 %v5660_v35  ;;  %v5991_v21 = vld [vmem:[#allocation8 + $0x1c0] sm:$0xf]  ;;  %v7884_v1 = vperm.slane %v7661_v37, 0  ;;  %v415_v35 = vperm.slane %v7749_v17, 2  ;;  %v2193_v14 = vpop.f32.mrf.mxu0 }
 0x16e   :  { %v5113_v33 = vld [vmem:[#allocation5 + $0x438] sm:$0xf0]  ;;  %v416_v37 = vperm.slane %v7749_v17, 3  ;;  %v5992_v45 = vor.u32 %v7143_v30, %v5991_v21  ;;  %v7199_v30 = vld [vmem:[#allocation8 + $0x38c] sm:$0xf0] }
 0x16f   :  { %v6984_v34 = vld [vmem:[#allocation5 + $0x61c] sm:$0xf]  ;;  %v5116_v5 = vor.u32 %v6920_v31, %v5113_v33  ;;  %v1970_v43 = vadd.f32 %v7683_v27, %v7884_v1  ;;  %2469 = vmatpush.bf16.msrb.mxu0 %v4860_v52  ;;  %v6119_v31 = vld [vmem:[#allocation8 + $0x2c0] sm:$0xf]  ;;  %v7175_v33 = vld [vmem:[#allocation8 + $0x2cc] sm:$0xf0]  ;;  %v5864_v27 = vor.u32 %v7111_v20, %v5863_v32  ;;  %v2110_v7 = vadd.f32 %v7732_v42, %v415_v35 }
 0x170   :  { %v5369_v36 = vld [vmem:[#allocation5 + $0x638] sm:$0xf0]  ;;  %v6120_v46 = vor.u32 %v7175_v33, %v6119_v31  ;;  %v7171_v32 = vld [vmem:[#allocation8 + $0x2ac] sm:$0xf0]  ;;  %v2178_v25 = vadd.f32 %v7745_v51, %v416_v37  ;;  %v2180_v41 = vadd.f32 %v2179_v62, %v416_v37  ;;  %v5815_v37 = vld [vmem:[#allocation8 + $0x60] sm:$0xf] }
 0x171   :  { %v7048_v40 = vld [vmem:[#allocation5 + $0x81c] sm:$0xf]  ;;  %v5372_v6 = vor.u32 %v6984_v34, %v5369_v36  ;;  %v2040_v34 = vadd.f32 %v7710_v59, %v414_v18  ;;  %v7764_v36 = vpop.f32.mrf.mxu1  ;;  %2483 = vmatpush.bf16.msrb.mxu1 %v5116_v5  ;;  %v5847_v59 = vld [vmem:[#allocation8 + $0xa0] sm:$0xf]  ;;  %v7107_v18 = vld [vmem:[#allocation8 + $0xac] sm:$0xf0]  ;;  %v1984_v52 = vadd.f32 %v7687_v44, %v1970_v43  ;;  %v2124_v1 = vadd.f32 %v7737_v2, %v2110_v7 }
 0x172   :  { %v5625_v38 = vld [vmem:[#allocation5 + $0x838] sm:$0xf0]  ;;  %2470 = vmatmul.bf16.vlgmr.msrb.gmra.mxu0 %v7628_v13  ;;  %v6103_v5 = vld [vmem:[#allocation8 + $0x2a0] sm:$0xf]  ;;  %v7203_v43 = vld [vmem:[#allocation8 + $0x3ac] sm:$0xf0]  ;;  %v5848_v13 = vor.u32 %v7107_v18, %v5847_v59  ;;  %v2192_v33 = vadd.f32 %v7756_v63, %v2178_v25 }
 0x173   :  { %v5628_v12 = vor.u32 %v7048_v40, %v5625_v38  ;;  %2497 = vmatpush.bf16.msrb.mxu2 %v5372_v6  ;;  %v6247_v40 = vld [vmem:[#allocation8 + $0x3c0] sm:$0xf]  ;;  %v7207_v38 = vld [vmem:[#allocation8 + $0x3cc] sm:$0xf0]  ;;  %4088 = vmatpush.bf16.msra.mxu0 %v5880_v15  ;;  %v2054_v6 = vadd.f32 %v7712_v9, %v2040_v34  ;;  %v7780_v9 = vpop.f32.mrf.mxu3  ;;  %v6104_v42 = vor.u32 %v7171_v32, %v6103_v5 }
 0x174   :  { %v6248_v58 = vor.u32 %v7207_v38, %v6247_v40  ;;  %2484 = vmatmul.bf16.vlgmr.msrb.gmra.mxu1 %v7621_v60  ;;  %v6231_v44 = vld [vmem:[#allocation8 + $0x3a0] sm:$0xf]  ;;  %v1998_v15 = vadd.f32 %v7690_v56, %v1984_v52  ;;  %v7135_v62 = vld [vmem:[#allocation8 + $0x18c] sm:$0xf0]  ;;  %v2194_v34 = vadd.f32 %v2193_v14, %v2180_v41  ;;  %v2138_v18 = vadd.f32 %v7747_v57, %v2124_v1 }
 0x175   :  { %2511 = vmatpush.bf16.msrb.mxu3 %v5628_v12  ;;  %4102 = vmatpush.bf16.msra.mxu1 %v6008_v16  ;;  %v5831_v60 = vld [vmem:[#allocation8 + $0x80] sm:$0xf]  ;;  %v7103_v12 = vld [vmem:[#allocation8 + $0x8c] sm:$0xf0]  ;;  %v6232_v51 = vor.u32 %v7203_v43, %v6231_v44  ;;  %v2068_v31 = vadd.f32 %v7716_v28, %v2054_v6  ;;  %v2024_v32 = vadd.f32 %v7692_v10, %v7669_v47 }
 0x176   :  { %2498 = vmatmul.bf16.vlgmr.msrb.gmra.mxu2 %v7623_v4  ;;  %v5959_v4 = vld [vmem:[#allocation8 + $0x180] sm:$0xf]  ;;  %v7167_v20 = vld [vmem:[#allocation8 + $0x28c] sm:$0xf0]  ;;  %v5832_v56 = vor.u32 %v7103_v12, %v5831_v60  ;;  %v2152_v47 = vadd.f32 %v7752_v23, %v2138_v18 }
 0x177   :  { %4116 = vmatpush.bf16.msra.mxu2 %v6136_v50  ;;  %v2108_v50 = vadd.f32 %v7720_v49, %v415_v35  ;;  %4089 = vmatpush.bf16.msra.mxu0 %v5864_v27  ;;  %v5976_v49 = vor.u32 %v7139_v61, %v5975_v54  ;;  %v6087_v16 = vld [vmem:[#allocation8 + $0x280] sm:$0xf]  ;;  %v5960_v40 = vor.u32 %v7135_v62, %v5959_v4  ;;  %v7163_v28 = vld [vmem:[#allocation8 + $0x26c] sm:$0xf0]  ;;  %v2221_v54 = vpop.f32.mrf.mxu2  ;;  %v7802_v4 = vpop.f32.mrf.mxu0  ;;  %7353 = vtanh.f32 %v2024_v32 }
 0x178   :  { %5764 = vmatmul.msk.bf16.vlgmr.msrb.gmra.mxu3 %vm1929_vm1, %v7632_v3  ;;  %v2066_v3 = vadd.f32 %v7704_v39, %v2052_v55  ;;  %v6088_v38 = vor.u32 %v7167_v20, %v6087_v16  ;;  %v7099_v39 = vld [vmem:[#allocation8 + $0x6c] sm:$0xf0]  ;;  %v5943_v27 = vld [vmem:[#allocation8 + $0x160] sm:$0xf]  ;;  %v2206_v61 = vadd.f32 %v7764_v36, %v2192_v33 }
 0x179   :  { %4130 = vmatpush.bf16.msra.mxu3 %v6264_v29  ;;  %4103 = vmatpush.bf16.msra.mxu1 %v5992_v45  ;;  %v2122_v21 = vadd.f32 %v7722_v8, %v2108_v50  ;;  %v6215_v29 = vld [vmem:[#allocation8 + $0x380] sm:$0xf]  ;;  %v2207_v35 = vpop.f32.mrf.mxu1  ;;  %v2012_v8 = vadd.f32 %v7694_v11, %v1998_v15  ;;  %v7131_v45 = vld [vmem:[#allocation8 + $0x16c] sm:$0xf0]  ;;  %v5816_v11 = vor.u32 %v7099_v39, %v5815_v37  ;;  %v7886_v15 = vld [vmem:[#allocation18_spill] sm:$0xff] }
 0x17a   :  { %v6216_v2 = vor.u32 %v7199_v30, %v6215_v29  ;;  %v2080_v63 = vadd.f32 %v7714_v26, %v2066_v3  ;;  %v6199_v52 = vld [vmem:[#allocation8 + $0x360] sm:$0xf]  ;;  %v7195_v55 = vld [vmem:[#allocation8 + $0x36c] sm:$0xf0]  ;;  %v2208_v5 = vadd.f32 %v2207_v35, %v2194_v34  ;;  %v5944_v26 = vor.u32 %v7131_v45, %v5943_v27 }
 0x17b   :  { %4117 = vmatpush.bf16.msra.mxu2 %v6120_v46  ;;  %4090 = vmatpush.bf16.msra.mxu0 %v5848_v13  ;;  %v6071_v46 = vld [vmem:[#allocation8 + $0x260] sm:$0xf]  ;;  %v2136_v59 = vadd.f32 %v7735_v0, %v2122_v21  ;;  %v7095_v50 = vld [vmem:[#allocation8 + $0x4c] sm:$0xf0]  ;;  %v2026_v7 = vadd.f32 %v7707_v53, %v2012_v8  ;;  %v2235_v10 = vpop.f32.mrf.mxu3  ;;  %v2220_v12 = vadd.f32 %v7767_v19, %v2206_v61 }
 0x17c   :  { %v6072_v6 = vor.u32 %v7163_v28, %v6071_v46  ;;  %v5799_v0 = vld [vmem:[#allocation8 + $0x40] sm:$0xf]  ;;  %v2222_v44 = vadd.f32 %v2221_v54, %v2208_v5  ;;  %v7127_v43 = vld [vmem:[#allocation8 + $0x14c] sm:$0xf0]  ;;  %v2094_v41 = vadd.f32 %v7718_v48, %v2080_v63 }
 0x17d   :  { %4131 = vmatpush.bf16.msra.mxu3 %v6248_v58  ;;  %4104 = vmatpush.bf16.msra.mxu1 %v5976_v49  ;;  %v2082_v58 = vadd.f32 %v7724_v22, %v2068_v31  ;;  %v5927_v57 = vld [vmem:[#allocation8 + $0x140] sm:$0xf]  ;;  %v6200_v22 = vor.u32 %v7195_v55, %v6199_v52  ;;  %v7159_v25 = vld [vmem:[#allocation8 + $0x24c] sm:$0xf0]  ;;  %v2150_v13 = vadd.f32 %v7740_v24, %v2136_v59  ;;  %7355 = vtanh.f32 %v2026_v7  ;;  %v7354_v63 = vpop.eup %7353 }
 0x17e   :  { %v6055_v36 = vld [vmem:[#allocation8 + $0x240] sm:$0xf]  ;;  %v7191_v49 = vld [vmem:[#allocation8 + $0x34c] sm:$0xf0]  ;;  %v5800_v53 = vor.u32 %v7095_v50, %v5799_v0  ;;  %v5928_v48 = vor.u32 %v7127_v43, %v5927_v57  ;;  %v2236_v20 = vadd.f32 %v2235_v10, %v2222_v44  ;;  %7357 = vtanh.f32 %v2094_v41 }
 0x17f   :  { %4118 = vmatpush.bf16.msra.mxu2 %v6104_v42  ;;  %4091 = vmatpush.bf16.msra.mxu0 %v5832_v56  ;;  %v6183_v14 = vld [vmem:[#allocation8 + $0x340] sm:$0xf]  ;;  %v7885_v42 = vld [vmem:[#allocation16_spill] sm:$0xff]  ;;  %v6056_v24 = vor.u32 %v7159_v25, %v6055_v36  ;;  %v7091_v23 = vld [vmem:[#allocation8 + $0x2c] sm:$0xf0]  ;;  %v2234_v34 = vadd.f32 %v7780_v9, %v2220_v12  ;;  %v417_v56 = vperm.slane %v7749_v17, 4  ;;  %v2275_v5 = vpop.f32.mrf.mxu2  ;;  %v2249_v57 = vpop.f32.mrf.mxu0 }
 0x180   :  { %v2096_v60 = vadd.f32 %v7885_v42, %v2082_v58  ;;  %v5783_v62 = vld [vmem:[#allocation8 + $0x20] sm:$0xf]  ;;  %v6184_v3 = vor.u32 %v7191_v49, %v6183_v14  ;;  %v7123_v21 = vld [vmem:[#allocation8 + $0x12c] sm:$0xf0] }
 0x181   :  { %4132 = vmatpush.bf16.msra.mxu3 %v6232_v51  ;;  %4105 = vmatpush.bf16.msra.mxu1 %v5960_v40  ;;  %v2166_v51 = vadd.f32 %v7886_v15, %v2152_v47  ;;  %v5911_v16 = vld [vmem:[#allocation8 + $0x120] sm:$0xf]  ;;  %v7155_v1 = vld [vmem:[#allocation8 + $0x22c] sm:$0xf0]  ;;  %v5784_v35 = vor.u32 %v7091_v23, %v5783_v62  ;;  %v2248_v44 = vadd.f32 %v7802_v4, %v417_v56 }
 0x182   :  { %v6039_v19 = vld [vmem:[#allocation8 + $0x220] sm:$0xf]  ;;  %v7887_v29 = vld [vmem:[#allocation17_spill] sm:$0xff]  ;;  %7359 = vtanh.f32 %v2096_v60  ;;  %v5912_v37 = vor.u32 %v7123_v21, %v5911_v16  ;;  %v2250_v49 = vadd.f32 %v2249_v57, %v417_v56 }
 0x183   :  { %4119 = vmatpush.bf16.msra.mxu2 %v6088_v38  ;;  %4092 = vmatpush.bf16.msra.mxu0 %v5816_v11  ;;  %v2164_v30 = vadd.f32 %v7887_v29, %v2150_v13  ;;  %v6167_v31 = vld [vmem:[#allocation8 + $0x320] sm:$0xf]  ;;  %v7187_v33 = vld [vmem:[#allocation8 + $0x32c] sm:$0xf0]  ;;  %v7808_v38 = vpop.f32.mrf.mxu1  ;;  %7361 = vtanh.f32 %v2166_v51  ;;  %v6040_v39 = vor.u32 %v7155_v1, %v6039_v19  ;;  %v7356_v52 = vpop.eup %7355 }
 0x184   :  { %v5767_v40 = vld [vmem:[#allocation8] sm:$0xf]  ;;  %v7087_v27 = vld [vmem:[#allocation8 + $0xc] sm:$0xf0]  ;;  %7363 = vtanh.f32 %v2236_v20  ;;  %v6168_v45 = vor.u32 %v7187_v33, %v6167_v31  ;;  %v7358_v11 = vpop.eup %7357  ;;  %v2289_v47 = vpop.f32.mrf.mxu3  ;;  %v7811_v14 = vpack.c.bf16 %v7356_v52, %v7354_v63 }
 0x185   :  { %4133 = vmatpush.bf16.msra.mxu3 %v6216_v2  ;;  %4106 = vmatpush.bf16.msra.mxu1 %v5944_v26  ;;  %v5895_v8 = vld [vmem:[#allocation8 + $0x100] sm:$0xf]  ;;  %v7119_v2 = vld [vmem:[#allocation8 + $0x10c] sm:$0xf0]  ;;  %7365 = vtanh.f32 %v2164_v30  ;;  %v5768_v55 = vor.u32 %v7087_v27, %v5767_v40 }
 0x186   :  { %v6023_v46 = vld [vmem:[#allocation8 + $0x200] sm:$0xf]  ;;  %v7151_v9 = vld [vmem:[#allocation8 + $0x20c] sm:$0xf0]  ;;  %7367 = vtanh.f32 %v2234_v34  ;;  %v5896_v32 = vor.u32 %v7119_v2, %v5895_v8 }
 0x187   :  { %4120 = vmatpush.bf16.msra.mxu2 %v6072_v6  ;;  %4093 = vmatpush.bf16.msra.mxu0 %v5800_v53  ;;  %v6151_v28 = vld [vmem:[#allocation8 + $0x300] sm:$0xf]  ;;  %v7183_v59 = vld [vmem:[#allocation8 + $0x30c] sm:$0xf0]  ;;  %v6024_v26 = vor.u32 %v7151_v9, %v6023_v46  ;;  %v2277_v30 = vpop.f32.mrf.mxu2  ;;  %v2303_v40 = vpop.f32.mrf.mxu0 }
 0x188   :  { %v6391_v18 = vld [vmem:[#allocation8 + $0x4e0] sm:$0xf]  ;;  %v7243_v54 = vld [vmem:[#allocation8 + $0x4ec] sm:$0xf0]  ;;  %v7360_v6 = vpop.eup %7359  ;;  %v6152_v0 = vor.u32 %v7183_v59, %v6151_v28 }
 0x189   :  { %4134 = vmatpush.bf16.msra.mxu3 %v6200_v22  ;;  %4107 = vmatpush.bf16.msra.mxu1 %v5928_v48  ;;  %v6519_v58 = vld [vmem:[#allocation8 + $0x5e0] sm:$0xf]  ;;  %v7275_v61 = vld [vmem:[#allocation8 + $0x5ec] sm:$0xf0]  ;;  %v6392_v50 = vor.u32 %v7243_v54, %v6391_v18  ;;  %v7362_v7 = vpop.eup %7361  ;;  %v7813_v60 = vpack.c.bf16 %v7360_v6, %v7358_v11  ;;  %v2262_v48 = vadd.f32 %v7808_v38, %v2248_v44 }
 0x18a   :  { %v6375_v22 = vld [vmem:[#allocation8 + $0x4c0] sm:$0xf]  ;;  %v7239_v43 = vld [vmem:[#allocation8 + $0x4cc] sm:$0xf0]  ;;  %v6520_v36 = vor.u32 %v7275_v61, %v6519_v58  ;;  %v7364_v25 = vpop.eup %7363 }
 0x18b   :  { %4121 = vmatpush.bf16.msra.mxu2 %v6056_v24  ;;  %4094 = vmatpush.bf16.msra.mxu0 %v5784_v35  ;;  %v6503_v41 = vld [vmem:[#allocation8 + $0x5c0] sm:$0xf]  ;;  %v7271_v13 = vld [vmem:[#allocation8 + $0x5cc] sm:$0xf0]  ;;  %v7366_v10 = vpop.eup %7365  ;;  %v6376_v53 = vor.u32 %v7239_v43, %v6375_v22  ;;  %v2263_v15 = vpop.f32.mrf.mxu1  ;;  %v2276_v31 = vadd.f32 %v2275_v5, %v2262_v48 }
 0x18c   :  { %v7368_v42 = vpop.eup %7367  ;;  %v7815_v12 = vpack.c.bf16 %v7362_v7, %v7366_v10  ;;  %v6359_v4 = vld [vmem:[#allocation8 + $0x4a0] sm:$0xf]  ;;  %v7235_v24 = vld [vmem:[#allocation8 + $0x4ac] sm:$0xf0]  ;;  %v6504_v62 = vor.u32 %v7271_v13, %v6503_v41  ;;  %v2264_v19 = vadd.f32 %v2263_v15, %v2250_v49 }
 0x18d   :  { %4135 = vmatpush.bf16.msra.mxu3 %v6184_v3  ;;  %4108 = vmatpush.bf16.msra.mxu1 %v5912_v37  ;;  %v7818_v51 = vpack.c.bf16 %v7364_v25, %v7368_v42  ;;  %v6647_v23 = vld [vmem:[#allocation8 + $0x6e0] sm:$0xf]  ;;  %v7307_v16 = vld [vmem:[#allocation8 + $0x6ec] sm:$0xf0]  ;;  %v6360_v1 = vor.u32 %v7235_v24, %v6359_v4  ;;  %v2290_v46 = vadd.f32 %v2289_v47, %v2276_v31  ;;  %v7113_v24 = vld [vmem:[#allocation8 + $0xe4] sm:$0xf] }
 0x18e   :  { %v6487_v20 = vld [vmem:[#allocation8 + $0x5a0] sm:$0xf]  ;;  %v7267_v3 = vld [vmem:[#allocation8 + $0x5ac] sm:$0xf0]  ;;  %v6648_v21 = vor.u32 %v7307_v16, %v6647_v23  ;;  %v2278_v27 = vadd.f32 %v2277_v30, %v2264_v19  ;;  %v5881_v16 = vld [vmem:[#allocation8 + $0xf0] sm:$0xf0] }
 0x18f   :  { %4122 = vmatpush.bf16.msra.mxu2 %v6040_v39  ;;  %4095 = vmatpush.bf16.msra.mxu0 %v5768_v55  ;;  %v6343_v29 = vld [vmem:[#allocation8 + $0x480] sm:$0xf]  ;;  %v7231_v33 = vld [vmem:[#allocation8 + $0x48c] sm:$0xf0]  ;;  %v6488_v34 = vor.u32 %v7267_v3, %v6487_v20  ;;  %v2304_v5 = vadd.f32 %v2303_v40, %v2290_v46  ;;  %v6009_v30 = vld [vmem:[#allocation8 + $0x1f0] sm:$0xf0] }
 0x190   :  { %v6631_v56 = vld [vmem:[#allocation8 + $0x6c0] sm:$0xf]  ;;  %v7303_v35 = vld [vmem:[#allocation8 + $0x6cc] sm:$0xf0]  ;;  %v6344_v8 = vor.u32 %v7231_v33, %v6343_v29  ;;  %v7145_v29 = vld [vmem:[#allocation8 + $0x1e4] sm:$0xf] }
 0x191   :  { %4136 = vmatpush.bf16.msra.mxu3 %v6168_v45  ;;  %4109 = vmatpush.bf16.msra.mxu1 %v5896_v32  ;;  %v6471_v38 = vld [vmem:[#allocation8 + $0x580] sm:$0xf]  ;;  %v7263_v37 = vld [vmem:[#allocation8 + $0x58c] sm:$0xf0]  ;;  %v6632_v39 = vor.u32 %v7303_v35, %v6631_v56  ;;  %v2291_v45 = vpop.f32.mrf.mxu3  ;;  %7369 = vtanh.f32 %v2304_v5  ;;  %v5884_v56 = vor.u32 %v7113_v24, %v5881_v16  ;;  %v7109_v40 = vld [vmem:[#allocation8 + $0xc4] sm:$0xf] }
 0x192   :  { %4096 = vmatmul.bf16.vlgmr.msra.gmra.mxu0 %v7811_v14  ;;  %v6327_v2 = vld [vmem:[#allocation8 + $0x460] sm:$0xf]  ;;  %v7227_v9 = vld [vmem:[#allocation8 + $0x46c] sm:$0xf0]  ;;  %v6472_v28 = vor.u32 %v7263_v37, %v6471_v38  ;;  %v2292_v55 = vadd.f32 %v2291_v45, %v2278_v27  ;;  %v5865_v38 = vld [vmem:[#allocation8 + $0xd0] sm:$0xf0]  ;;  %v6012_v37 = vor.u32 %v7145_v29, %v6009_v30 }
 0x193   :  { %4123 = vmatpush.bf16.msra.mxu2 %v6024_v26  ;;  %4144 = vmatpush.bf16.msrb.mxu0 %v6392_v50  ;;  %v6615_v63 = vld [vmem:[#allocation8 + $0x6a0] sm:$0xf]  ;;  %v7299_v59 = vld [vmem:[#allocation8 + $0x6ac] sm:$0xf0]  ;;  %v6328_v58 = vor.u32 %v7227_v9, %v6327_v2  ;;  %v2317_v41 = vpop.f32.mrf.mxu1  ;;  %v5993_v45 = vld [vmem:[#allocation8 + $0x1d0] sm:$0xf0] }
 0x194   :  { %4110 = vmatmul.bf16.vlgmr.msra.gmra.mxu1 %v7813_v60  ;;  %v6455_v18 = vld [vmem:[#allocation8 + $0x560] sm:$0xf]  ;;  %v7259_v54 = vld [vmem:[#allocation8 + $0x56c] sm:$0xf0]  ;;  %v6616_v52 = vor.u32 %v7299_v59, %v6615_v63  ;;  %v5868_v59 = vor.u32 %v7109_v40, %v5865_v38  ;;  %v7097_v24 = vld [vmem:[#allocation8 + $0x64] sm:$0xf] }
 0x195   :  { %4137 = vmatpush.bf16.msra.mxu3 %v6152_v0  ;;  %4158 = vmatpush.bf16.msrb.mxu1 %v6520_v36  ;;  %v6311_v61 = vld [vmem:[#allocation8 + $0x440] sm:$0xf]  ;;  %v7223_v11 = vld [vmem:[#allocation8 + $0x44c] sm:$0xf0]  ;;  %v6456_v32 = vor.u32 %v7259_v54, %v6455_v18  ;;  %v2305_v0 = vpop.f32.mrf.mxu0  ;;  %v7105_v18 = vld [vmem:[#allocation8 + $0xa4] sm:$0xf] }
 0x196   :  { %4124 = vmatmul.bf16.vlgmr.msra.gmra.mxu2 %v7815_v12  ;;  %v6599_v26 = vld [vmem:[#allocation8 + $0x680] sm:$0xf]  ;;  %v7295_v6 = vld [vmem:[#allocation8 + $0x68c] sm:$0xf0]  ;;  %v2306_v44 = vadd.f32 %v2305_v0, %v2292_v55  ;;  %v6312_v22 = vor.u32 %v7223_v11, %v6311_v61  ;;  %v5849_v54 = vld [vmem:[#allocation8 + $0xb0] sm:$0xf0] }
 0x197   :  { %4145 = vmatpush.bf16.msrb.mxu0 %v6376_v53  ;;  %4172 = vmatpush.bf16.msrb.mxu2 %v6648_v21  ;;  %v6439_v50 = vld [vmem:[#allocation8 + $0x540] sm:$0xf]  ;;  %v7255_v57 = vld [vmem:[#allocation8 + $0x54c] sm:$0xf0]  ;;  %v6600_v7 = vor.u32 %v7295_v6, %v6599_v26  ;;  %v7370_v19 = vpop.eup %7369  ;;  %v7177_v61 = vld [vmem:[#allocation8 + $0x2e4] sm:$0xf] }
 0x198   :  { %4138 = vmatmul.bf16.vlgmr.msra.gmra.mxu3 %v7818_v51  ;;  %v6295_v43 = vld [vmem:[#allocation8 + $0x420] sm:$0xf]  ;;  %v7219_v36 = vld [vmem:[#allocation8 + $0x42c] sm:$0xf0]  ;;  %v6440_v25 = vor.u32 %v7255_v57, %v6439_v50  ;;  %7371 = vtanh.f32 %v2306_v44  ;;  %v7137_v11 = vld [vmem:[#allocation8 + $0x1a4] sm:$0xf]  ;;  %v5852_v57 = vor.u32 %v7105_v18, %v5849_v54 }
 0x199   :  { %4159 = vmatpush.bf16.msrb.mxu1 %v6504_v62  ;;  %v6583_v13 = vld [vmem:[#allocation8 + $0x660] sm:$0xf]  ;;  %v7291_v47 = vld [vmem:[#allocation8 + $0x66c] sm:$0xf0]  ;;  %v6296_v53 = vor.u32 %v7219_v36, %v6295_v43  ;;  %v6137_v6 = vld [vmem:[#allocation8 + $0x2f0] sm:$0xf0] }
 0x19a   :  { %v6423_v10 = vld [vmem:[#allocation8 + $0x520] sm:$0xf]  ;;  %v7251_v49 = vld [vmem:[#allocation8 + $0x52c] sm:$0xf0]  ;;  %v6584_v42 = vor.u32 %v7291_v47, %v6583_v13  ;;  %v6140_v0 = vor.u32 %v7177_v61, %v6137_v6  ;;  %v5833_v44 = vld [vmem:[#allocation8 + $0x90] sm:$0xf0] }
 0x19b   :  { %4146 = vmatpush.bf16.msrb.mxu0 %v6360_v1  ;;  %4173 = vmatpush.bf16.msrb.mxu2 %v6632_v39  ;;  %v6279_v4 = vld [vmem:[#allocation8 + $0x400] sm:$0xf]  ;;  %v7215_v15 = vld [vmem:[#allocation8 + $0x40c] sm:$0xf0]  ;;  %v6424_v48 = vor.u32 %v7251_v49, %v6423_v10  ;;  %v418_v1 = vperm.slane %v7749_v17, 5  ;;  %v2319_v2 = vpop.f32.mrf.mxu1 }
 0x19c   :  { %v6567_v62 = vld [vmem:[#allocation8 + $0x640] sm:$0xf]  ;;  %v7287_v23 = vld [vmem:[#allocation8 + $0x64c] sm:$0xf0]  ;;  %v6280_v33 = vor.u32 %v7215_v15, %v6279_v4  ;;  %v7141_v39 = vld [vmem:[#allocation8 + $0x1c4] sm:$0xf] }
 0x19d   :  { %4160 = vmatpush.bf16.msrb.mxu1 %v6488_v34  ;;  %v6407_v20 = vld [vmem:[#allocation8 + $0x500] sm:$0xf]  ;;  %v7247_v3 = vld [vmem:[#allocation8 + $0x50c] sm:$0xf0]  ;;  %v6568_v21 = vor.u32 %v7287_v23, %v6567_v62  ;;  %v2331_v34 = vpop.f32.mrf.mxu2  ;;  %v2318_v27 = vadd.f32 %v2317_v41, %v418_v1  ;;  %v2320_v50 = vadd.f32 %v2319_v2, %v418_v1  ;;  %v7133_v13 = vld [vmem:[#allocation8 + $0x184] sm:$0xf] }
 0x19e   :  { %v7372_v31 = vpop.eup %7371  ;;  %v6408_v35 = vor.u32 %v7247_v3, %v6407_v20  ;;  %v6551_v46 = vld [vmem:[#allocation8 + $0x620] sm:$0xf]  ;;  %v7283_v9 = vld [vmem:[#allocation8 + $0x62c] sm:$0xf0]  ;;  %v5961_v47 = vld [vmem:[#allocation8 + $0x190] sm:$0xf0] }
 0x19f   :  { %4147 = vmatpush.bf16.msrb.mxu0 %v6344_v8  ;;  %4174 = vmatpush.bf16.msrb.mxu2 %v6616_v52  ;;  %v7825_v8 = vpack.c.bf16 %v7372_v31, %v7370_v19  ;;  %v6552_v63 = vor.u32 %v7283_v9, %v6551_v46  ;;  %v5996_v52 = vor.u32 %v7141_v39, %v5993_v45  ;;  %v6535_v55 = vld [vmem:[#allocation8 + $0x600] sm:$0xf]  ;;  %v5817_v62 = vld [vmem:[#allocation8 + $0x70] sm:$0xf0]  ;;  %v7169_v19 = vld [vmem:[#allocation8 + $0x2a4] sm:$0xf] }
 0x1a0   :  { %v2332_v5 = vadd.f32 %v2331_v34, %v2318_v27  ;;  %v6775_v36 = vld [vmem:[#allocation8 + $0x7e0] sm:$0xf]  ;;  %v5964_v16 = vor.u32 %v7133_v13, %v5961_v47  ;;  %v7129_v29 = vld [vmem:[#allocation8 + $0x164] sm:$0xf]  ;;  %v5945_v30 = vld [vmem:[#allocation8 + $0x170] sm:$0xf0] }
 0x1a1   :  { %4161 = vmatpush.bf16.msrb.mxu1 %v6472_v28  ;;  %v2345_v28 = vpop.f32.mrf.mxu3  ;;  %v6759_v3 = vld [vmem:[#allocation8 + $0x7c0] sm:$0xf]  ;;  %v7093_v40 = vld [vmem:[#allocation8 + $0x44] sm:$0xf]  ;;  %v5801_v38 = vld [vmem:[#allocation8 + $0x50] sm:$0xf0] }
 0x1a2   :  { %v2346_v41 = vadd.f32 %v2345_v28, %v2332_v5  ;;  %v6743_v39 = vld [vmem:[#allocation8 + $0x7a0] sm:$0xf]  ;;  %v7331_v27 = vld [vmem:[#allocation8 + $0x7ac] sm:$0xf0]  ;;  %v7125_v45 = vld [vmem:[#allocation8 + $0x144] sm:$0xf]  ;;  %v5804_v54 = vor.u32 %v7093_v40, %v5801_v38 }
 0x1a3   :  { %4148 = vmatpush.bf16.msrb.mxu0 %v6328_v58  ;;  %4175 = vmatpush.bf16.msrb.mxu2 %v6600_v7  ;;  %v7279_v58 = vld [vmem:[#allocation8 + $0x60c] sm:$0xf0]  ;;  %v7101_v7 = vld [vmem:[#allocation8 + $0x84] sm:$0xf]  ;;  %v5929_v46 = vld [vmem:[#allocation8 + $0x150] sm:$0xf0]  ;;  %v6744_v9 = vor.u32 %v7331_v27, %v6743_v39 }
 0x1a4   :  { %v6536_v26 = vor.u32 %v7279_v58, %v6535_v55  ;;  %v5836_v4 = vor.u32 %v7101_v7, %v5833_v44  ;;  %v7089_v55 = vld [vmem:[#allocation8 + $0x24] sm:$0xf]  ;;  %v5785_v58 = vld [vmem:[#allocation8 + $0x30] sm:$0xf0]  ;;  %v5932_v5 = vor.u32 %v7125_v45, %v5929_v46  ;;  %v6711_v13 = vld [vmem:[#allocation8 + $0x760] sm:$0xf] }
 0x1a5   :  { %4162 = vmatpush.bf16.msrb.mxu1 %v6456_v32  ;;  %v5977_v32 = vld [vmem:[#allocation8 + $0x1b0] sm:$0xf0]  ;;  %v2333_v43 = vpop.f32.mrf.mxu2  ;;  %v7323_v47 = vld [vmem:[#allocation8 + $0x76c] sm:$0xf0]  ;;  %v419_v38 = vperm.slane %v7749_v17, 6 }
 0x1a6   :  { %v2359_v49 = vpop.f32.mrf.mxu0  ;;  %v6073_v7 = vld [vmem:[#allocation8 + $0x270] sm:$0xf0]  ;;  %v7233_v45 = vld [vmem:[#allocation8 + $0x4a4] sm:$0xf] }
 0x1a7   :  { %4149 = vmatpush.bf16.msrb.mxu0 %v6312_v22  ;;  %4176 = vmatpush.bf16.msrb.mxu2 %v6584_v42  ;;  %v5980_v22 = vor.u32 %v7137_v11, %v5977_v32  ;;  %v7173_v42 = vld [vmem:[#allocation8 + $0x2c4] sm:$0xf]  ;;  %v2373_v15 = vpop.f32.mrf.mxu1  ;;  %v2360_v1 = vadd.f32 %v2359_v49, %v2346_v41  ;;  %v6727_v11 = vld [vmem:[#allocation8 + $0x780] sm:$0xf]  ;;  %v7327_v32 = vld [vmem:[#allocation8 + $0x78c] sm:$0xf0] }
 0x1a8   :  { %v7241_v41 = vld [vmem:[#allocation8 + $0x4e4] sm:$0xf]  ;;  %v6041_v40 = vld [vmem:[#allocation8 + $0x230] sm:$0xf0] }
 0x1a9   :  { %4163 = vmatpush.bf16.msrb.mxu1 %v6440_v25  ;;  %v7339_v25 = vld [vmem:[#allocation8 + $0x7ec] sm:$0xf0]  ;;  %v2347_v20 = vpop.f32.mrf.mxu3  ;;  %v2374_v2 = vadd.f32 %v2373_v15, %v2360_v1  ;;  %v7117_v49 = vld [vmem:[#allocation8 + $0x104] sm:$0xf]  ;;  %v6057_v15 = vld [vmem:[#allocation8 + $0x250] sm:$0xf0] }
 0x1aa   :  { %v6776_v10 = vor.u32 %v7339_v25, %v6775_v36  ;;  %v5769_v36 = vld [vmem:[#allocation8 + $0x10] sm:$0xf0] }
 0x1ab   :  { %4150 = vmatpush.bf16.msrb.mxu0 %v6296_v53  ;;  %4177 = vmatpush.bf16.msrb.mxu2 %v6568_v21  ;;  %v6121_v53 = vld [vmem:[#allocation8 + $0x2d0] sm:$0xf0]  ;;  %v7335_v21 = vld [vmem:[#allocation8 + $0x7cc] sm:$0xf0]  ;;  %7373 = vtanh.f32 %v2374_v2 }
 0x1ac   :  { %4186 = vmatpush.bf16.msrb.mxu3 %v6776_v10  ;;  %v6124_v23 = vor.u32 %v7173_v42, %v6121_v53  ;;  %v6760_v31 = vor.u32 %v7335_v21, %v6759_v3  ;;  %v6393_v10 = vld [vmem:[#allocation8 + $0x4f0] sm:$0xf0]  ;;  %v6712_v53 = vor.u32 %v7323_v47, %v6711_v13 }
 0x1ad   :  { %4164 = vmatpush.bf16.msrb.mxu1 %v6424_v48  ;;  %v2334_v48 = vadd.f32 %v2333_v43, %v2320_v50  ;;  %v5913_v50 = vld [vmem:[#allocation8 + $0x130] sm:$0xf0]  ;;  %v7085_v43 = vld [vmem:[#allocation8 + $0x4] sm:$0xf]  ;;  %v6396_v3 = vor.u32 %v7241_v41, %v6393_v10 }
 0x1ae   :  { %v2361_v28 = vpop.f32.mrf.mxu0  ;;  %v5897_v42 = vld [vmem:[#allocation8 + $0x110] sm:$0xf0]  ;;  %v7225_v41 = vld [vmem:[#allocation8 + $0x464] sm:$0xf] }
 0x1af   :  { %4151 = vmatpush.bf16.msrb.mxu0 %v6280_v33  ;;  %4178 = vmatpush.bf16.msrb.mxu2 %v6552_v63  ;;  %v6105_v33 = vld [vmem:[#allocation8 + $0x2b0] sm:$0xf0]  ;;  %v7165_v63 = vld [vmem:[#allocation8 + $0x284] sm:$0xf]  ;;  %v5900_v21 = vor.u32 %v7117_v49, %v5897_v42 }
 0x1b0   :  { %v6108_v34 = vor.u32 %v7169_v19, %v6105_v33  ;;  %4187 = vmatpush.bf16.msrb.mxu3 %v6760_v31  ;;  %v7237_v19 = vld [vmem:[#allocation8 + $0x4c4] sm:$0xf]  ;;  %v7319_v31 = vld [vmem:[#allocation8 + $0x74c] sm:$0xf0]  ;;  %v6505_v39 = vld [vmem:[#allocation8 + $0x5d0] sm:$0xf0] }
 0x1b1   :  { %4165 = vmatpush.bf16.msrb.mxu1 %v6408_v35  ;;  %v2348_v35 = vadd.f32 %v2347_v20, %v2334_v48  ;;  %v7374_v48 = vpop.eup %7373  ;;  %v6361_v46 = vld [vmem:[#allocation8 + $0x4b0] sm:$0xf0]  ;;  %v7205_v49 = vld [vmem:[#allocation8 + $0x3c4] sm:$0xf] }
 0x1b2   :  { %4152 = vmatmul.bf16.vlgmr.msrb.gmra.mxu0 %v7825_v8  ;;  %v6329_v10 = vld [vmem:[#allocation8 + $0x470] sm:$0xf0] }
 0x1b3   :  { %4200 = vmatpush.bf16.msra.mxu0 %v5884_v56  ;;  %4179 = vmatpush.bf16.msrb.mxu2 %v6536_v26  ;;  %v5820_v56 = vor.u32 %v7097_v24, %v5817_v62  ;;  %v2362_v18 = vadd.f32 %v2361_v28, %v2348_v35  ;;  %v7161_v26 = vld [vmem:[#allocation8 + $0x264] sm:$0xf]  ;;  %v5772_v24 = vor.u32 %v7085_v43, %v5769_v36  ;;  %v6473_v43 = vld [vmem:[#allocation8 + $0x590] sm:$0xf0] }
 0x1b4   :  { %4188 = vmatpush.bf16.msrb.mxu3 %v6744_v9  ;;  %v6076_v44 = vor.u32 %v7161_v26, %v6073_v7  ;;  %v7153_v35 = vld [vmem:[#allocation8 + $0x224] sm:$0xf]  ;;  %v6679_v9 = vld [vmem:[#allocation8 + $0x720] sm:$0xf]  ;;  %v6249_v42 = vld [vmem:[#allocation8 + $0x3d0] sm:$0xf0] }
 0x1b5   :  { %4214 = vmatpush.bf16.msra.mxu1 %v6012_v37  ;;  %v5948_v37 = vor.u32 %v7129_v29, %v5945_v30  ;;  %v6377_v29 = vld [vmem:[#allocation8 + $0x4d0] sm:$0xf0]  ;;  %v6695_v30 = vld [vmem:[#allocation8 + $0x740] sm:$0xf]  ;;  %v6044_v27 = vor.u32 %v7153_v35, %v6041_v40 }
 0x1b6   :  { %v6380_v2 = vor.u32 %v7237_v19, %v6377_v29  ;;  %v7201_v19 = vld [vmem:[#allocation8 + $0x3a4] sm:$0xf]  ;;  %v6441_v35 = vld [vmem:[#allocation8 + $0x550] sm:$0xf0] }
 0x1b7   :  { %4201 = vmatpush.bf16.msra.mxu0 %v5868_v59  ;;  %4228 = vmatpush.bf16.msra.mxu2 %v6140_v0  ;;  %v6089_v59 = vld [vmem:[#allocation8 + $0x290] sm:$0xf0]  ;;  %v7121_v0 = vld [vmem:[#allocation8 + $0x124] sm:$0xf]  ;;  %v2387_v62 = vpop.f32.mrf.mxu2 }
 0x1b8   :  { %v6092_v61 = vor.u32 %v7165_v63, %v6089_v59  ;;  %v5916_v25 = vor.u32 %v7121_v0, %v5913_v50  ;;  %v7315_v63 = vld [vmem:[#allocation8 + $0x72c] sm:$0xf0]  ;;  %v7149_v59 = vld [vmem:[#allocation8 + $0x204] sm:$0xf] }
 0x1b9   :  { %4215 = vmatpush.bf16.msra.mxu1 %v5996_v52  ;;  %v2375_v52 = vpop.f32.mrf.mxu1  ;;  %v2401_v28 = vpop.f32.mrf.mxu3  ;;  %v7311_v0 = vld [vmem:[#allocation8 + $0x70c] sm:$0xf0]  ;;  %v7209_v50 = vld [vmem:[#allocation8 + $0x3e4] sm:$0xf] }
 0x1ba   :  { %v2376_v6 = vadd.f32 %v2375_v52, %v2362_v18  ;;  %v6025_v18 = vld [vmem:[#allocation8 + $0x210] sm:$0xf0]  ;;  %v7265_v52 = vld [vmem:[#allocation8 + $0x5a4] sm:$0xf] }
 0x1bb   :  { %4202 = vmatpush.bf16.msra.mxu0 %v5852_v57  ;;  %4229 = vmatpush.bf16.msra.mxu2 %v6124_v23  ;;  %v6728_v57 = vor.u32 %v7327_v32, %v6727_v11  ;;  %v7273_v23 = vld [vmem:[#allocation8 + $0x5e4] sm:$0xf]  ;;  %v6345_v11 = vld [vmem:[#allocation8 + $0x490] sm:$0xf0]  ;;  %v2388_v32 = vadd.f32 %v2387_v62, %v419_v38 }
 0x1bc   :  { %7375 = vtanh.f32 %v2376_v6  ;;  %v6663_v6 = vld [vmem:[#allocation8 + $0x700] sm:$0xf]  ;;  %v7257_v62 = vld [vmem:[#allocation8 + $0x564] sm:$0xf] }
 0x1bd   :  { %4216 = vmatpush.bf16.msra.mxu1 %v5980_v22  ;;  %v5788_v22 = vor.u32 %v7089_v55, %v5785_v58  ;;  %4189 = vmatpush.bf16.msrb.mxu3 %v6728_v57  ;;  %v6489_v55 = vld [vmem:[#allocation8 + $0x5b0] sm:$0xf0]  ;;  %v6028_v58 = vor.u32 %v7149_v59, %v6025_v18  ;;  %v6664_v7 = vor.u32 %v7311_v0, %v6663_v6  ;;  %v7249_v59 = vld [vmem:[#allocation8 + $0x524] sm:$0xf] }
 0x1be   :  { %v6492_v57 = vor.u32 %v7265_v52, %v6489_v55  ;;  %v2402_v13 = vadd.f32 %v2401_v28, %v2388_v32  ;;  %v6425_v18 = vld [vmem:[#allocation8 + $0x530] sm:$0xf0]  ;;  %v5887_v32 = vld [vmem:[#allocation8 + $0xe8] sm:$0xf] }
 0x1bf   :  { %4203 = vmatpush.bf16.msra.mxu0 %v5836_v4  ;;  %4230 = vmatpush.bf16.msra.mxu2 %v6108_v34  ;;  %v7157_v4 = vld [vmem:[#allocation8 + $0x244] sm:$0xf]  ;;  %v2389_v26 = vpop.f32.mrf.mxu2  ;;  %v6281_v55 = vld [vmem:[#allocation8 + $0x410] sm:$0xf0] }
 0x1c0   :  { %v6060_v20 = vor.u32 %v7157_v4, %v6057_v15 }
 0x1c1   :  { %4217 = vmatpush.bf16.msra.mxu1 %v5964_v16  ;;  %v6521_v16 = vld [vmem:[#allocation8 + $0x5f0] sm:$0xf0]  ;;  %4190 = vmatpush.bf16.msrb.mxu3 %v6712_v53  ;;  %v2390_v53 = vadd.f32 %v2389_v26, %v419_v38  ;;  %v7217_v38 = vld [vmem:[#allocation8 + $0x424] sm:$0xf]  ;;  %v7116_v26 = vld [vmem:[#allocation8 + $0xf4] sm:$0xf0] }
 0x1c2   :  { %v7376_v1 = vpop.eup %7375  ;;  %v6524_v34 = vor.u32 %v7273_v23, %v6521_v16  ;;  %v6457_v23 = vld [vmem:[#allocation8 + $0x570] sm:$0xf0]  ;;  %v6332_v16 = vor.u32 %v7225_v41, %v6329_v10 }
 0x1c3   :  { %4204 = vmatpush.bf16.msra.mxu0 %v5820_v56  ;;  %4231 = vmatpush.bf16.msra.mxu2 %v6092_v61  ;;  %v7828_v33 = vpack.c.bf16 %v7376_v1, %v7374_v48  ;;  %v6696_v56 = vor.u32 %v7319_v31, %v6695_v30  ;;  %v6364_v61 = vor.u32 %v7233_v45, %v6361_v46  ;;  %v6233_v1 = vld [vmem:[#allocation8 + $0x3b0] sm:$0xf0] }
 0x1c4   :  { %v6252_v48 = vor.u32 %v7205_v49, %v6249_v42  ;;  %v6460_v30 = vor.u32 %v7257_v62, %v6457_v23  ;;  %v6236_v31 = vor.u32 %v7201_v19, %v6233_v1  ;;  %v6217_v45 = vld [vmem:[#allocation8 + $0x390] sm:$0xf0]  ;;  %v7185_v23 = vld [vmem:[#allocation8 + $0x324] sm:$0xf] }
 0x1c5   :  { %4218 = vmatpush.bf16.msra.mxu1 %v5948_v37  ;;  %v7269_v37 = vld [vmem:[#allocation8 + $0x5c4] sm:$0xf]  ;;  %4191 = vmatpush.bf16.msrb.mxu3 %v6696_v56  ;;  %v6185_v10 = vld [vmem:[#allocation8 + $0x350] sm:$0xf0] }
 0x1c6   :  { %4166 = vmatmul.bf16.vlgmr.msrb.gmra.mxu1 %v7828_v33  ;;  %v6508_v17 = vor.u32 %v7269_v37, %v6505_v39  ;;  %v2415_v47 = vpop.f32.mrf.mxu0  ;;  %v7253_v56 = vld [vmem:[#allocation8 + $0x544] sm:$0xf]  ;;  %v6649_v62 = vld [vmem:[#allocation8 + $0x6f0] sm:$0xf0] }
 0x1c7   :  { %4205 = vmatpush.bf16.msra.mxu0 %v5804_v54  ;;  %4232 = vmatpush.bf16.msra.mxu2 %v6076_v44  ;;  %v6680_v54 = vor.u32 %v7315_v63, %v6679_v9  ;;  %v6265_v44 = vld [vmem:[#allocation8 + $0x3f0] sm:$0xf0]  ;;  %v2429_v4 = vpop.f32.mrf.mxu1  ;;  %v6444_v9 = vor.u32 %v7253_v56, %v6441_v35 }
 0x1c8   :  { %v6268_v36 = vor.u32 %v7209_v50, %v6265_v44  ;;  %v7245_v50 = vld [vmem:[#allocation8 + $0x504] sm:$0xf] }
 0x1c9   :  { %4219 = vmatpush.bf16.msra.mxu1 %v5932_v5  ;;  %v7229_v5 = vld [vmem:[#allocation8 + $0x484] sm:$0xf]  ;;  %4192 = vmatpush.bf16.msrb.mxu3 %v6680_v54 }
 0x1ca   :  { %v7213_v54 = vld [vmem:[#allocation8 + $0x404] sm:$0xf] }
 0x1cb   :  { %4206 = vmatpush.bf16.msra.mxu0 %v5788_v22  ;;  %4233 = vmatpush.bf16.msra.mxu2 %v6060_v20  ;;  %v7261_v22 = vld [vmem:[#allocation8 + $0x584] sm:$0xf]  ;;  %v6284_v44 = vor.u32 %v7213_v54, %v6281_v55  ;;  %v7402_v54 = vld [vmem:[#allocation7] sm:$0xff]  ;;  %v5823_v55 = vld [vmem:[#allocation8 + $0x68] sm:$0xf] }
 0x1cc   :  { %v6476_v15 = vor.u32 %v7261_v22, %v6473_v43  ;;  %v7221_v20 = vld [vmem:[#allocation8 + $0x444] sm:$0xf]  ;;  %v6015_v22 = vld [vmem:[#allocation8 + $0x1e8] sm:$0xf]  ;;  %v7148_v43 = vld [vmem:[#allocation8 + $0x1f4] sm:$0xf0] }
 0x1cd   :  { %4220 = vmatpush.bf16.msra.mxu1 %v5916_v25  ;;  %v6348_v25 = vor.u32 %v7229_v5, %v6345_v11  ;;  %4193 = vmatpush.bf16.msrb.mxu3 %v6664_v7  ;;  %v6428_v11 = vor.u32 %v7249_v59, %v6425_v18  ;;  %v6016_v49 = vor.u32 %v7148_v43, %v6015_v22  ;;  %v7297_v18 = vld [vmem:[#allocation8 + $0x6a4] sm:$0xf]  ;;  %v5807_v22 = vld [vmem:[#allocation8 + $0x48] sm:$0xf]  ;;  %v7096_v43 = vld [vmem:[#allocation8 + $0x54] sm:$0xf0] }
 0x1ce   :  { %v2417_v39 = vpop.f32.mrf.mxu0 }
 0x1cf   :  { %4207 = vmatpush.bf16.msra.mxu0 %v5772_v24  ;;  %4234 = vmatpush.bf16.msra.mxu2 %v6044_v27  ;;  %v2403_v24 = vpop.f32.mrf.mxu3  ;;  %v6297_v27 = vld [vmem:[#allocation8 + $0x430] sm:$0xf0]  ;;  %v2431_v63 = vpop.f32.mrf.mxu1 }
 0x1d0   :  { %v2404_v29 = vadd.f32 %v2403_v24, %v2390_v53  ;;  %v5999_v53 = vld [vmem:[#allocation8 + $0x1c8] sm:$0xf]  ;;  %v7305_v24 = vld [vmem:[#allocation8 + $0x6e4] sm:$0xf] }
 0x1d1   :  { %4221 = vmatpush.bf16.msra.mxu1 %v5900_v21  ;;  %4242 = vmatpush.bf16.msra.mxu3 %v6268_v36  ;;  %v6313_v21 = vld [vmem:[#allocation8 + $0x450] sm:$0xf0]  ;;  %v5888_v36 = vor.u32 %v7116_v26, %v5887_v32  ;;  %v5951_v26 = vld [vmem:[#allocation8 + $0x168] sm:$0xf] }
 0x1d2   :  { %4208 = vmatmul.bf16.vlgmr.msra.gmra.mxu0 %v7811_v14  ;;  %v6316_v40 = vor.u32 %v7221_v20, %v6313_v21  ;;  %v2418_v46 = vadd.f32 %v2417_v39, %v2404_v29  ;;  %v7108_v20 = vld [vmem:[#allocation8 + $0xb4] sm:$0xf0] }
 0x1d3   :  { %4256 = vmatpush.bf16.msrb.mxu0 %v6396_v3  ;;  %4235 = vmatpush.bf16.msra.mxu2 %v6028_v58  ;;  %v2416_v3 = vadd.f32 %v2415_v47, %v2402_v13  ;;  %v7193_v58 = vld [vmem:[#allocation8 + $0x364] sm:$0xf]  ;;  %v5871_v13 = vld [vmem:[#allocation8 + $0xc8] sm:$0xf]  ;;  %v7112_v47 = vld [vmem:[#allocation8 + $0xd4] sm:$0xf0] }
 0x1d4   :  { %v2432_v5 = vadd.f32 %v2431_v63, %v2418_v46  ;;  %v7104_v39 = vld [vmem:[#allocation8 + $0x94] sm:$0xf0] }
 0x1d5   :  { %4270 = vmatpush.bf16.msrb.mxu1 %v6524_v34  ;;  %4243 = vmatpush.bf16.msra.mxu3 %v6252_v48  ;;  %v2443_v34 = vpop.f32.mrf.mxu2  ;;  %v2430_v37 = vadd.f32 %v2429_v4, %v2416_v3  ;;  %v7144_v4 = vld [vmem:[#allocation8 + $0x1d4] sm:$0xf0]  ;;  %v5872_v48 = vor.u32 %v7112_v47, %v5871_v13  ;;  %v6169_v3 = vld [vmem:[#allocation8 + $0x330] sm:$0xf0]  ;;  %v5935_v13 = vld [vmem:[#allocation8 + $0x148] sm:$0xf] }
 0x1d6   :  { %4222 = vmatmul.bf16.vlgmr.msra.gmra.mxu1 %v7813_v60  ;;  %v6000_v19 = vor.u32 %v7144_v4, %v5999_v53  ;;  %v6172_v1 = vor.u32 %v7185_v23, %v6169_v3  ;;  %v7136_v63 = vld [vmem:[#allocation8 + $0x194] sm:$0xf0]  ;;  %v5791_v4 = vld [vmem:[#allocation8 + $0x28] sm:$0xf] }
 0x1d7   :  { %4257 = vmatpush.bf16.msrb.mxu0 %v6380_v2  ;;  %v7197_v2 = vld [vmem:[#allocation8 + $0x384] sm:$0xf]  ;;  %v2444_v52 = vadd.f32 %v2443_v34, %v2430_v37  ;;  %v7140_v34 = vld [vmem:[#allocation8 + $0x1b4] sm:$0xf0]  ;;  %v5839_v37 = vld [vmem:[#allocation8 + $0x88] sm:$0xf] }
 0x1d8   :  { %v6220_v28 = vor.u32 %v7197_v2, %v6217_v45  ;;  %v6153_v2 = vld [vmem:[#allocation8 + $0x310] sm:$0xf0]  ;;  %v5840_v59 = vor.u32 %v7104_v39, %v5839_v37  ;;  %v7128_v47 = vld [vmem:[#allocation8 + $0x154] sm:$0xf0]  ;;  %v5919_v3 = vld [vmem:[#allocation8 + $0x128] sm:$0xf] }
 0x1d9   :  { %4271 = vmatpush.bf16.msrb.mxu1 %v6508_v17  ;;  %4244 = vmatpush.bf16.msra.mxu3 %v6236_v31  ;;  %v6300_v17 = vor.u32 %v7217_v38, %v6297_v27  ;;  %7377 = vtanh.f32 %v2444_v52  ;;  %v5983_v31 = vld [vmem:[#allocation8 + $0x1a8] sm:$0xf]  ;;  %v6633_v38 = vld [vmem:[#allocation8 + $0x6d0] sm:$0xf0]  ;;  %v7181_v27 = vld [vmem:[#allocation8 + $0x304] sm:$0xf]  ;;  %v5936_v23 = vor.u32 %v7128_v47, %v5935_v13 }
 0x1da   :  { %v5984_v45 = vor.u32 %v7140_v34, %v5983_v31  ;;  %v6156_v46 = vor.u32 %v7181_v27, %v6153_v2  ;;  %v420_v52 = vperm.slane %v7402_v54, 7  ;;  %v5775_v34 = vld [vmem:[#allocation8 + $0x8] sm:$0xf]  ;;  %v7244_v37 = vld [vmem:[#allocation8 + $0x4f4] sm:$0xf0] }
 0x1db   :  { %4258 = vmatpush.bf16.msrb.mxu0 %v6364_v61  ;;  %v6201_v61 = vld [vmem:[#allocation8 + $0x370] sm:$0xf0]  ;;  %v5903_v2 = vld [vmem:[#allocation8 + $0x108] sm:$0xf] }
 0x1dc   :  { %v6204_v6 = vor.u32 %v7193_v58, %v6201_v61  ;;  %v7100_v58 = vld [vmem:[#allocation8 + $0x74] sm:$0xf0]  ;;  %v6527_v54 = vld [vmem:[#allocation8 + $0x5e8] sm:$0xf] }
 0x1dd   :  { %4272 = vmatpush.bf16.msrb.mxu1 %v6492_v57  ;;  %4245 = vmatpush.bf16.msra.mxu3 %v6220_v28  ;;  %v2445_v0 = vpop.f32.mrf.mxu2  ;;  %v6409_v57 = vld [vmem:[#allocation8 + $0x510] sm:$0xf0]  ;;  %v5967_v28 = vld [vmem:[#allocation8 + $0x188] sm:$0xf] }
 0x1de   :  { %v2446_v7 = vadd.f32 %v2445_v0, %v2432_v5  ;;  %v6412_v41 = vor.u32 %v7245_v50, %v6409_v57  ;;  %v5824_v0 = vor.u32 %v7100_v58, %v5823_v55  ;;  %v7293_v50 = vld [vmem:[#allocation8 + $0x684] sm:$0xf]  ;;  %v6601_v57 = vld [vmem:[#allocation8 + $0x690] sm:$0xf0] }
 0x1df   :  { %4259 = vmatpush.bf16.msrb.mxu0 %v6348_v25  ;;  %v7189_v25 = vld [vmem:[#allocation8 + $0x344] sm:$0xf]  ;;  %v7378_v21 = vpop.eup %7377 }
 0x1e0   :  { %7379 = vtanh.f32 %v2446_v7  ;;  %v6188_v42 = vor.u32 %v7189_v25, %v6185_v10  ;;  %v5808_v10 = vor.u32 %v7096_v43, %v5807_v22  ;;  %v6511_v22 = vld [vmem:[#allocation8 + $0x5c8] sm:$0xf]  ;;  %v7272_v43 = vld [vmem:[#allocation8 + $0x5d4] sm:$0xf0] }
 0x1e1   :  { %4273 = vmatpush.bf16.msrb.mxu1 %v6476_v15  ;;  %4246 = vmatpush.bf16.msra.mxu3 %v6204_v6  ;;  %v2457_v15 = vpop.f32.mrf.mxu3  ;;  %v7132_v6 = vld [vmem:[#allocation8 + $0x174] sm:$0xf0]  ;;  %v6512_v47 = vor.u32 %v7272_v43, %v6511_v22  ;;  %v7321_v22 = vld [vmem:[#allocation8 + $0x764] sm:$0xf]  ;;  %v6713_v43 = vld [vmem:[#allocation8 + $0x770] sm:$0xf0] }
 0x1e2   :  { %v2458_v7 = vadd.f32 %v2457_v15, %v420_v52 }
 0x1e3   :  { %4260 = vmatpush.bf16.msrb.mxu0 %v6332_v16  ;;  %v5855_v16 = vld [vmem:[#allocation8 + $0xa8] sm:$0xf] }
 0x1e4   :  { %v5856_v35 = vor.u32 %v7108_v20, %v5855_v16 }
 0x1e5   :  { %4274 = vmatpush.bf16.msrb.mxu1 %v6460_v30  ;;  %4247 = vmatpush.bf16.msra.mxu3 %v6188_v42  ;;  %v6652_v30 = vor.u32 %v7305_v24, %v6649_v62  ;;  %v6585_v42 = vld [vmem:[#allocation8 + $0x670] sm:$0xf0] }
 0x1e6   :  { %v7380_v29 = vpop.eup %7379 }
 0x1e7   :  { %4261 = vmatpush.bf16.msrb.mxu0 %v6316_v40  ;;  %v7836_v56 = vpack.c.bf16 %v7380_v29, %v7378_v21  ;;  %v7301_v40 = vld [vmem:[#allocation8 + $0x6c4] sm:$0xf]  ;;  %v7124_v21 = vld [vmem:[#allocation8 + $0x134] sm:$0xf0] }
 0x1e8   :  { %v7285_v29 = vld [vmem:[#allocation8 + $0x644] sm:$0xf] }
 0x1e9   :  { %4275 = vmatpush.bf16.msrb.mxu1 %v6444_v9  ;;  %4248 = vmatpush.bf16.msra.mxu3 %v6172_v1  ;;  %v6636_v9 = vor.u32 %v7301_v40, %v6633_v38  ;;  %v2459_v61 = vpop.f32.mrf.mxu3  ;;  %v5920_v40 = vor.u32 %v7124_v21, %v5919_v3  ;;  %v6399_v38 = vld [vmem:[#allocation8 + $0x4e8] sm:$0xf]  ;;  %v7333_v21 = vld [vmem:[#allocation8 + $0x7c4] sm:$0xf] }
 0x1ea   :  { %4180 = vmatmul.bf16.vlgmr.msrb.gmra.mxu2 %v7836_v56  ;;  %v2460_v24 = vadd.f32 %v2459_v61, %v420_v52  ;;  %v7276_v52 = vld [vmem:[#allocation8 + $0x5f4] sm:$0xf0]  ;;  %v6383_v61 = vld [vmem:[#allocation8 + $0x4c8] sm:$0xf] }
 0x1eb   :  { %4262 = vmatpush.bf16.msrb.mxu0 %v6300_v17  ;;  %4284 = vmatpush.bf16.msrb.mxu2 %v6652_v30  ;;  %v6617_v17 = vld [vmem:[#allocation8 + $0x6b0] sm:$0xf0] }
 0x1ec   :  { %v6620_v32 = vor.u32 %v7297_v18, %v6617_v17  ;;  %v6569_v30 = vld [vmem:[#allocation8 + $0x650] sm:$0xf0]  ;;  %v6400_v17 = vor.u32 %v7244_v37, %v6399_v38  ;;  %v6479_v38 = vld [vmem:[#allocation8 + $0x588] sm:$0xf]  ;;  %v7264_v37 = vld [vmem:[#allocation8 + $0x594] sm:$0xf0] }
 0x1ed   :  { %4276 = vmatpush.bf16.msrb.mxu1 %v6428_v11  ;;  %4249 = vmatpush.bf16.msra.mxu3 %v6156_v46  ;;  %v5968_v11 = vor.u32 %v7136_v63, %v5967_v28  ;;  %v6572_v27 = vor.u32 %v7285_v29, %v6569_v30  ;;  %v7281_v28 = vld [vmem:[#allocation8 + $0x624] sm:$0xf]  ;;  %v6553_v63 = vld [vmem:[#allocation8 + $0x630] sm:$0xf0] }
 0x1ef   :  { %4263 = vmatpush.bf16.msrb.mxu0 %v6284_v44  ;;  %v2471_v5 = vpop.f32.mrf.mxu0  ;;  %4285 = vmatpush.bf16.msrb.mxu2 %v6636_v9 }
 0x1f0   :  { %v2472_v25 = vadd.f32 %v2471_v5, %v2458_v7  ;;  %v7240_v5 = vld [vmem:[#allocation8 + $0x4d4] sm:$0xf0] }
 0x1f1   :  { %4277 = vmatpush.bf16.msrb.mxu1 %v6412_v41  ;;  %v2485_v44 = vpop.f32.mrf.mxu1  ;;  %v6604_v41 = vor.u32 %v7293_v50, %v6601_v57  ;;  %v6537_v50 = vld [vmem:[#allocation8 + $0x610] sm:$0xf0]  ;;  %v6143_v57 = vld [vmem:[#allocation8 + $0x2e8] sm:$0xf]  ;;  %v6384_v7 = vor.u32 %v7240_v5, %v6383_v61 }
 0x1f2   :  { %4264 = vmatmul.bf16.vlgmr.msrb.gmra.mxu0 %v7825_v8  ;;  %v2486_v16 = vadd.f32 %v2485_v44, %v2472_v25  ;;  %v7180_v44 = vld [vmem:[#allocation8 + $0x2f4] sm:$0xf0]  ;;  %v6729_v61 = vld [vmem:[#allocation8 + $0x790] sm:$0xf0] }
 0x1f3   :  { %4312 = vmatpush.bf16.msra.mxu0 %v5888_v36  ;;  %v5952_v36 = vor.u32 %v7132_v6, %v5951_v26  ;;  %4286 = vmatpush.bf16.msrb.mxu2 %v6620_v32  ;;  %v6556_v32 = vor.u32 %v7281_v28, %v6553_v63  ;;  %v6528_v6 = vor.u32 %v7276_v52, %v6527_v54  ;;  %v7236_v25 = vld [vmem:[#allocation8 + $0x4b4] sm:$0xf0]  ;;  %v6095_v28 = vld [vmem:[#allocation8 + $0x288] sm:$0xf] }
 0x1f4   :  { %4278 = vmatmul.bf16.vlgmr.msrb.gmra.mxu1 %v7828_v33  ;;  %v6144_v13 = vor.u32 %v7180_v44, %v6143_v57  ;;  %v7168_v63 = vld [vmem:[#allocation8 + $0x294] sm:$0xf0] }
 0x1f5   :  { %4326 = vmatpush.bf16.msra.mxu1 %v6016_v49  ;;  %v7289_v49 = vld [vmem:[#allocation8 + $0x664] sm:$0xf]  ;;  %v7260_v54 = vld [vmem:[#allocation8 + $0x574] sm:$0xf0] }
 0x1f6   :  { %v6588_v20 = vor.u32 %v7289_v49, %v6585_v42  ;;  %v6777_v49 = vld [vmem:[#allocation8 + $0x7f0] sm:$0xf0]  ;;  %v7256_v57 = vld [vmem:[#allocation8 + $0x554] sm:$0xf0] }
 0x1f7   :  { %4313 = vmatpush.bf16.msra.mxu0 %v5872_v48  ;;  %v7092_v48 = vld [vmem:[#allocation8 + $0x34] sm:$0xf0]  ;;  %v2473_v15 = vpop.f32.mrf.mxu0  ;;  %4287 = vmatpush.bf16.msrb.mxu2 %v6604_v41 }
 0x1f8   :  { %v5792_v1 = vor.u32 %v7092_v48, %v5791_v4  ;;  %v7176_v4 = vld [vmem:[#allocation8 + $0x2d4] sm:$0xf0]  ;;  %v6351_v48 = vld [vmem:[#allocation8 + $0x488] sm:$0xf] }
 0x1f9   :  { %4327 = vmatpush.bf16.msra.mxu1 %v6000_v19  ;;  %v2499_v53 = vpop.f32.mrf.mxu2  ;;  %v2474_v19 = vadd.f32 %v2473_v15, %v2460_v24  ;;  %v2487_v39 = vpop.f32.mrf.mxu1  ;;  %v7232_v24 = vld [vmem:[#allocation8 + $0x494] sm:$0xf0] }
 0x1fa   :  { %v2500_v31 = vadd.f32 %v2499_v53, %v2486_v16  ;;  %4236 = vmatmul.bf16.vlgmr.msra.gmra.mxu2 %v7815_v12  ;;  %v6127_v53 = vld [vmem:[#allocation8 + $0x2c8] sm:$0xf]  ;;  %v7268_v15 = vld [vmem:[#allocation8 + $0x5b4] sm:$0xf0]  ;;  %v6352_v29 = vor.u32 %v7232_v24, %v6351_v48  ;;  %v6716_v48 = vor.u32 %v7321_v22, %v6713_v43  ;;  %v7138_v22 = vld [vmem:[#allocation8 + $0x1ac] sm:$0xf] }
 0x1fb   :  { %4314 = vmatpush.bf16.msra.mxu0 %v5856_v35  ;;  %v2513_v62 = vpop.f32.mrf.mxu3  ;;  %v7088_v35 = vld [vmem:[#allocation8 + $0x14] sm:$0xf0]  ;;  %4288 = vmatpush.bf16.msrb.mxu2 %v6588_v20  ;;  %v2488_v46 = vadd.f32 %v2487_v39, %v2474_v19  ;;  %v6128_v3 = vor.u32 %v7176_v4, %v6127_v53  ;;  %v6761_v19 = vld [vmem:[#allocation8 + $0x7d0] sm:$0xf0]  ;;  %v7114_v53 = vld [vmem:[#allocation8 + $0xec] sm:$0xf] }
 0x1fc   :  { %v5776_v9 = vor.u32 %v7088_v35, %v5775_v34  ;;  %v7172_v34 = vld [vmem:[#allocation8 + $0x2b4] sm:$0xf0]  ;;  %v6335_v35 = vld [vmem:[#allocation8 + $0x468] sm:$0xf]  ;;  %v6764_v39 = vor.u32 %v7333_v21, %v6761_v19  ;;  %v5889_v4 = vld [vmem:[#allocation8 + $0xf8] sm:$0xf0] }
 0x1fd   :  { %4328 = vmatpush.bf16.msra.mxu1 %v5984_v45  ;;  %v7120_v45 = vld [vmem:[#allocation8 + $0x114] sm:$0xf0]  ;;  %v5892_v21 = vor.u32 %v7114_v53, %v5889_v4  ;;  %v6415_v19 = vld [vmem:[#allocation8 + $0x508] sm:$0xf]  ;;  %v5985_v43 = vld [vmem:[#allocation8 + $0x1b8] sm:$0xf0] }
 0x1fe   :  { %v5904_v58 = vor.u32 %v7120_v45, %v5903_v2  ;;  %v7329_v2 = vld [vmem:[#allocation8 + $0x7a4] sm:$0xf]  ;;  %v6745_v45 = vld [vmem:[#allocation8 + $0x7b0] sm:$0xf0]  ;;  %v7098_v53 = vld [vmem:[#allocation8 + $0x6c] sm:$0xf] }
 0x1ff   :  { %4315 = vmatpush.bf16.msra.mxu0 %v5840_v59  ;;  %v2514_v59 = vadd.f32 %v2513_v62, %v2500_v31  ;;  %4289 = vmatpush.bf16.msrb.mxu2 %v6572_v27  ;;  %v6495_v62 = vld [vmem:[#allocation8 + $0x5a8] sm:$0xf]  ;;  %v6748_v52 = vor.u32 %v7329_v2, %v6745_v45  ;;  %v5825_v4 = vld [vmem:[#allocation8 + $0x78] sm:$0xf0] }
 0x200   :  { %v6496_v30 = vor.u32 %v7268_v15, %v6495_v62  ;;  %v6111_v31 = vld [vmem:[#allocation8 + $0x2a8] sm:$0xf]  ;;  %v7317_v62 = vld [vmem:[#allocation8 + $0x744] sm:$0xf] }
 0x201   :  { %4329 = vmatpush.bf16.msra.mxu1 %v5968_v11  ;;  %v2501_v18 = vpop.f32.mrf.mxu2  ;;  %7381 = vtanh.f32 %v2514_v59  ;;  %v6112_v27 = vor.u32 %v7172_v34, %v6111_v31  ;;  %v6319_v59 = vld [vmem:[#allocation8 + $0x448] sm:$0xf]  ;;  %v5873_v31 = vld [vmem:[#allocation8 + $0xd8] sm:$0xf0]  ;;  %v7146_v34 = vld [vmem:[#allocation8 + $0x1ec] sm:$0xf] }
 0x202   :  { %v2502_v55 = vadd.f32 %v2501_v18, %v2488_v46  ;;  %v7224_v18 = vld [vmem:[#allocation8 + $0x454] sm:$0xf0] }
 0x203   :  { %4316 = vmatpush.bf16.msra.mxu0 %v5824_v0  ;;  %v2515_v11 = vpop.f32.mrf.mxu3  ;;  %v7277_v0 = vld [vmem:[#allocation8 + $0x604] sm:$0xf]  ;;  %4290 = vmatpush.bf16.msrb.mxu2 %v6556_v32  ;;  %v6320_v5 = vor.u32 %v7224_v18, %v6319_v59  ;;  %v6079_v32 = vld [vmem:[#allocation8 + $0x268] sm:$0xf]  ;;  %v7106_v59 = vld [vmem:[#allocation8 + $0xac] sm:$0xf] }
 0x204   :  { %v2516_v26 = vadd.f32 %v2515_v11, %v2502_v55  ;;  %v6540_v41 = vor.u32 %v7277_v0, %v6537_v50  ;;  %v6096_v55 = vor.u32 %v7168_v63, %v6095_v28  ;;  %v7220_v0 = vld [vmem:[#allocation8 + $0x434] sm:$0xf0]  ;;  %v6447_v50 = vld [vmem:[#allocation8 + $0x548] sm:$0xf]  ;;  %v5857_v18 = vld [vmem:[#allocation8 + $0xb8] sm:$0xf0] }
 0x205   :  { %4330 = vmatpush.bf16.msra.mxu1 %v5952_v36  ;;  %v6367_v36 = vld [vmem:[#allocation8 + $0x4a8] sm:$0xf]  ;;  %v7308_v63 = vld [vmem:[#allocation8 + $0x6f4] sm:$0xf0] }
 0x206   :  { %7383 = vtanh.f32 %v2516_v26  ;;  %v6368_v42 = vor.u32 %v7236_v25, %v6367_v36  ;;  %v7164_v26 = vld [vmem:[#allocation8 + $0x274] sm:$0xf0]  ;;  %v6448_v25 = vor.u32 %v7256_v57, %v6447_v50  ;;  %v6655_v28 = vld [vmem:[#allocation8 + $0x6e8] sm:$0xf]  ;;  %v7102_v57 = vld [vmem:[#allocation8 + $0x8c] sm:$0xf] }
 0x207   :  { %4317 = vmatpush.bf16.msra.mxu0 %v5808_v10  ;;  %v7337_v10 = vld [vmem:[#allocation8 + $0x7e4] sm:$0xf]  ;;  %4291 = vmatpush.bf16.msrb.mxu2 %v6540_v41  ;;  %v6080_v44 = vor.u32 %v7164_v26, %v6079_v32  ;;  %v6063_v41 = vld [vmem:[#allocation8 + $0x248] sm:$0xf]  ;;  %v7212_v26 = vld [vmem:[#allocation8 + $0x3f4] sm:$0xf0] }
 0x208   :  { %v6780_v20 = vor.u32 %v7337_v10, %v6777_v49  ;;  %v7216_v10 = vld [vmem:[#allocation8 + $0x414] sm:$0xf0]  ;;  %v6431_v49 = vld [vmem:[#allocation8 + $0x528] sm:$0xf] }
 0x209   :  { %4331 = vmatpush.bf16.msra.mxu1 %v5936_v23  ;;  %v7382_v23 = vpop.eup %7381  ;;  %v6271_v32 = vld [vmem:[#allocation8 + $0x3e8] sm:$0xf]  ;;  %v7304_v50 = vld [vmem:[#allocation8 + $0x6d4] sm:$0xf0] }
 0x20a   :  { %4292 = vmatmul.bf16.vlgmr.msrb.gmra.mxu2 %v7836_v56 }
 0x20b   :  { %4318 = vmatpush.bf16.msra.mxu0 %v5792_v1  ;;  %4340 = vmatpush.bf16.msra.mxu2 %v6144_v13  ;;  %v7160_v13 = vld [vmem:[#allocation8 + $0x254] sm:$0xf0] }
 0x20c   :  { %v7384_v16 = vpop.eup %7383  ;;  %v6064_v24 = vor.u32 %v7160_v13, %v6063_v41  ;;  %v6255_v13 = vld [vmem:[#allocation8 + $0x3c8] sm:$0xf] }
 0x20d   :  { %4332 = vmatpush.bf16.msra.mxu1 %v5920_v40  ;;  %v7842_v1 = vpack.c.bf16 %v7384_v16, %v7382_v23  ;;  %v7228_v40 = vld [vmem:[#allocation8 + $0x474] sm:$0xf0]  ;;  %v6697_v16 = vld [vmem:[#allocation8 + $0x750] sm:$0xf0] }
 0x20e   :  { %v6336_v46 = vor.u32 %v7228_v40, %v6335_v35  ;;  %v6017_v35 = vld [vmem:[#allocation8 + $0x1f8] sm:$0xf0]  ;;  %v6700_v40 = vor.u32 %v7317_v62, %v6697_v16  ;;  %v6239_v16 = vld [vmem:[#allocation8 + $0x3a8] sm:$0xf] }
 0x20f   :  { %4319 = vmatpush.bf16.msra.mxu0 %v5776_v9  ;;  %4194 = vmatmul.bf16.vlgmr.msrb.gmra.mxu3 %v7842_v1  ;;  %v6480_v9 = vor.u32 %v7264_v37, %v6479_v38  ;;  %v6020_v45 = vor.u32 %v7146_v34, %v6017_v35  ;;  %v5953_v34 = vld [vmem:[#allocation8 + $0x178] sm:$0xf0] }
 0x210   :  { %4298 = vmatpush.bf16.msrb.mxu3 %v6780_v20  ;;  %4341 = vmatpush.bf16.msra.mxu2 %v6128_v3  ;;  %v6047_v20 = vld [vmem:[#allocation8 + $0x228] sm:$0xf]  ;;  %v7156_v3 = vld [vmem:[#allocation8 + $0x234] sm:$0xf0] }
 0x211   :  { %4333 = vmatpush.bf16.msra.mxu1 %v5904_v58  ;;  %v7325_v58 = vld [vmem:[#allocation8 + $0x784] sm:$0xf]  ;;  %v6048_v38 = vor.u32 %v7156_v3, %v6047_v20  ;;  %v7204_v20 = vld [vmem:[#allocation8 + $0x3b4] sm:$0xf0]  ;;  %v6607_v3 = vld [vmem:[#allocation8 + $0x688] sm:$0xf] }
 0x212   :  { %4320 = vmatmul.bf16.vlgmr.msra.gmra.mxu0 %v7811_v14  ;;  %v6240_v35 = vor.u32 %v7204_v20, %v6239_v16  ;;  %v6543_v16 = vld [vmem:[#allocation8 + $0x608] sm:$0xf]  ;;  %v7280_v20 = vld [vmem:[#allocation8 + $0x614] sm:$0xf0] }
 0x213   :  { %4368 = vmatpush.bf16.msrb.mxu0 %v6400_v17  ;;  %v6463_v17 = vld [vmem:[#allocation8 + $0x568] sm:$0xf] }
 0x214   :  { %4334 = vmatmul.bf16.vlgmr.msra.gmra.mxu1 %v7813_v60  ;;  %4299 = vmatpush.bf16.msrb.mxu3 %v6764_v39  ;;  %v6464_v11 = vor.u32 %v7260_v54, %v6463_v17  ;;  %v7313_v39 = vld [vmem:[#allocation8 + $0x724] sm:$0xf]  ;;  %v7142_v54 = vld [vmem:[#allocation8 + $0x1cc] sm:$0xf] }
 0x215   :  { %4382 = vmatpush.bf16.msrb.mxu1 %v6528_v6  ;;  %4342 = vmatpush.bf16.msra.mxu2 %v6112_v27  ;;  %v6303_v6 = vld [vmem:[#allocation8 + $0x428] sm:$0xf]  ;;  %v6681_v27 = vld [vmem:[#allocation8 + $0x730] sm:$0xf0] }
 0x216   :  { %v6304_v36 = vor.u32 %v7220_v0, %v6303_v6  ;;  %v6684_v17 = vor.u32 %v7313_v39, %v6681_v27  ;;  %v6639_v6 = vld [vmem:[#allocation8 + $0x6c8] sm:$0xf]  ;;  %v7200_v39 = vld [vmem:[#allocation8 + $0x394] sm:$0xf0] }
 0x217   :  { %4369 = vmatpush.bf16.msrb.mxu0 %v6384_v7  ;;  %v6732_v7 = vor.u32 %v7325_v58, %v6729_v61  ;;  %v7309_v58 = vld [vmem:[#allocation8 + $0x704] sm:$0xf]  ;;  %v6665_v61 = vld [vmem:[#allocation8 + $0x710] sm:$0xf0]  ;;  %v6591_v27 = vld [vmem:[#allocation8 + $0x668] sm:$0xf] }
 0x218   :  { %4300 = vmatpush.bf16.msrb.mxu3 %v6748_v52  ;;  %v6001_v52 = vld [vmem:[#allocation8 + $0x1d8] sm:$0xf0] }
 0x219   :  { %4383 = vmatpush.bf16.msrb.mxu1 %v6512_v47  ;;  %4343 = vmatpush.bf16.msra.mxu2 %v6096_v55  ;;  %v6287_v47 = vld [vmem:[#allocation8 + $0x408] sm:$0xf]  ;;  %v6004_v0 = vor.u32 %v7142_v54, %v6001_v52  ;;  %v7196_v52 = vld [vmem:[#allocation8 + $0x374] sm:$0xf0] }
 0x21a   :  { %v6288_v15 = vor.u32 %v7216_v10, %v6287_v47  ;;  %v7208_v47 = vld [vmem:[#allocation8 + $0x3d4] sm:$0xf0]  ;;  %v6623_v10 = vld [vmem:[#allocation8 + $0x6a8] sm:$0xf] }
 0x21b   :  { %4370 = vmatpush.bf16.msrb.mxu0 %v6368_v42  ;;  %v7252_v42 = vld [vmem:[#allocation8 + $0x534] sm:$0xf0]  ;;  %v6256_v62 = vor.u32 %v7208_v47, %v6255_v13  ;;  %v7118_v13 = vld [vmem:[#allocation8 + $0x10c] sm:$0xf]  ;;  %v5905_v47 = vld [vmem:[#allocation8 + $0x118] sm:$0xf0] }
 0x21c   :  { %4301 = vmatpush.bf16.msrb.mxu3 %v6732_v7  ;;  %v6432_v23 = vor.u32 %v7252_v42, %v6431_v49  ;;  %v5841_v7 = vld [vmem:[#allocation8 + $0x98] sm:$0xf0]  ;;  %v5988_v49 = vor.u32 %v7138_v22, %v5985_v43  ;;  %v7300_v42 = vld [vmem:[#allocation8 + $0x6b4] sm:$0xf0] }
 0x21d   :  { %4384 = vmatpush.bf16.msrb.mxu1 %v6496_v30  ;;  %4344 = vmatpush.bf16.msra.mxu2 %v6080_v44  ;;  %v7110_v30 = vld [vmem:[#allocation8 + $0xcc] sm:$0xf]  ;;  %v6668_v44 = vor.u32 %v7309_v58, %v6665_v61  ;;  %v5844_v41 = vor.u32 %v7102_v57, %v5841_v7  ;;  %v7288_v58 = vld [vmem:[#allocation8 + $0x654] sm:$0xf0] }
 0x21e   :  { %v5876_v2 = vor.u32 %v7110_v30, %v5873_v31  ;;  %v5809_v30 = vld [vmem:[#allocation8 + $0x58] sm:$0xf0]  ;;  %v7130_v31 = vld [vmem:[#allocation8 + $0x16c] sm:$0xf]  ;;  %v7192_v22 = vld [vmem:[#allocation8 + $0x354] sm:$0xf0] }
 0x21f   :  { %4371 = vmatpush.bf16.msrb.mxu0 %v6352_v29  ;;  %v7248_v29 = vld [vmem:[#allocation8 + $0x514] sm:$0xf0]  ;;  %4250 = vmatmul.bf16.vlgmr.msra.gmra.mxu3 %v7818_v51 }
 0x220   :  { %4302 = vmatpush.bf16.msrb.mxu3 %v6716_v48  ;;  %v6416_v37 = vor.u32 %v7248_v29, %v6415_v19  ;;  %v7134_v48 = vld [vmem:[#allocation8 + $0x18c] sm:$0xf]  ;;  %v7296_v19 = vld [vmem:[#allocation8 + $0x694] sm:$0xf0] }
 0x221   :  { %4385 = vmatpush.bf16.msrb.mxu1 %v6480_v9  ;;  %4345 = vmatpush.bf16.msra.mxu2 %v6064_v24  ;;  %v7152_v9 = vld [vmem:[#allocation8 + $0x214] sm:$0xf0]  ;;  %v5969_v24 = vld [vmem:[#allocation8 + $0x198] sm:$0xf0]  ;;  %v7094_v29 = vld [vmem:[#allocation8 + $0x4c] sm:$0xf] }
 0x223   :  { %4372 = vmatpush.bf16.msrb.mxu0 %v6336_v46  ;;  %v6031_v46 = vld [vmem:[#allocation8 + $0x208] sm:$0xf] }
 0x224   :  { %4303 = vmatpush.bf16.msrb.mxu3 %v6700_v40  ;;  %v6032_v55 = vor.u32 %v7152_v9, %v6031_v46  ;;  %v6608_v40 = vor.u32 %v7296_v19, %v6607_v3  ;;  %v7090_v46 = vld [vmem:[#allocation8 + $0x2c] sm:$0xf]  ;;  %v5793_v9 = vld [vmem:[#allocation8 + $0x38] sm:$0xf0] }
 0x225   :  { %4386 = vmatpush.bf16.msrb.mxu1 %v6464_v11  ;;  %4346 = vmatpush.bf16.msra.mxu2 %v6048_v38  ;;  %v5860_v11 = vor.u32 %v7106_v59, %v5857_v18  ;;  %v5812_v38 = vor.u32 %v7094_v29, %v5809_v30  ;;  %v6207_v18 = vld [vmem:[#allocation8 + $0x368] sm:$0xf]  ;;  %v5796_v54 = vor.u32 %v7090_v46, %v5793_v9  ;;  %v7178_v3 = vld [vmem:[#allocation8 + $0x2ec] sm:$0xf]  ;;  %v6145_v19 = vld [vmem:[#allocation8 + $0x2f8] sm:$0xf0] }
 0x226   :  { %v7234_v29 = vld [vmem:[#allocation8 + $0x4ac] sm:$0xf]  ;;  %v6369_v30 = vld [vmem:[#allocation8 + $0x4b8] sm:$0xf0] }
 0x227   :  { %4373 = vmatpush.bf16.msrb.mxu0 %v6320_v5  ;;  %v6656_v5 = vor.u32 %v7308_v63, %v6655_v28  ;;  %v7126_v28 = vld [vmem:[#allocation8 + $0x14c] sm:$0xf]  ;;  %v5937_v63 = vld [vmem:[#allocation8 + $0x158] sm:$0xf0] }
 0x228   :  { %4304 = vmatpush.bf16.msrb.mxu3 %v6684_v17  ;;  %v5940_v61 = vor.u32 %v7126_v28, %v5937_v63  ;;  %v7174_v46 = vld [vmem:[#allocation8 + $0x2cc] sm:$0xf]  ;;  %v6129_v28 = vld [vmem:[#allocation8 + $0x2d8] sm:$0xf0] }
 0x229   :  { %4387 = vmatpush.bf16.msrb.mxu1 %v6448_v25  ;;  %4347 = vmatpush.bf16.msra.mxu2 %v6032_v55  ;;  %v6640_v25 = vor.u32 %v7304_v50, %v6639_v6  ;;  %v6575_v55 = vld [vmem:[#allocation8 + $0x648] sm:$0xf]  ;;  %v7242_v6 = vld [vmem:[#allocation8 + $0x4ec] sm:$0xf]  ;;  %v6208_v50 = vor.u32 %v7196_v52, %v6207_v18  ;;  %v6132_v52 = vor.u32 %v7174_v46, %v6129_v28  ;;  %v7320_v28 = vld [vmem:[#allocation8 + $0x754] sm:$0xf0] }
 0x22a   :  { %v6576_v57 = vor.u32 %v7288_v58, %v6575_v55  ;;  %v7230_v63 = vld [vmem:[#allocation8 + $0x48c] sm:$0xf]  ;;  %v6767_v58 = vld [vmem:[#allocation8 + $0x7c8] sm:$0xf] }
 0x22b   :  { %4374 = vmatpush.bf16.msrb.mxu0 %v6304_v36  ;;  %v6272_v36 = vor.u32 %v7212_v26, %v6271_v32  ;;  %v7122_v32 = vld [vmem:[#allocation8 + $0x12c] sm:$0xf]  ;;  %v5921_v26 = vld [vmem:[#allocation8 + $0x138] sm:$0xf0] }
 0x22c   :  { %4305 = vmatpush.bf16.msrb.mxu3 %v6668_v44  ;;  %4348 = vmatmul.bf16.vlgmr.msra.gmra.mxu2 %v7815_v12  ;;  %v6191_v44 = vld [vmem:[#allocation8 + $0x348] sm:$0xf]  ;;  %v5924_v43 = vor.u32 %v7122_v32, %v5921_v26  ;;  %v7266_v18 = vld [vmem:[#allocation8 + $0x5ac] sm:$0xf]  ;;  %v6113_v32 = vld [vmem:[#allocation8 + $0x2b8] sm:$0xf0] }
 0x22d   :  { %4388 = vmatpush.bf16.msrb.mxu1 %v6432_v23  ;;  %4396 = vmatpush.bf16.msrb.mxu2 %v6656_v5  ;;  %v5828_v23 = vor.u32 %v7098_v53, %v5825_v4  ;;  %v7086_v5 = vld [vmem:[#allocation8 + $0xc] sm:$0xf]  ;;  %v6529_v4 = vld [vmem:[#allocation8 + $0x5f8] sm:$0xf0] }
 0x22e   :  { %v7274_v53 = vld [vmem:[#allocation8 + $0x5ec] sm:$0xf] }
 0x22f   :  { %4375 = vmatpush.bf16.msrb.mxu0 %v6288_v15  ;;  %v6624_v15 = vor.u32 %v7300_v42, %v6623_v10  ;;  %4306 = vmatmul.bf16.vlgmr.msrb.gmra.mxu3 %v7842_v1  ;;  %v7238_v10 = vld [vmem:[#allocation8 + $0x4cc] sm:$0xf]  ;;  %v6192_v42 = vor.u32 %v7192_v22, %v6191_v44  ;;  %v6751_v44 = vld [vmem:[#allocation8 + $0x7a8] sm:$0xf]  ;;  %v7332_v22 = vld [vmem:[#allocation8 + $0x7b4] sm:$0xf0] }
 0x230   :  { %4354 = vmatpush.bf16.msra.mxu3 %v6272_v36  ;;  %v7226_v26 = vld [vmem:[#allocation8 + $0x46c] sm:$0xf] }
 0x231   :  { %4389 = vmatpush.bf16.msrb.mxu1 %v6416_v37  ;;  %4397 = vmatpush.bf16.msrb.mxu2 %v6640_v25  ;;  %v6223_v37 = vld [vmem:[#allocation8 + $0x388] sm:$0xf] }
 0x232   :  { %4376 = vmatmul.bf16.vlgmr.msrb.gmra.mxu0 %v7825_v8  ;;  %v6224_v59 = vor.u32 %v7200_v39, %v6223_v37  ;;  %v6559_v25 = vld [vmem:[#allocation8 + $0x628] sm:$0xf]  ;;  %v7184_v37 = vld [vmem:[#allocation8 + $0x314] sm:$0xf0]  ;;  %v6148_v39 = vor.u32 %v7178_v3, %v6145_v19  ;;  %v6449_v3 = vld [vmem:[#allocation8 + $0x558] sm:$0xf0] }
 0x233   :  { %4424 = vmatpush.bf16.msra.mxu0 %v5892_v21  ;;  %v5972_v21 = vor.u32 %v7134_v48, %v5969_v24  ;;  %v6175_v24 = vld [vmem:[#allocation8 + $0x328] sm:$0xf] }
 0x234   :  { %4390 = vmatmul.bf16.vlgmr.msrb.gmra.mxu1 %v7828_v33  ;;  %4355 = vmatpush.bf16.msra.mxu3 %v6256_v62  ;;  %v7188_v62 = vld [vmem:[#allocation8 + $0x334] sm:$0xf0] }
 0x235   :  { %4438 = vmatpush.bf16.msra.mxu1 %v6020_v45  ;;  %4398 = vmatpush.bf16.msrb.mxu2 %v6624_v15  ;;  %v7292_v45 = vld [vmem:[#allocation8 + $0x674] sm:$0xf0]  ;;  %v5908_v15 = vor.u32 %v7118_v13, %v5905_v47  ;;  %v6321_v13 = vld [vmem:[#allocation8 + $0x458] sm:$0xf0]  ;;  %v7258_v47 = vld [vmem:[#allocation8 + $0x56c] sm:$0xf] }
 0x236   :  { %v6592_v17 = vor.u32 %v7292_v45, %v6591_v27  ;;  %v6372_v27 = vor.u32 %v7234_v29, %v6369_v30  ;;  %v7340_v45 = vld [vmem:[#allocation8 + $0x7f4] sm:$0xf0]  ;;  %v6719_v30 = vld [vmem:[#allocation8 + $0x768] sm:$0xf] }
 0x237   :  { %4425 = vmatpush.bf16.msra.mxu0 %v5876_v2  ;;  %v5956_v2 = vor.u32 %v7130_v31, %v5953_v34  ;;  %v6176_v31 = vor.u32 %v7188_v62, %v6175_v24  ;;  %v7270_v34 = vld [vmem:[#allocation8 + $0x5cc] sm:$0xf] }
 0x238   :  { %4356 = vmatpush.bf16.msra.mxu3 %v6240_v35  ;;  %v6513_v35 = vld [vmem:[#allocation8 + $0x5d8] sm:$0xf0]  ;;  %v7162_v24 = vld [vmem:[#allocation8 + $0x26c] sm:$0xf] }
 0x239   :  { %4439 = vmatpush.bf16.msra.mxu1 %v6004_v0  ;;  %4399 = vmatpush.bf16.msrb.mxu2 %v6608_v40  ;;  %v6401_v0 = vld [vmem:[#allocation8 + $0x4f8] sm:$0xf0]  ;;  %v6544_v40 = vor.u32 %v7280_v20, %v6543_v16  ;;  %v6516_v9 = vor.u32 %v7270_v34, %v6513_v35  ;;  %v7254_v20 = vld [vmem:[#allocation8 + $0x54c] sm:$0xf] }
 0x23a   :  { %v6404_v36 = vor.u32 %v7242_v6, %v6401_v0  ;;  %v6337_v6 = vld [vmem:[#allocation8 + $0x478] sm:$0xf0]  ;;  %v7262_v0 = vld [vmem:[#allocation8 + $0x58c] sm:$0xf]  ;;  %v6452_v35 = vor.u32 %v7254_v20, %v6449_v3  ;;  %v4097_v3 = vpop.f32.mrf.mxu0 }
 0x23b   :  { %4426 = vmatpush.bf16.msra.mxu0 %v5860_v11  ;;  %v5777_v11 = vld [vmem:[#allocation8 + $0x18] sm:$0xf0]  ;;  %v7158_v34 = vld [vmem:[#allocation8 + $0x24c] sm:$0xf] }
 0x23c   :  { %4357 = vmatpush.bf16.msra.mxu3 %v6224_v59  ;;  %v5780_v7 = vor.u32 %v7086_v5, %v5777_v11  ;;  %v6353_v59 = vld [vmem:[#allocation8 + $0x498] sm:$0xf0]  ;;  %v7170_v5 = vld [vmem:[#allocation8 + $0x2ac] sm:$0xf] }
 0x23d   :  { %4440 = vmatpush.bf16.msra.mxu1 %v5988_v49  ;;  %4400 = vmatpush.bf16.msrb.mxu2 %v6592_v17  ;;  %v6385_v49 = vld [vmem:[#allocation8 + $0x4d8] sm:$0xf0]  ;;  %v6356_v55 = vor.u32 %v7230_v63, %v6353_v59  ;;  %v7154_v59 = vld [vmem:[#allocation8 + $0x22c] sm:$0xf] }
 0x23e   :  { %v6497_v17 = vld [vmem:[#allocation8 + $0x5b8] sm:$0xf0] }
 0x23f   :  { %4427 = vmatpush.bf16.msra.mxu0 %v5844_v41  ;;  %v7284_v41 = vld [vmem:[#allocation8 + $0x634] sm:$0xf0]  ;;  %v6500_v11 = vor.u32 %v7266_v18, %v6497_v17  ;;  %v6305_v16 = vld [vmem:[#allocation8 + $0x438] sm:$0xf0]  ;;  %v7246_v18 = vld [vmem:[#allocation8 + $0x50c] sm:$0xf] }
 0x240   :  { %4358 = vmatpush.bf16.msra.mxu3 %v6208_v50  ;;  %v6560_v48 = vor.u32 %v7284_v41, %v6559_v25  ;;  %v6481_v50 = vld [vmem:[#allocation8 + $0x598] sm:$0xf0]  ;;  %v7222_v41 = vld [vmem:[#allocation8 + $0x44c] sm:$0xf] }
 0x241   :  { %4441 = vmatpush.bf16.msra.mxu1 %v5972_v21  ;;  %4401 = vmatpush.bf16.msrb.mxu2 %v6576_v57  ;;  %v6532_v21 = vor.u32 %v7274_v53, %v6529_v4  ;;  %v6116_v57 = vor.u32 %v7170_v5, %v6113_v32  ;;  %v6097_v25 = vld [vmem:[#allocation8 + $0x298] sm:$0xf0]  ;;  %v6324_v53 = vor.u32 %v7222_v41, %v6321_v13  ;;  %v6735_v4 = vld [vmem:[#allocation8 + $0x788] sm:$0xf]  ;;  %v7150_v5 = vld [vmem:[#allocation8 + $0x20c] sm:$0xf] }
 0x242   :  { %v6417_v17 = vld [vmem:[#allocation8 + $0x518] sm:$0xf0]  ;;  %v7306_v32 = vld [vmem:[#allocation8 + $0x6ec] sm:$0xf] }
 0x243   :  { %4428 = vmatpush.bf16.msra.mxu0 %v5828_v23  ;;  %v6388_v23 = vor.u32 %v7238_v10, %v6385_v49  ;;  %v6465_v10 = vld [vmem:[#allocation8 + $0x578] sm:$0xf0]  ;;  %v6752_v49 = vor.u32 %v7332_v22, %v6751_v44  ;;  %v7302_v22 = vld [vmem:[#allocation8 + $0x6cc] sm:$0xf] }
 0x244   :  { %4359 = vmatpush.bf16.msra.mxu3 %v6192_v42  ;;  %v6468_v62 = vor.u32 %v7258_v47, %v6465_v10  ;;  %v6273_v44 = vld [vmem:[#allocation8 + $0x3f8] sm:$0xf0]  ;;  %v7298_v47 = vld [vmem:[#allocation8 + $0x6ac] sm:$0xf] }
 0x245   :  { %4442 = vmatpush.bf16.msra.mxu1 %v5956_v2  ;;  %4402 = vmatpush.bf16.msrb.mxu2 %v6560_v48  ;;  %v6783_v2 = vld [vmem:[#allocation8 + $0x7e8] sm:$0xf]  ;;  %v7328_v48 = vld [vmem:[#allocation8 + $0x794] sm:$0xf0]  ;;  %v6257_v13 = vld [vmem:[#allocation8 + $0x3d8] sm:$0xf0] }
 0x246   :  { %v6625_v10 = vld [vmem:[#allocation8 + $0x6b8] sm:$0xf0] }
 0x247   :  { %4429 = vmatpush.bf16.msra.mxu0 %v5812_v38  ;;  %v6159_v38 = vld [vmem:[#allocation8 + $0x308] sm:$0xf]  ;;  %v6593_v20 = vld [vmem:[#allocation8 + $0x678] sm:$0xf0] }
 0x248   :  { %4360 = vmatpush.bf16.msra.mxu3 %v6176_v31  ;;  %v7324_v31 = vld [vmem:[#allocation8 + $0x774] sm:$0xf0] }
 0x249   :  { %4443 = vmatpush.bf16.msra.mxu1 %v5940_v61  ;;  %4403 = vmatpush.bf16.msrb.mxu2 %v6544_v40  ;;  %v7336_v61 = vld [vmem:[#allocation8 + $0x7d4] sm:$0xf0]  ;;  %v6065_v40 = vld [vmem:[#allocation8 + $0x258] sm:$0xf0] }
 0x24b   :  { %4430 = vmatpush.bf16.msra.mxu0 %v5796_v54  ;;  %v6784_v54 = vor.u32 %v7340_v45, %v6783_v2  ;;  %v6720_v2 = vor.u32 %v7324_v31, %v6719_v30  ;;  %v6068_v45 = vor.u32 %v7158_v34, %v6065_v40  ;;  %v6209_v30 = vld [vmem:[#allocation8 + $0x378] sm:$0xf0]  ;;  %v7286_v31 = vld [vmem:[#allocation8 + $0x64c] sm:$0xf]  ;;  %v4125_v40 = vpop.f32.mrf.mxu2 }
 0x24c   :  { %4404 = vmatmul.bf16.vlgmr.msrb.gmra.mxu2 %v7836_v56  ;;  %v6577_v34 = vld [vmem:[#allocation8 + $0x658] sm:$0xf0] }
 0x24d   :  { %4444 = vmatpush.bf16.msra.mxu1 %v5924_v43  ;;  %4452 = vmatpush.bf16.msra.mxu2 %v6148_v39  ;;  %v7166_v43 = vld [vmem:[#allocation8 + $0x28c] sm:$0xf] }
 0x24e   :  { %v6100_v42 = vor.u32 %v7166_v43, %v6097_v25  ;;  %v7250_v39 = vld [vmem:[#allocation8 + $0x52c] sm:$0xf]  ;;  %v6641_v43 = vld [vmem:[#allocation8 + $0x6d8] sm:$0xf0] }
 0x24f   :  { %4431 = vmatpush.bf16.msra.mxu0 %v5780_v7  ;;  %v6340_v7 = vor.u32 %v7226_v26, %v6337_v6  ;;  %v6657_v26 = vld [vmem:[#allocation8 + $0x6f8] sm:$0xf0]  ;;  %v6644_v41 = vor.u32 %v7302_v22, %v6641_v43 }
 0x251   :  { %4445 = vmatpush.bf16.msra.mxu1 %v5908_v15  ;;  %4453 = vmatpush.bf16.msra.mxu2 %v6132_v52  ;;  %v6081_v15 = vld [vmem:[#allocation8 + $0x278] sm:$0xf0] }
 0x252   :  { %4432 = vmatmul.bf16.vlgmr.msra.gmra.mxu0 %v7811_v14  ;;  %v6160_v14 = vor.u32 %v7184_v37, %v6159_v38  ;;  %v6084_v19 = vor.u32 %v7162_v24, %v6081_v15  ;;  %v7214_v38 = vld [vmem:[#allocation8 + $0x40c] sm:$0xf]  ;;  %v6289_v37 = vld [vmem:[#allocation8 + $0x418] sm:$0xf0] }
 0x253   :  { %4480 = vmatpush.bf16.msrb.mxu0 %v6404_v36  ;;  %v6484_v36 = vor.u32 %v7262_v0, %v6481_v50  ;;  %v6292_v46 = vor.u32 %v7214_v38, %v6289_v37  ;;  %v6671_v50 = vld [vmem:[#allocation8 + $0x708] sm:$0xf]  ;;  %v7198_v15 = vld [vmem:[#allocation8 + $0x38c] sm:$0xf]  ;;  %v6580_v38 = vor.u32 %v7286_v31, %v6577_v34 }
 0x254   :  { %4446 = vmatmul.bf16.vlgmr.msra.gmra.mxu1 %v7813_v60  ;;  %4361 = vmatpush.bf16.msra.mxu3 %v6160_v14  ;;  %v6768_v60 = vor.u32 %v7336_v61, %v6767_v58  ;;  %v6049_v14 = vld [vmem:[#allocation8 + $0x238] sm:$0xf0]  ;;  %v7316_v58 = vld [vmem:[#allocation8 + $0x734] sm:$0xf0]  ;;  %v6420_v61 = vor.u32 %v7246_v18, %v6417_v17  ;;  %v7190_v37 = vld [vmem:[#allocation8 + $0x34c] sm:$0xf]  ;;  %v4099_v18 = vpop.f32.mrf.mxu0 }
 0x255   :  { %4494 = vmatpush.bf16.msrb.mxu1 %v6532_v21  ;;  %4454 = vmatpush.bf16.msra.mxu2 %v6116_v57  ;;  %v6736_v21 = vor.u32 %v7328_v48, %v6735_v4  ;;  %v6052_v52 = vor.u32 %v7154_v59, %v6049_v14  ;;  %v6660_v57 = vor.u32 %v7306_v32, %v6657_v26  ;;  %v6241_v4 = vld [vmem:[#allocation8 + $0x3b8] sm:$0xf0]  ;;  %v7859_v14 = vld [vmem:[#allocation10] sm:$0xf]  ;;  %v4127_v32 = vpop.f32.mrf.mxu2 }
 0x256   :  { %v6609_v48 = vld [vmem:[#allocation8 + $0x698] sm:$0xf0] }
 0x257   :  { %4481 = vmatpush.bf16.msrb.mxu0 %v6388_v23  ;;  %4362 = vmatmul.bf16.vlgmr.msra.gmra.mxu3 %v7818_v51  ;;  %v7218_v23 = vld [vmem:[#allocation8 + $0x42c] sm:$0xf]  ;;  %v6545_v59 = vld [vmem:[#allocation8 + $0x618] sm:$0xf0] }
 0x258   :  { %4410 = vmatpush.bf16.msrb.mxu3 %v6784_v54  ;;  %v6308_v29 = vor.u32 %v7218_v23, %v6305_v16  ;;  %v6225_v23 = vld [vmem:[#allocation8 + $0x398] sm:$0xf0]  ;;  %v7290_v16 = vld [vmem:[#allocation8 + $0x66c] sm:$0xf] }
 0x259   :  { %4495 = vmatpush.bf16.msrb.mxu1 %v6516_v9  ;;  %4455 = vmatpush.bf16.msra.mxu2 %v6100_v42  ;;  %v6703_v9 = vld [vmem:[#allocation8 + $0x748] sm:$0xf]  ;;  %v6628_v42 = vor.u32 %v7298_v47, %v6625_v10  ;;  %v7326_v10 = vld [vmem:[#allocation8 + $0x78c] sm:$0xf] }
 0x25a   :  { %v6704_v54 = vor.u32 %v7320_v28, %v6703_v9  ;;  %v7186_v9 = vld [vmem:[#allocation8 + $0x32c] sm:$0xf]  ;;  %v6177_v28 = vld [vmem:[#allocation8 + $0x338] sm:$0xf0] }
 0x25b   :  { %4482 = vmatpush.bf16.msrb.mxu0 %v6372_v27  ;;  %v6433_v27 = vld [vmem:[#allocation8 + $0x538] sm:$0xf0] }
 0x25c   :  { %4411 = vmatpush.bf16.msrb.mxu3 %v6768_v60  ;;  %v6436_v63 = vor.u32 %v7250_v39, %v6433_v27  ;;  %v7312_v60 = vld [vmem:[#allocation8 + $0x714] sm:$0xf0]  ;;  %v6193_v39 = vld [vmem:[#allocation8 + $0x358] sm:$0xf0]  ;;  %v7282_v27 = vld [vmem:[#allocation8 + $0x62c] sm:$0xf] }
 0x25d   :  { %4496 = vmatpush.bf16.msrb.mxu1 %v6500_v11  ;;  %4456 = vmatpush.bf16.msra.mxu2 %v6084_v19  ;;  %v6033_v11 = vld [vmem:[#allocation8 + $0x218] sm:$0xf0]  ;;  %v6596_v19 = vor.u32 %v7290_v16, %v6593_v20 }
 0x25e   :  { %v6036_v0 = vor.u32 %v7150_v5, %v6033_v11  ;;  %v7338_v5 = vld [vmem:[#allocation8 + $0x7ec] sm:$0xf]  ;;  %v6785_v11 = vld [vmem:[#allocation8 + $0x7f8] sm:$0xf0] }
 0x25f   :  { %4483 = vmatpush.bf16.msrb.mxu0 %v6356_v55  ;;  %v6687_v55 = vld [vmem:[#allocation8 + $0x728] sm:$0xf] }
 0x260   :  { %4412 = vmatpush.bf16.msrb.mxu3 %v6752_v49  ;;  %v6688_v6 = vor.u32 %v7316_v58, %v6687_v55  ;;  %v7182_v55 = vld [vmem:[#allocation8 + $0x30c] sm:$0xf]  ;;  %v6161_v58 = vld [vmem:[#allocation8 + $0x318] sm:$0xf0] }
 0x261   :  { %4497 = vmatpush.bf16.msrb.mxu1 %v6484_v36  ;;  %4457 = vmatpush.bf16.msra.mxu2 %v6068_v45  ;;  %v6672_v36 = vor.u32 %v7312_v60, %v6671_v50  ;;  %v6196_v45 = vor.u32 %v7190_v37, %v6193_v39  ;;  %v6164_v26 = vor.u32 %v7182_v55, %v6161_v58  ;;  %v7334_v60 = vld [vmem:[#allocation8 + $0x7cc] sm:$0xf] }
 0x263   :  { %4484 = vmatpush.bf16.msrb.mxu0 %v6340_v7  ;;  %v7210_v7 = vld [vmem:[#allocation8 + $0x3ec] sm:$0xf] }
 0x264   :  { %4413 = vmatpush.bf16.msrb.mxu3 %v6736_v21  ;;  %v6276_v25 = vor.u32 %v7210_v7, %v6273_v44  ;;  %v4111_v21 = vpop.f32.mrf.mxu1  ;;  %v4153_v7 = vpop.f32.mrf.mxu0 }
 0x265   :  { %4498 = vmatpush.bf16.msrb.mxu1 %v6468_v62  ;;  %4458 = vmatpush.bf16.msra.mxu2 %v6052_v52 }
 0x267   :  { %4485 = vmatpush.bf16.msrb.mxu0 %v6324_v53  ;;  %v7202_v53 = vld [vmem:[#allocation8 + $0x3ac] sm:$0xf] }
 0x268   :  { %4414 = vmatpush.bf16.msrb.mxu3 %v6720_v2  ;;  %v6244_v24 = vor.u32 %v7202_v53, %v6241_v4  ;;  %v6561_v2 = vld [vmem:[#allocation8 + $0x638] sm:$0xf0] }
 0x269   :  { %4499 = vmatpush.bf16.msrb.mxu1 %v6452_v35  ;;  %4459 = vmatpush.bf16.msra.mxu2 %v6036_v0  ;;  %v6788_v0 = vor.u32 %v7338_v5, %v6785_v11 }
 0x26b   :  { %4486 = vmatpush.bf16.msrb.mxu0 %v6308_v29  ;;  %v7194_v29 = vld [vmem:[#allocation8 + $0x36c] sm:$0xf] }
 0x26c   :  { %4415 = vmatpush.bf16.msrb.mxu3 %v6704_v54  ;;  %4460 = vmatmul.bf16.vlgmr.msra.gmra.mxu2 %v7815_v12  ;;  %v6228_v12 = vor.u32 %v7198_v15, %v6225_v23  ;;  %v6212_v35 = vor.u32 %v7194_v29, %v6209_v30  ;;  %v4113_v17 = vpop.f32.mrf.mxu1  ;;  %v6180_v54 = vor.u32 %v7186_v9, %v6177_v28  ;;  %v4155_v4 = vpop.f32.mrf.mxu0  ;;  %v6721_v15 = vld [vmem:[#allocation8 + $0x778] sm:$0xf0] }
 0x26d   :  { %4500 = vmatpush.bf16.msrb.mxu1 %v6436_v63  ;;  %4508 = vmatpush.bf16.msrb.mxu2 %v6660_v57  ;;  %v7278_v63 = vld [vmem:[#allocation8 + $0x60c] sm:$0xf]  ;;  %v6769_v57 = vld [vmem:[#allocation8 + $0x7d8] sm:$0xf0] }
 0x26e   :  { %v6548_v52 = vor.u32 %v7278_v63, %v6545_v59  ;;  %v6772_v22 = vor.u32 %v7334_v60, %v6769_v57  ;;  %v2801_v59 = vperm.slane %v7859_v14, 1 }
 0x26f   :  { %4487 = vmatpush.bf16.msrb.mxu0 %v6292_v46  ;;  %v6564_v46 = vor.u32 %v7282_v27, %v6561_v2 }
 0x270   :  { %4416 = vmatpush.bf16.msrb.mxu3 %v6688_v6  ;;  %v4139_v6 = vpop.f32.mrf.mxu3 }
 0x271   :  { %4501 = vmatpush.bf16.msrb.mxu1 %v6420_v61  ;;  %4509 = vmatpush.bf16.msrb.mxu2 %v6644_v41  ;;  %v2800_v61 = vperm.slane %v7859_v14, 0  ;;  %v4181_v41 = vpop.f32.mrf.mxu2 }
 0x272   :  { %4488 = vmatmul.bf16.vlgmr.msrb.gmra.mxu0 %v7825_v8  ;;  %v7206_v8 = vld [vmem:[#allocation8 + $0x3cc] sm:$0xf] }
 0x273   :  { %v6260_v49 = vor.u32 %v7206_v8, %v6257_v13  ;;  %v4098_v50 = vadd.f32 %v4097_v3, %v2800_v61  ;;  %v4100_v47 = vadd.f32 %v4099_v18, %v2800_v61  ;;  %v7318_v3 = vld [vmem:[#allocation8 + $0x74c] sm:$0xf] }
 0x274   :  { %4502 = vmatmul.bf16.vlgmr.msrb.gmra.mxu1 %v7828_v33  ;;  %4417 = vmatpush.bf16.msrb.mxu3 %v6672_v36  ;;  %v7294_v33 = vld [vmem:[#allocation8 + $0x68c] sm:$0xf]  ;;  %v4167_v44 = vpop.f32.mrf.mxu1  ;;  %v4209_v31 = vpop.f32.mrf.mxu0 }
 0x275   :  { %4510 = vmatpush.bf16.msrb.mxu2 %v6628_v42  ;;  %v6612_v62 = vor.u32 %v7294_v33, %v6609_v48  ;;  %v4112_v43 = vadd.f32 %v4111_v21, %v4098_v50  ;;  %v7330_v36 = vld [vmem:[#allocation8 + $0x7ac] sm:$0xf]  ;;  %v4114_v48 = vadd.f32 %v4113_v17, %v4100_v47  ;;  %v6705_v21 = vld [vmem:[#allocation8 + $0x758] sm:$0xf0] }
 0x276   :  { %v6708_v34 = vor.u32 %v7318_v3, %v6705_v21 }
 0x277   :  { %4418 = vmatmul.bf16.vlgmr.msrb.gmra.mxu3 %v7842_v1  ;;  %v4126_v8 = vadd.f32 %v4125_v40, %v4112_v43  ;;  %v4128_v23 = vadd.f32 %v4127_v32, %v4114_v48  ;;  %v7314_v40 = vld [vmem:[#allocation8 + $0x72c] sm:$0xf] }
 0x278   :  { %4466 = vmatpush.bf16.msra.mxu3 %v6276_v25  ;;  %v6753_v25 = vld [vmem:[#allocation8 + $0x7b8] sm:$0xf0]  ;;  %v4141_v42 = vpop.f32.mrf.mxu3 }
 0x279   :  { %4511 = vmatpush.bf16.msrb.mxu2 %v6612_v62  ;;  %v6756_v13 = vor.u32 %v7330_v36, %v6753_v25  ;;  %v4140_v53 = vadd.f32 %v4139_v6, %v4126_v8  ;;  %v7322_v62 = vld [vmem:[#allocation8 + $0x76c] sm:$0xf]  ;;  %v4183_v20 = vpop.f32.mrf.mxu2  ;;  %v4142_v29 = vadd.f32 %v4141_v42, %v4128_v23 }
 0x27c   :  { %4467 = vmatpush.bf16.msra.mxu3 %v6260_v49  ;;  %v6737_v49 = vld [vmem:[#allocation8 + $0x798] sm:$0xf0]  ;;  %v4169_v33 = vpop.f32.mrf.mxu1 }
 0x27d   :  { %4512 = vmatpush.bf16.msrb.mxu2 %v6596_v19 }
 0x280   :  { %4468 = vmatpush.bf16.msra.mxu3 %v6244_v24  ;;  %v4154_v24 = vadd.f32 %v4153_v7, %v4140_v53 }
 0x281   :  { %4513 = vmatpush.bf16.msrb.mxu2 %v6580_v38  ;;  %v6689_v38 = vld [vmem:[#allocation8 + $0x738] sm:$0xf0]  ;;  %v4237_v9 = vpop.f32.mrf.mxu2 }
 0x282   :  { %v4168_v16 = vadd.f32 %v4167_v44, %v4154_v24  ;;  %v6692_v27 = vor.u32 %v7314_v40, %v6689_v38 }
 0x284   :  { %4469 = vmatpush.bf16.msra.mxu3 %v6228_v12  ;;  %v4182_v12 = vadd.f32 %v4181_v41, %v4168_v16  ;;  %v4223_v37 = vpop.f32.mrf.mxu1 }
 0x285   :  { %4514 = vmatpush.bf16.msrb.mxu2 %v6564_v46  ;;  %v6673_v46 = vld [vmem:[#allocation8 + $0x718] sm:$0xf0] }
 0x288   :  { %4470 = vmatpush.bf16.msra.mxu3 %v6212_v35  ;;  %v4156_v35 = vadd.f32 %v4155_v4, %v4142_v29 }
 0x289   :  { %4515 = vmatpush.bf16.msrb.mxu2 %v6548_v52  ;;  %v4210_v52 = vadd.f32 %v4209_v31, %v2801_v59  ;;  %v4239_v32 = vpop.f32.mrf.mxu2 }
 0x28a   :  { %v4170_v39 = vadd.f32 %v4169_v33, %v4156_v35 }
 0x28b   :  { %v4224_v58 = vadd.f32 %v4223_v37, %v4210_v52 }
 0x28c   :  { %4471 = vmatpush.bf16.msra.mxu3 %v6196_v45  ;;  %4516 = vmatmul.bf16.vlgmr.msrb.gmra.mxu2 %v7836_v56  ;;  %v6740_v56 = vor.u32 %v7326_v10, %v6737_v49  ;;  %v4184_v2 = vadd.f32 %v4183_v20, %v4170_v39  ;;  %v7310_v45 = vld [vmem:[#allocation8 + $0x70c] sm:$0xf]  ;;  %v4225_v55 = vpop.f32.mrf.mxu1 }
 0x28d   :  { %v6676_v17 = vor.u32 %v7310_v45, %v6673_v46  ;;  %v4238_v11 = vadd.f32 %v4237_v9, %v4224_v58 }
 0x290   :  { %4472 = vmatpush.bf16.msra.mxu3 %v6180_v54  ;;  %v4211_v54 = vpop.f32.mrf.mxu0 }
 0x291   :  { %v4293_v36 = vpop.f32.mrf.mxu2 }
 0x292   :  { %v4195_v19 = vpop.f32.mrf.mxu3 }
 0x293   :  { %v4196_v30 = vadd.f32 %v4195_v19, %v4182_v12 }
 0x294   :  { %4473 = vmatpush.bf16.msra.mxu3 %v6164_v26  ;;  %v4279_v57 = vpop.f32.mrf.mxu1 }
 0x295   :  { %7385 = vtanh.f32 %v4196_v30 }
 0x297   :  { %4474 = vmatmul.bf16.vlgmr.msra.gmra.mxu3 %v7818_v51  ;;  %v6724_v51 = vor.u32 %v7322_v62, %v6721_v15  ;;  %v2802_v62 = vperm.slane %v7859_v14, 2 }
 0x298   :  { %4522 = vmatpush.bf16.msrb.mxu3 %v6788_v0  ;;  %v4265_v6 = vpop.f32.mrf.mxu0  ;;  %v4212_v0 = vadd.f32 %v4211_v54, %v2801_v59 }
 0x299   :  { %v4295_v49 = vpop.f32.mrf.mxu2 }
 0x29a   :  { %v4197_v28 = vpop.f32.mrf.mxu3  ;;  %v4226_v50 = vadd.f32 %v4225_v55, %v4212_v0 }
 0x29b   :  { %v7386_v63 = vpop.eup %7385  ;;  %v4198_v18 = vadd.f32 %v4197_v28, %v4184_v2 }
 0x29c   :  { %4523 = vmatpush.bf16.msrb.mxu3 %v6772_v22  ;;  %4544 = vst [vmem:[#allocation11] sm:$0xff] %v7386_v63  ;;  %v4240_v44 = vadd.f32 %v4239_v32, %v4226_v50  ;;  %v4281_v10 = vpop.f32.mrf.mxu1 }
 0x29d   :  { %7387 = vtanh.f32 %v4198_v18 }
 0x2a0   :  { %4524 = vmatpush.bf16.msrb.mxu3 %v6756_v13  ;;  %v4267_v25 = vpop.f32.mrf.mxu0 }
 0x2a2   :  { %v4251_v61 = vpop.f32.mrf.mxu3 }
 0x2a3   :  { %v7388_v5 = vpop.eup %7387  ;;  %v4252_v26 = vadd.f32 %v4251_v61, %v4238_v11  ;;  %v2803_v11 = vperm.slane %v7859_v14, 3 }
 0x2a4   :  { %4525 = vmatpush.bf16.msrb.mxu3 %v6740_v56  ;;  %4548 = vst [vmem:[#allocation11 + $0x20] sm:$0xff] %v7388_v5  ;;  %v4335_v24 = vpop.f32.mrf.mxu1 }
 0x2a5   :  { %v4266_v60 = vadd.f32 %v4265_v6, %v4252_v26 }
 0x2a7   :  { %v4280_v43 = vadd.f32 %v4279_v57, %v4266_v60 }
 0x2a8   :  { %4526 = vmatpush.bf16.msrb.mxu3 %v6724_v51  ;;  %v4321_v48 = vpop.f32.mrf.mxu0 }
 0x2a9   :  { %v4294_v8 = vadd.f32 %v4293_v36, %v4280_v43  ;;  %v4322_v16 = vadd.f32 %v4321_v48, %v2802_v62 }
 0x2aa   :  { %v4253_v7 = vpop.f32.mrf.mxu3 }
 0x2ab   :  { %v4254_v22 = vadd.f32 %v4253_v7, %v4240_v44  ;;  %v4336_v51 = vadd.f32 %v4335_v24, %v4322_v16 }
 0x2ac   :  { %4527 = vmatpush.bf16.msrb.mxu3 %v6708_v34  ;;  %v4337_v12 = vpop.f32.mrf.mxu1 }
 0x2ad   :  { %v4268_v41 = vadd.f32 %v4267_v25, %v4254_v22 }
 0x2af   :  { %v4349_v15 = vpop.f32.mrf.mxu2 }
 0x2b0   :  { %4528 = vmatpush.bf16.msrb.mxu3 %v6692_v27  ;;  %v4323_v23 = vpop.f32.mrf.mxu0  ;;  %v4350_v3 = vadd.f32 %v4349_v15, %v4336_v51 }
 0x2b1   :  { %v4324_v30 = vadd.f32 %v4323_v23, %v2802_v62 }
 0x2b2   :  { %v4307_v13 = vpop.f32.mrf.mxu3 }
 0x2b3   :  { %v4308_v47 = vadd.f32 %v4307_v13, %v4294_v8  ;;  %v4338_v31 = vadd.f32 %v4337_v12, %v4324_v30 }
 0x2b4   :  { %4529 = vmatpush.bf16.msrb.mxu3 %v6676_v17  ;;  %v4391_v35 = vpop.f32.mrf.mxu1 }
 0x2b5   :  { %7389 = vtanh.f32 %v4308_v47 }
 0x2b7   :  { %4530 = vmatmul.bf16.vlgmr.msrb.gmra.mxu3 %v7842_v1  ;;  %v4282_v1 = vadd.f32 %v4281_v10, %v4268_v41  ;;  %v4351_v29 = vpop.f32.mrf.mxu2 }
 0x2b8   :  { %v4377_v19 = vpop.f32.mrf.mxu0  ;;  %v4352_v38 = vadd.f32 %v4351_v29, %v4338_v31 }
 0x2b9   :  { %v4296_v42 = vadd.f32 %v4295_v49, %v4282_v1 }
 0x2ba   :  { %v4309_v53 = vpop.f32.mrf.mxu3 }
 0x2bb   :  { %v7390_v4 = vpop.eup %7389  ;;  %v4310_v33 = vadd.f32 %v4309_v53, %v4296_v42 }
 0x2bc   :  { %4545 = vst [vmem:[#allocation11 + $0x8] sm:$0xff] %v7390_v4  ;;  %v4393_v63 = vpop.f32.mrf.mxu1 }
 0x2bd   :  { %7391 = vtanh.f32 %v4310_v33 }
 0x2c0   :  { %v4379_v2 = vpop.f32.mrf.mxu0 }
 0x2c3   :  { %v7392_v56 = vpop.eup %7391 }
 0x2c4   :  { %4549 = vst [vmem:[#allocation11 + $0x28] sm:$0xff] %v7392_v56 }
 0x2cf   :  { %v4405_v27 = vpop.f32.mrf.mxu2  ;;  %v4433_v61 = vpop.f32.mrf.mxu0 }
 0x2d0   :  { %v4434_v6 = vadd.f32 %v4433_v61, %v2803_v11 }
 0x2d1   :  { %v4447_v5 = vpop.f32.mrf.mxu1 }
 0x2d2   :  { %v4448_v50 = vadd.f32 %v4447_v5, %v4434_v6 }
 0x2d7   :  { %v4407_v18 = vpop.f32.mrf.mxu2  ;;  %v4435_v26 = vpop.f32.mrf.mxu0 }
 0x2d8   :  { %v4436_v43 = vadd.f32 %v4435_v26, %v2803_v11 }
 0x2d9   :  { %v4449_v60 = vpop.f32.mrf.mxu1 }
 0x2da   :  { %v4363_v20 = vpop.f32.mrf.mxu3  ;;  %v4450_v36 = vadd.f32 %v4449_v60, %v4436_v43 }
 0x2db   :  { %v4364_v21 = vadd.f32 %v4363_v20, %v4350_v3 }
 0x2dd   :  { %v4378_v34 = vadd.f32 %v4377_v19, %v4364_v21 }
 0x2df   :  { %v4392_v39 = vadd.f32 %v4391_v35, %v4378_v34 }
 0x2e1   :  { %v4406_v46 = vadd.f32 %v4405_v27, %v4392_v39 }
 0x2e2   :  { %v4365_v40 = vpop.f32.mrf.mxu3 }
 0x2e3   :  { %v4366_v37 = vadd.f32 %v4365_v40, %v4352_v38 }
 0x2e5   :  { %v4380_v45 = vadd.f32 %v4379_v2, %v4366_v37 }
 0x2e7   :  { %v4394_v59 = vadd.f32 %v4393_v63, %v4380_v45 }
 0x2e9   :  { %v4408_v17 = vadd.f32 %v4407_v18, %v4394_v59 }
 0x2ef   :  { %v4461_v32 = vpop.f32.mrf.mxu2  ;;  %v4489_v44 = vpop.f32.mrf.mxu0 }
 0x2f0   :  { %v4462_v57 = vadd.f32 %v4461_v32, %v4448_v50 }
 0x2f1   :  { %v4503_v41 = vpop.f32.mrf.mxu1 }
 0x2f7   :  { %v4463_v22 = vpop.f32.mrf.mxu2  ;;  %v4491_v14 = vpop.f32.mrf.mxu0 }
 0x2f8   :  { %v4464_v13 = vadd.f32 %v4463_v22, %v4450_v36 }
 0x2f9   :  { %v4505_v33 = vpop.f32.mrf.mxu1 }
 0x2fa   :  { %v4419_v9 = vpop.f32.mrf.mxu3 }
 0x2fb   :  { %v4420_v28 = vadd.f32 %v4419_v9, %v4406_v46 }
 0x2fd   :  { %7393 = vtanh.f32 %v4420_v28 }
 0x302   :  { %v4421_v54 = vpop.f32.mrf.mxu3 }
 0x303   :  { %v7394_v52 = vpop.eup %7393  ;;  %v4422_v55 = vadd.f32 %v4421_v54, %v4408_v17 }
 0x304   :  { %4546 = vst [vmem:[#allocation11 + $0x10] sm:$0xff] %v7394_v52 }
 0x305   :  { %7395 = vtanh.f32 %v4422_v55 }
 0x30b   :  { %v7396_v58 = vpop.eup %7395 }
 0x30c   :  { %4550 = vst [vmem:[#allocation11 + $0x30] sm:$0xff] %v7396_v58 }
 0x30f   :  { %v4517_v1 = vpop.f32.mrf.mxu2 }
 0x317   :  { %v4519_v48 = vpop.f32.mrf.mxu2 }
 0x31a   :  { %v4475_v0 = vpop.f32.mrf.mxu3 }
 0x31b   :  { %v4476_v7 = vadd.f32 %v4475_v0, %v4462_v57 }
 0x31d   :  { %v4490_v25 = vadd.f32 %v4489_v44, %v4476_v7 }
 0x31f   :  { %v4504_v10 = vadd.f32 %v4503_v41, %v4490_v25 }
 0x321   :  { %v4518_v42 = vadd.f32 %v4517_v1, %v4504_v10 }
 0x322   :  { %v4477_v8 = vpop.f32.mrf.mxu3 }
 0x323   :  { %v4478_v47 = vadd.f32 %v4477_v8, %v4464_v13 }
 0x325   :  { %v4492_v49 = vadd.f32 %v4491_v14, %v4478_v47 }
 0x327   :  { %v4506_v56 = vadd.f32 %v4505_v33, %v4492_v49 }
 0x329   :  { %v4520_v24 = vadd.f32 %v4519_v48, %v4506_v56 }
 0x33a   :  { %v4531_v53 = vpop.f32.mrf.mxu3 }
 0x33b   :  { %v4532_v4 = vadd.f32 %v4531_v53, %v4518_v42 }
 0x33d   :  { %7397 = vtanh.f32 %v4532_v4 }
 0x342   :  { %v4533_v62 = vpop.f32.mrf.mxu3 }
 0x343   :  { %v7398_v15 = vpop.eup %7397  ;;  %v4534_v23 = vadd.f32 %v4533_v62, %v4520_v24 }
 0x344   :  { %4547 = vst [vmem:[#allocation11 + $0x18] sm:$0xff] %v7398_v15 }
 0x345   :  { %7399 = vtanh.f32 %v4534_v23 }
 0x34b   :  { %v7400_v16 = vpop.eup %7399 }
 0x34c   :  { %4551 = vst [vmem:[#allocation11 + $0x38] sm:$0xff] %v7400_v16 }
 0x34d   :  { %4564 = dma.vmem_to_hbm [thread:$0]  %s4557_s4, 1024, %s4559_s23, [#allocation4], %s7556_s26, %s7556_s26, %s7557_s27  }
 0x34e   :  { %7553 = dma.done.wait [#allocation4], 1024  }
 0x34f   :  { %7554 = vsyncadd [#allocation4], 4294966272 }
 0x350   :  { %4569 = vsyncpa [#allocation3], 1 }
 0x351   :  { %4570 = vsyncpa [#allocation6], 1 }
 0x352   :  { %4571 = vsyncpa [#allocation9], 1 }
 0x353   :  { %4572 = vsyncpa [#allocation4], 1 }

</bundles_post_ra>
